<compile_context>
chip_gen: v6e
topology: v6e:2x2x1
jax: 0.10.0
libtpu: 0.0.40
codegen_flags: <defaults>
</compile_context>

<pallas_src>
import functools
import math

import jax
import jax.numpy as jnp
from jax.experimental import pallas as pl
from jax.experimental.pallas import tpu as pltpu

MATMUL_DTYPE = jnp.bfloat16  # MXU operand / HBM activation dtype; state & accum stay f32.


def _round_up(x, m):
    return ((x + m - 1) // m) * m


def _vmem_capacity_bytes():
    try:
        return int(pltpu.get_tpu_info().vmem_capacity_bytes)
    except Exception:
        return 64 * 1024 * 1024  # conservative default (v7x per-TC VMEM)


def _choose_time_chunk(T, per_step_bytes, fixed_bytes, budget_bytes):
    """Largest time chunk whose FULL working set (dbl-buffered IO + weights + scratch)
    fits the VMEM budget."""
    avail = budget_bytes - fixed_bytes
    if avail < per_step_bytes:
        return 1
    return int(max(1, min(T, avail // per_step_bytes)))


# ---------------------------------------------------------------------------
# In-kernel recurrence: only h @ W_hh^T per step; xg comes from VMEM scratch.
# ---------------------------------------------------------------------------
def _run_recurrence(xg_scr, whh, h0, c0, n_steps, n_valid, out_ref, unroll):
    """Run n_steps timesteps.  xg_scr: (Tc, TB, 4H) f32 scratch; whh: (H, 4H) bf16."""
    H = whh.shape[0]

    def step(t, carry):
        h, c = carry
        gates = xg_scr[t] + jnp.dot(
            h.astype(whh.dtype), whh, preferred_element_type=jnp.float32
        )  # (TB, 4H) f32
        # sigmoid(x) == 0.5*tanh(0.5*x) + 0.5  -> 5 tanh EUP pushes per step
        # instead of 3 sigmoid + 2 tanh (shorter serial dependency chain).
        i_g = 0.5 * jnp.tanh(0.5 * gates[:, 0 * H:1 * H]) + 0.5
        f_g = 0.5 * jnp.tanh(0.5 * gates[:, 1 * H:2 * H]) + 0.5
        g_g = jnp.tanh(gates[:, 2 * H:3 * H])
        o_g = 0.5 * jnp.tanh(0.5 * gates[:, 3 * H:4 * H]) + 0.5
        c_new = f_g * c + i_g * g_g
        h_new = o_g * jnp.tanh(c_new)
        if out_ref is not None:
            out_ref[t] = h_new.astype(out_ref.dtype)
        if n_valid is not None:          # masked tail block (T % Tc != 0 only)
            keep = t < n_valid
            h_new = jnp.where(keep, h_new, h)
            c_new = jnp.where(keep, c_new, c)
        return h_new, c_new

    return jax.lax.fori_loop(0, n_steps, step, (h0, c0), unroll=unroll)


def _lstm_seq_kernel(x_ref, wih_ref, bias_ref, whh_ref, out_ref,
                     xg_scr, h_scr, c_scr, *, t_total):
    """Non-final layer: fused input projection + recurrence; writes bf16 h sequence."""
    tblk = pl.program_id(1)

    @pl.when(tblk == 0)
    def _():
        h_scr[...] = jnp.zeros_like(h_scr)
        c_scr[...] = jnp.zeros_like(c_scr)

    Tc, TB, Din = x_ref.shape
    G = wih_ref.shape[1]
    # One lane-dense MXU matmul per time block (fused input projection).
    xg = jnp.dot(x_ref[...].reshape(Tc * TB, Din), wih_ref[...],
                 preferred_element_type=jnp.float32) + bias_ref[...]
    xg_scr[...] = xg.reshape(Tc, TB, G)

    n_valid = None
    if t_total % Tc != 0:
        n_valid = jnp.minimum(t_total - tblk * Tc, Tc)

    h_fin, c_fin = _run_recurrence(xg_scr, whh_ref[...], h_scr[...], c_scr[...],
                                   Tc, n_valid, out_ref, unroll=min(Tc, 8))
    h_scr[...] = h_fin
    c_scr[...] = c_fin


def _lstm_last_fc_kernel(x_ref, wih_ref, bias_ref, whh_ref, fcw_ref, fcb_ref,
                         out_ref, xg_scr, h_scr, c_scr, *, t_total):
    """Final layer fused with the FC head: only fc(h_T) (TB, O) is written to HBM."""
    tblk = pl.program_id(1)

    @pl.when(tblk == 0)
    def _():
        h_scr[...] = jnp.zeros_like(h_scr)
        c_scr[...] = jnp.zeros_like(c_scr)

    Tc, TB, Din = x_ref.shape
    G = wih_ref.shape[1]
    xg = jnp.dot(x_ref[...].reshape(Tc * TB, Din), wih_ref[...],
                 preferred_element_type=jnp.float32) + bias_ref[...]
    xg_scr[...] = xg.reshape(Tc, TB, G)

    n_valid = None
    if t_total % Tc != 0:
        n_valid = jnp.minimum(t_total - tblk * Tc, Tc)

    h_fin, c_fin = _run_recurrence(xg_scr, whh_ref[...], h_scr[...], c_scr[...],
                                   Tc, n_valid, None, unroll=min(Tc, 8))
    h_scr[...] = h_fin
    c_scr[...] = c_fin

    @pl.when(tblk == pl.num_programs(1) - 1)
    def _():
        out_ref[...] = (
            jnp.dot(h_fin.astype(fcw_ref.dtype), fcw_ref[...],
                    preferred_element_type=jnp.float32)
            + fcb_ref[...]
        )


# ---------------------------------------------------------------------------
# pallas_call wrappers
# ---------------------------------------------------------------------------
def lstm_layer_seq(x, wih_t, bias, whh_t, *, tc, tb, vmem_limit):
    """x: (T, B_pad, Din) bf16 -> bf16 hidden sequence (T, B_pad, H)."""
    T, B, Din = x.shape
    H, G = whh_t.shape
    nb, nt = B // tb, pl.cdiv(T, tc)
    kernel = functools.partial(_lstm_seq_kernel, t_total=T)
    return pl.pallas_call(
        kernel,
        out_shape=jax.ShapeDtypeStruct((T, B, H), MATMUL_DTYPE),
        grid_spec=pltpu.PrefetchScalarGridSpec(
            num_scalar_prefetch=0,
            grid=(nb, nt),
            in_specs=[
                pl.BlockSpec((tc, tb, Din), lambda b, t: (t, b, 0)),
                pl.BlockSpec((Din, G), lambda b, t: (0, 0)),
                pl.BlockSpec((1, G), lambda b, t: (0, 0)),
                pl.BlockSpec((H, G), lambda b, t: (0, 0)),
            ],
            out_specs=pl.BlockSpec((tc, tb, H), lambda b, t: (t, b, 0)),
            scratch_shapes=[
                pltpu.VMEM((tc, tb, G), jnp.float32),   # xg (gate pre-activations)
                pltpu.VMEM((tb, H), jnp.float32),       # h state
                pltpu.VMEM((tb, H), jnp.float32),       # c state
            ],
        ),
        compiler_params=pltpu.CompilerParams(
            # Time is inherently sequential ("arbitrary"); batch tiles are "parallel"
            # so v7x can split the recurrence across its two TensorCores.
            dimension_semantics=("parallel", "arbitrary"),
            vmem_limit_bytes=int(vmem_limit),
        ),
    )(x, wih_t, bias, whh_t)


def lstm_layer_last_fc(x, wih_t, bias, whh_t, fc_w_t, fc_b, *, tc, tb, vmem_limit):
    """Final layer + FC head fused: returns fc(h_T) of shape (B_pad, O_pad) f32."""
    T, B, Din = x.shape
    H, G = whh_t.shape
    O = fc_w_t.shape[1]
    nb, nt = B // tb, pl.cdiv(T, tc)
    kernel = functools.partial(_lstm_last_fc_kernel, t_total=T)
    return pl.pallas_call(
        kernel,
        out_shape=jax.ShapeDtypeStruct((B, O), jnp.float32),
        grid_spec=pltpu.PrefetchScalarGridSpec(
            num_scalar_prefetch=0,
            grid=(nb, nt),
            in_specs=[
                pl.BlockSpec((tc, tb, Din), lambda b, t: (t, b, 0)),
                pl.BlockSpec((Din, G), lambda b, t: (0, 0)),
                pl.BlockSpec((1, G), lambda b, t: (0, 0)),
                pl.BlockSpec((H, G), lambda b, t: (0, 0)),
                pl.BlockSpec((H, O), lambda b, t: (0, 0)),
                pl.BlockSpec((1, O), lambda b, t: (0, 0)),
            ],
            out_specs=pl.BlockSpec((tb, O), lambda b, t: (b, 0)),
            scratch_shapes=[
                pltpu.VMEM((tc, tb, G), jnp.float32),
                pltpu.VMEM((tb, H), jnp.float32),
                pltpu.VMEM((tb, H), jnp.float32),
            ],
        ),
        compiler_params=pltpu.CompilerParams(
            dimension_semantics=("parallel", "arbitrary"),
            vmem_limit_bytes=int(vmem_limit),
        ),
    )(x, wih_t, bias, whh_t, fc_w_t, fc_b)


# ---------------------------------------------------------------------------
# Parameter packing (PyTorch layout -> padded, transposed, bf16, per-gate aligned)
# ---------------------------------------------------------------------------
def _pack_gate_weight(w, in_pad, H_pad, dtype):
    """w: (4H, in_d) PyTorch layout -> (in_pad, 4*H_pad) transposed, per-gate padded."""
    four_h, in_d = w.shape
    H = four_h // 4
    out = jnp.zeros((in_pad, 4 * H_pad), jnp.float32)
    for k in range(4):
        out = out.at[:in_d, k * H_pad:k * H_pad + H].set(w[k * H:(k + 1) * H, :].T)
    return out.astype(dtype)


def _pack_gate_bias(b, H_pad):
    H = b.shape[0] // 4
    out = jnp.zeros((1, 4 * H_pad), jnp.float32)
    for k in range(4):
        out = out.at[0, k * H_pad:k * H_pad + H].set(b[k * H:(k + 1) * H])
    return out


def init_params(key, input_dim, hidden_dim, num_layers, output_dim):
    """PyTorch-style uniform(-1/sqrt(H), 1/sqrt(H)) init.
    Returns (packed_params_for_kernels, raw_weights_for_reference)."""
    H_pad = _round_up(hidden_dim, 128)
    D_pad = _round_up(input_dim, 128)
    O_pad = _round_up(output_dim, 128)
    bound = 1.0 / math.sqrt(hidden_dim)

    raw_layers, packed_layers = [], []
    for layer in range(num_layers):
        in_d = input_dim if layer == 0 else hidden_dim
        in_pad = D_pad if layer == 0 else H_pad
        key, k1, k2, k3, k4 = jax.random.split(key, 5)
        w_ih = jax.random.uniform(k1, (4 * hidden_dim, in_d), jnp.float32, -bound, bound)
        w_hh = jax.random.uniform(k2, (4 * hidden_dim, hidden_dim), jnp.float32, -bound, bound)
        b_ih = jax.random.uniform(k3, (4 * hidden_dim,), jnp.float32, -bound, bound)
        b_hh = jax.random.uniform(k4, (4 * hidden_dim,), jnp.float32, -bound, bound)
        raw_layers.append({"w_ih": w_ih, "w_hh": w_hh, "b_ih": b_ih, "b_hh": b_hh})
        packed_layers.append({
            "wih_t": _pack_gate_weight(w_ih, in_pad, H_pad, MATMUL_DTYPE),   # (in_pad, 4H_pad)
            "whh_t": _pack_gate_weight(w_hh, H_pad, H_pad, MATMUL_DTYPE),    # (H_pad, 4H_pad)
            "bias": _pack_gate_bias(b_ih + b_hh, H_pad),                     # (1, 4H_pad) f32
        })

    key, k5, k6 = jax.random.split(key, 3)
    fc_w = jax.random.uniform(k5, (output_dim, hidden_dim), jnp.float32, -bound, bound)
    fc_b = jax.random.uniform(k6, (output_dim,), jnp.float32, -bound, bound)
    fc_w_t = jnp.zeros((H_pad, O_pad), jnp.float32).at[:hidden_dim, :output_dim].set(fc_w.T)
    fc_b_pad = jnp.zeros((1, O_pad), jnp.float32).at[0, :output_dim].set(fc_b)

    params = {
        "layers": packed_layers,
        "fc_w_t": fc_w_t.astype(MATMUL_DTYPE),
        "fc_b": fc_b_pad,
    }
    raw = {"layers": raw_layers, "fc_w": fc_w, "fc_b": fc_b}
    return params, raw


# ---------------------------------------------------------------------------
# Forward pass (equivalent of LSTM.forward): x (B, T, D) -> (B, output_dim)
# ---------------------------------------------------------------------------
@functools.partial(jax.jit, static_argnames=("output_dim",))
def lstm_forward(x_btd, params, *, output_dim):
    B, T, D = x_btd.shape
    num_layers = len(params["layers"])

    # Batch padded to a multiple of 16: bf16 (16,128) tiles stay aligned for the
    # in-kernel (Tc, TB, D) -> (Tc*TB, D) collapse and stores stay lane-dense.
    B_pad = _round_up(B, 16)
    if B_pad > 256:
        TB = 256
        B_pad = _round_up(B_pad, TB)
    else:
        TB = B_pad

    cap = _vmem_capacity_bytes()
    budget = min(int(0.35 * cap), 40 * 1024 * 1024)        # working-set target
    vmem_limit = min(int(0.75 * cap), 100 * 1024 * 1024)   # scoped-VMEM limit to match

    # time-major, pad batch/feature dims, bf16 for MXU operands / HBM traffic
    D_pad = params["layers"][0]["wih_t"].shape[0]
    x_tbd = jnp.transpose(x_btd, (1, 0, 2)).astype(MATMUL_DTYPE)
    x_pad = jnp.zeros((T, B_pad, D_pad), MATMUL_DTYPE).at[:, :B, :D].set(x_tbd)

    h_in = x_pad
    out_pad = None
    for li, lp in enumerate(params["layers"]):
        Din = lp["wih_t"].shape[0]
        G = lp["wih_t"].shape[1]
        H = lp["whh_t"].shape[0]
        # VMEM accounting: double-buffered x block (+ double-buffered out block for
        # non-final layers) + xg scratch scale with Tc; weights/bias/h/c are fixed.
        per_step = 2 * TB * Din * 2 + TB * G * 4
        fixed = 2 * Din * G * 2 + 2 * H * G * 2 + 2 * G * 4 + 2 * TB * H * 4
        if li < num_layers - 1:
            per_step += 2 * TB * H * 2
            tc = _choose_time_chunk(T, per_step, fixed, budget)
            h_in = lstm_layer_seq(h_in, lp["wih_t"], lp["bias"], lp["whh_t"],
                                  tc=tc, tb=TB, vmem_limit=vmem_limit)
        else:
            O = params["fc_w_t"].shape[1]
            fixed += 2 * H * O * 2 + 2 * O * 4 + 2 * TB * O * 4
            tc = _choose_time_chunk(T, per_step, fixed, budget)
            out_pad = lstm_layer_last_fc(
                h_in, lp["wih_t"], lp["bias"], lp["whh_t"],
                params["fc_w_t"], params["fc_b"],
                tc=tc, tb=TB, vmem_limit=vmem_limit)
    return out_pad[:B, :output_dim]


# ---------------------------------------------------------------------------
# Pure-JAX reference mirroring the kernel math (bf16 matmul operands, f32 state)
# ---------------------------------------------------------------------------
def _reference_forward(x_btd, raw):
    B = x_btd.shape[0]
    h_seq = jnp.transpose(x_btd, (1, 0, 2)).astype(jnp.float32)
    for lp in raw["layers"]:
        H = lp["w_hh"].shape[1]
        wih = lp["w_ih"].astype(MATMUL_DTYPE)
        whh = lp["w_hh"].astype(MATMUL_DTYPE)
        bias = (lp["b_ih"] + lp["b_hh"])[None, :]
        h = jnp.zeros((B, H), jnp.float32)
        c = jnp.zeros((B, H), jnp.float32)
        outs = []
        for t in range(h_seq.shape[0]):
            gates = (
                jnp.dot(h_seq[t].astype(MATMUL_DTYPE), wih.T, preferred_element_type=jnp.float32)
                + jnp.dot(h.astype(MATMUL_DTYPE), whh.T, preferred_element_type=jnp.float32)
                + bias
            )
            i = jax.nn.sigmoid(gates[:, 0 * H:1 * H])
            f = jax.nn.sigmoid(gates[:, 1 * H:2 * H])
            g = jnp.tanh(gates[:, 2 * H:3 * H])
            o = jax.nn.sigmoid(gates[:, 3 * H:4 * H])
            c = f * c + i * g
            h = o * jnp.tanh(c)
            outs.append(h)
        h_seq = jnp.stack(outs, axis=0)
    return (
        jnp.dot(h_seq[-1].astype(MATMUL_DTYPE), raw["fc_w"].astype(MATMUL_DTYPE).T,
                preferred_element_type=jnp.float32)
        + raw["fc_b"][None, :]
    )


if __name__ == "__main__":
    # Small shapes consistent with the module's forward (batch_first sequence input).
    B, T = 2, 8
    input_dim, hidden_dim, num_layers, output_dim = 16, 32, 2, 4

    key = jax.random.PRNGKey(0)
    kx, kp = jax.random.split(key)
    x = jax.random.normal(kx, (B, T, input_dim), jnp.float32)
    params, raw = init_params(kp, input_dim, hidden_dim, num_layers, output_dim)

    out = lstm_forward(x, params, output_dim=output_dim)
    out = jax.block_until_ready(out)

    ref = _reference_forward(x, raw)
    assert out.shape == (B, output_dim)
    assert jnp.allclose(out, ref, atol=5e-3, rtol=5e-3), (
        f"max abs diff = {jnp.max(jnp.abs(out - ref))}")

    print("KERNEL_OK")
</pallas_src>

<mosaic_0001>
module attributes {stable_mosaic.version = 11 : i64} {
  func.func @_lstm_seq_kernel(%arg0: i32, %arg1: i32, %arg2: memref<8x16x128xbf16, #tpu.memory_space<vmem>>, %arg3: memref<128x512xbf16, #tpu.memory_space<vmem>>, %arg4: memref<1x512xf32, #tpu.memory_space<vmem>>, %arg5: memref<128x512xbf16, #tpu.memory_space<vmem>>, %arg6: memref<8x16x128xbf16, #tpu.memory_space<vmem>>, %arg7: memref<8x16x512xf32, #tpu.memory_space<vmem>>, %arg8: memref<16x128xf32, #tpu.memory_space<vmem>>, %arg9: memref<16x128xf32, #tpu.memory_space<vmem>>) attributes {dimension_semantics = [#tpu.dimension_semantics<parallel>, #tpu.dimension_semantics<arbitrary>], iteration_bounds = array<i64: 1, 1>, scalar_prefetch = 0 : i64, scratch_operands = 3 : i64, tpu.core_type = #tpu.core_type<tc>, window_params = [{transform_indices = @transform_0, window_bounds = array<i64: 8, 16, 128>}, {pipeline_mode = #tpu.pipeline_mode<synchronous>, transform_indices = @transform_1, window_bounds = array<i64: 128, 512>}, {pipeline_mode = #tpu.pipeline_mode<synchronous>, transform_indices = @transform_2, window_bounds = array<i64: 1, 512>}, {pipeline_mode = #tpu.pipeline_mode<synchronous>, transform_indices = @transform_3, window_bounds = array<i64: 128, 512>}, {transform_indices = @transform_4, window_bounds = array<i64: 8, 16, 128>}]} {
    %c0_i32 = arith.constant 0 : i32
    %0 = arith.cmpi eq, %arg1, %c0_i32 : i32
    %1 = arith.extui %0 : i1 to i32
    %c0_i32_0 = arith.constant 0 : i32
    %2 = arith.cmpi ne, %1, %c0_i32_0 : i32
    scf.if %2 {
      %cst_133 = arith.constant 0.000000e+00 : f32
      %353 = vector.broadcast %cst_133 : f32 to vector<16x128xf32>
      %c0_134 = arith.constant 0 : index
      %c0_135 = arith.constant 0 : index
      %354 = vector.load %arg8[%c0_134, %c0_135] : memref<16x128xf32, #tpu.memory_space<vmem>>, vector<16x128xf32>
      tpu.vector_store %arg8[%c0_134, %c0_135], %353 {strides = array<i32>} : memref<16x128xf32, #tpu.memory_space<vmem>>, vector<16x128xf32>,
      %cst_136 = arith.constant 0.000000e+00 : f32
      %355 = vector.broadcast %cst_136 : f32 to vector<16x128xf32>
      %c0_137 = arith.constant 0 : index
      %c0_138 = arith.constant 0 : index
      %356 = vector.load %arg9[%c0_137, %c0_138] : memref<16x128xf32, #tpu.memory_space<vmem>>, vector<16x128xf32>
      tpu.vector_store %arg9[%c0_137, %c0_138], %355 {strides = array<i32>} : memref<16x128xf32, #tpu.memory_space<vmem>>, vector<16x128xf32>,
    } else {
    }
    %c0 = arith.constant 0 : index
    %c0_1 = arith.constant 0 : index
    %c0_2 = arith.constant 0 : index
    %3 = vector.load %arg2[%c0, %c0_1, %c0_2] : memref<8x16x128xbf16, #tpu.memory_space<vmem>>, vector<8x16x128xbf16>
    %4 = vector.shape_cast %3 : vector<8x16x128xbf16> to vector<128x128xbf16>
    %c0_3 = arith.constant 0 : index
    %c0_4 = arith.constant 0 : index
    %5 = vector.load %arg3[%c0_3, %c0_4] : memref<128x512xbf16, #tpu.memory_space<vmem>>, vector<128x512xbf16>
    %cst = arith.constant dense<0.000000e+00> : vector<128x512xf32>
    %6 = tpu.matmul %4, %5, %cst {dimension_numbers = #tpu.dot_dimension_numbers<[1], [0], [0], [1], [0, 0, 1, 1], [], []>} : vector<128x128xbf16>, vector<128x512xbf16>, vector<128x512xf32> -> vector<128x512xf32>
    %c0_5 = arith.constant 0 : index
    %c0_6 = arith.constant 0 : index
    %7 = vector.load %arg4[%c0_5, %c0_6] : memref<1x512xf32, #tpu.memory_space<vmem>>, vector<1x512xf32>
    %8 = vector.broadcast %7 : vector<1x512xf32> to vector<128x512xf32>
    %9 = arith.addf %6, %8 : vector<128x512xf32>
    %10 = vector.shape_cast %9 : vector<128x512xf32> to vector<8x16x512xf32>
    %c0_7 = arith.constant 0 : index
    %c0_8 = arith.constant 0 : index
    %c0_9 = arith.constant 0 : index
    %11 = vector.load %arg7[%c0_7, %c0_8, %c0_9] : memref<8x16x512xf32, #tpu.memory_space<vmem>>, vector<8x16x512xf32>
    tpu.vector_store %arg7[%c0_7, %c0_8, %c0_9], %10 {strides = array<i32>} : memref<8x16x512xf32, #tpu.memory_space<vmem>>, vector<8x16x512xf32>,
    %c0_10 = arith.constant 0 : index
    %c0_11 = arith.constant 0 : index
    %12 = vector.load %arg5[%c0_10, %c0_11] : memref<128x512xbf16, #tpu.memory_space<vmem>>, vector<128x512xbf16>
    %c0_12 = arith.constant 0 : index
    %c0_13 = arith.constant 0 : index
    %13 = vector.load %arg8[%c0_12, %c0_13] : memref<16x128xf32, #tpu.memory_space<vmem>>, vector<16x128xf32>
    %c0_14 = arith.constant 0 : index
    %c0_15 = arith.constant 0 : index
    %14 = vector.load %arg9[%c0_14, %c0_15] : memref<16x128xf32, #tpu.memory_space<vmem>>, vector<16x128xf32>
    %c0_i32_16 = arith.constant 0 : i32
    %15 = arith.index_cast %c0_i32_16 : i32 to index
    %c0_17 = arith.constant 0 : index
    %c0_18 = arith.constant 0 : index
    %16 = vector.load %arg7[%15, %c0_17, %c0_18] : memref<8x16x512xf32, #tpu.memory_space<vmem>>, vector<1x16x512xf32>
    %17 = vector.shape_cast %16 : vector<1x16x512xf32> to vector<16x512xf32>
    %18 = arith.truncf %13 : vector<16x128xf32> to vector<16x128xbf16>
    %cst_19 = arith.constant dense<0.000000e+00> : vector<16x512xf32>
    %19 = tpu.matmul %18, %12, %cst_19 {dimension_numbers = #tpu.dot_dimension_numbers<[1], [0], [0], [1], [0, 0, 1, 1], [], []>} : vector<16x128xbf16>, vector<128x512xbf16>, vector<16x512xf32> -> vector<16x512xf32>
    %20 = arith.addf %17, %19 : vector<16x512xf32>
    %21 = vector.extract_strided_slice %20 {offsets = [0, 0], sizes = [16, 128], strides = [1, 1]} : vector<16x512xf32> to vector<16x128xf32>
    %cst_20 = arith.constant 5.000000e-01 : f32
    %22 = vector.broadcast %cst_20 : f32 to vector<16x128xf32>
    %23 = arith.mulf %22, %21 : vector<16x128xf32>
    %24 = math.tanh %23 : vector<16x128xf32>
    %cst_21 = arith.constant 5.000000e-01 : f32
    %25 = vector.broadcast %cst_21 : f32 to vector<16x128xf32>
    %26 = arith.mulf %25, %24 : vector<16x128xf32>
    %cst_22 = arith.constant 5.000000e-01 : f32
    %27 = vector.broadcast %cst_22 : f32 to vector<16x128xf32>
    %28 = arith.addf %26, %27 : vector<16x128xf32>
    %29 = vector.extract_strided_slice %20 {offsets = [0, 128], sizes = [16, 128], strides = [1, 1]} : vector<16x512xf32> to vector<16x128xf32>
    %cst_23 = arith.constant 5.000000e-01 : f32
    %30 = vector.broadcast %cst_23 : f32 to vector<16x128xf32>
    %31 = arith.mulf %30, %29 : vector<16x128xf32>
    %32 = math.tanh %31 : vector<16x128xf32>
    %cst_24 = arith.constant 5.000000e-01 : f32
    %33 = vector.broadcast %cst_24 : f32 to vector<16x128xf32>
    %34 = arith.mulf %33, %32 : vector<16x128xf32>
    %cst_25 = arith.constant 5.000000e-01 : f32
    %35 = vector.broadcast %cst_25 : f32 to vector<16x128xf32>
    %36 = arith.addf %34, %35 : vector<16x128xf32>
    %37 = vector.extract_strided_slice %20 {offsets = [0, 256], sizes = [16, 128], strides = [1, 1]} : vector<16x512xf32> to vector<16x128xf32>
    %38 = math.tanh %37 : vector<16x128xf32>
    %39 = vector.extract_strided_slice %20 {offsets = [0, 384], sizes = [16, 128], strides = [1, 1]} : vector<16x512xf32> to vector<16x128xf32>
    %cst_26 = arith.constant 5.000000e-01 : f32
    %40 = vector.broadcast %cst_26 : f32 to vector<16x128xf32>
    %41 = arith.mulf %40, %39 : vector<16x128xf32>
    %42 = math.tanh %41 : vector<16x128xf32>
    %cst_27 = arith.constant 5.000000e-01 : f32
    %43 = vector.broadcast %cst_27 : f32 to vector<16x128xf32>
    %44 = arith.mulf %43, %42 : vector<16x128xf32>
    %cst_28 = arith.constant 5.000000e-01 : f32
    %45 = vector.broadcast %cst_28 : f32 to vector<16x128xf32>
    %46 = arith.addf %44, %45 : vector<16x128xf32>
    %47 = arith.mulf %36, %14 : vector<16x128xf32>
    %48 = arith.mulf %28, %38 : vector<16x128xf32>
    %49 = arith.addf %47, %48 : vector<16x128xf32>
    %50 = math.tanh %49 : vector<16x128xf32>
    %51 = arith.mulf %46, %50 : vector<16x128xf32>
    %52 = arith.truncf %51 : vector<16x128xf32> to vector<16x128xbf16>
    %53 = arith.index_cast %c0_i32_16 : i32 to index
    %c0_29 = arith.constant 0 : index
    %c0_30 = arith.constant 0 : index
    %54 = vector.load %arg6[%53, %c0_29, %c0_30] : memref<8x16x128xbf16, #tpu.memory_space<vmem>>, vector<1x16x128xbf16>
    %55 = vector.shape_cast %54 : vector<1x16x128xbf16> to vector<16x128xbf16>
    %56 = vector.shape_cast %52 : vector<16x128xbf16> to vector<1x16x128xbf16>
    tpu.vector_store %arg6[%53, %c0_29, %c0_30], %56 {strides = array<i32>} : memref<8x16x128xbf16, #tpu.memory_space<vmem>>, vector<1x16x128xbf16>,
    %c1_i32 = arith.constant 1 : i32
    %57 = arith.index_cast %c1_i32 : i32 to index
    %c0_31 = arith.constant 0 : index
    %c0_32 = arith.constant 0 : index
    %58 = vector.load %arg7[%57, %c0_31, %c0_32] : memref<8x16x512xf32, #tpu.memory_space<vmem>>, vector<1x16x512xf32>
    %59 = vector.shape_cast %58 : vector<1x16x512xf32> to vector<16x512xf32>
    %60 = arith.truncf %51 : vector<16x128xf32> to vector<16x128xbf16>
    %cst_33 = arith.constant dense<0.000000e+00> : vector<16x512xf32>
    %61 = tpu.matmul %60, %12, %cst_33 {dimension_numbers = #tpu.dot_dimension_numbers<[1], [0], [0], [1], [0, 0, 1, 1], [], []>} : vector<16x128xbf16>, vector<128x512xbf16>, vector<16x512xf32> -> vector<16x512xf32>
    %62 = arith.addf %59, %61 : vector<16x512xf32>
    %63 = vector.extract_strided_slice %62 {offsets = [0, 0], sizes = [16, 128], strides = [1, 1]} : vector<16x512xf32> to vector<16x128xf32>
    %cst_34 = arith.constant 5.000000e-01 : f32
    %64 = vector.broadcast %cst_34 : f32 to vector<16x128xf32>
    %65 = arith.mulf %64, %63 : vector<16x128xf32>
    %66 = math.tanh %65 : vector<16x128xf32>
    %cst_35 = arith.constant 5.000000e-01 : f32
    %67 = vector.broadcast %cst_35 : f32 to vector<16x128xf32>
    %68 = arith.mulf %67, %66 : vector<16x128xf32>
    %cst_36 = arith.constant 5.000000e-01 : f32
    %69 = vector.broadcast %cst_36 : f32 to vector<16x128xf32>
    %70 = arith.addf %68, %69 : vector<16x128xf32>
    %71 = vector.extract_strided_slice %62 {offsets = [0, 128], sizes = [16, 128], strides = [1, 1]} : vector<16x512xf32> to vector<16x128xf32>
    %cst_37 = arith.constant 5.000000e-01 : f32
    %72 = vector.broadcast %cst_37 : f32 to vector<16x128xf32>
    %73 = arith.mulf %72, %71 : vector<16x128xf32>
    %74 = math.tanh %73 : vector<16x128xf32>
    %cst_38 = arith.constant 5.000000e-01 : f32
    %75 = vector.broadcast %cst_38 : f32 to vector<16x128xf32>
    %76 = arith.mulf %75, %74 : vector<16x128xf32>
    %cst_39 = arith.constant 5.000000e-01 : f32
    %77 = vector.broadcast %cst_39 : f32 to vector<16x128xf32>
    %78 = arith.addf %76, %77 : vector<16x128xf32>
    %79 = vector.extract_strided_slice %62 {offsets = [0, 256], sizes = [16, 128], strides = [1, 1]} : vector<16x512xf32> to vector<16x128xf32>
    %80 = math.tanh %79 : vector<16x128xf32>
    %81 = vector.extract_strided_slice %62 {offsets = [0, 384], sizes = [16, 128], strides = [1, 1]} : vector<16x512xf32> to vector<16x128xf32>
    %cst_40 = arith.constant 5.000000e-01 : f32
    %82 = vector.broadcast %cst_40 : f32 to vector<16x128xf32>
    %83 = arith.mulf %82, %81 : vector<16x128xf32>
    %84 = math.tanh %83 : vector<16x128xf32>
    %cst_41 = arith.constant 5.000000e-01 : f32
    %85 = vector.broadcast %cst_41 : f32 to vector<16x128xf32>
    %86 = arith.mulf %85, %84 : vector<16x128xf32>
    %cst_42 = arith.constant 5.000000e-01 : f32
    %87 = vector.broadcast %cst_42 : f32 to vector<16x128xf32>
    %88 = arith.addf %86, %87 : vector<16x128xf32>
    %89 = arith.mulf %78, %49 : vector<16x128xf32>
    %90 = arith.mulf %70, %80 : vector<16x128xf32>
    %91 = arith.addf %89, %90 : vector<16x128xf32>
    %92 = math.tanh %91 : vector<16x128xf32>
    %93 = arith.mulf %88, %92 : vector<16x128xf32>
    %94 = arith.truncf %93 : vector<16x128xf32> to vector<16x128xbf16>
    %95 = arith.index_cast %c1_i32 : i32 to index
    %c0_43 = arith.constant 0 : index
    %c0_44 = arith.constant 0 : index
    %96 = vector.load %arg6[%95, %c0_43, %c0_44] : memref<8x16x128xbf16, #tpu.memory_space<vmem>>, vector<1x16x128xbf16>
    %97 = vector.shape_cast %96 : vector<1x16x128xbf16> to vector<16x128xbf16>
    %98 = vector.shape_cast %94 : vector<16x128xbf16> to vector<1x16x128xbf16>
    tpu.vector_store %arg6[%95, %c0_43, %c0_44], %98 {strides = array<i32>} : memref<8x16x128xbf16, #tpu.memory_space<vmem>>, vector<1x16x128xbf16>,
    %c2_i32 = arith.constant 2 : i32
    %99 = arith.index_cast %c2_i32 : i32 to index
    %c0_45 = arith.constant 0 : index
    %c0_46 = arith.constant 0 : index
    %100 = vector.load %arg7[%99, %c0_45, %c0_46] : memref<8x16x512xf32, #tpu.memory_space<vmem>>, vector<1x16x512xf32>
    %101 = vector.shape_cast %100 : vector<1x16x512xf32> to vector<16x512xf32>
    %102 = arith.truncf %93 : vector<16x128xf32> to vector<16x128xbf16>
    %cst_47 = arith.constant dense<0.000000e+00> : vector<16x512xf32>
    %103 = tpu.matmul %102, %12, %cst_47 {dimension_numbers = #tpu.dot_dimension_numbers<[1], [0], [0], [1], [0, 0, 1, 1], [], []>} : vector<16x128xbf16>, vector<128x512xbf16>, vector<16x512xf32> -> vector<16x512xf32>
    %104 = arith.addf %101, %103 : vector<16x512xf32>
    %105 = vector.extract_strided_slice %104 {offsets = [0, 0], sizes = [16, 128], strides = [1, 1]} : vector<16x512xf32> to vector<16x128xf32>
    %cst_48 = arith.constant 5.000000e-01 : f32
    %106 = vector.broadcast %cst_48 : f32 to vector<16x128xf32>
    %107 = arith.mulf %106, %105 : vector<16x128xf32>
    %108 = math.tanh %107 : vector<16x128xf32>
    %cst_49 = arith.constant 5.000000e-01 : f32
    %109 = vector.broadcast %cst_49 : f32 to vector<16x128xf32>
    %110 = arith.mulf %109, %108 : vector<16x128xf32>
    %cst_50 = arith.constant 5.000000e-01 : f32
    %111 = vector.broadcast %cst_50 : f32 to vector<16x128xf32>
    %112 = arith.addf %110, %111 : vector<16x128xf32>
    %113 = vector.extract_strided_slice %104 {offsets = [0, 128], sizes = [16, 128], strides = [1, 1]} : vector<16x512xf32> to vector<16x128xf32>
    %cst_51 = arith.constant 5.000000e-01 : f32
    %114 = vector.broadcast %cst_51 : f32 to vector<16x128xf32>
    %115 = arith.mulf %114, %113 : vector<16x128xf32>
    %116 = math.tanh %115 : vector<16x128xf32>
    %cst_52 = arith.constant 5.000000e-01 : f32
    %117 = vector.broadcast %cst_52 : f32 to vector<16x128xf32>
    %118 = arith.mulf %117, %116 : vector<16x128xf32>
    %cst_53 = arith.constant 5.000000e-01 : f32
    %119 = vector.broadcast %cst_53 : f32 to vector<16x128xf32>
    %120 = arith.addf %118, %119 : vector<16x128xf32>
    %121 = vector.extract_strided_slice %104 {offsets = [0, 256], sizes = [16, 128], strides = [1, 1]} : vector<16x512xf32> to vector<16x128xf32>
    %122 = math.tanh %121 : vector<16x128xf32>
    %123 = vector.extract_strided_slice %104 {offsets = [0, 384], sizes = [16, 128], strides = [1, 1]} : vector<16x512xf32> to vector<16x128xf32>
    %cst_54 = arith.constant 5.000000e-01 : f32
    %124 = vector.broadcast %cst_54 : f32 to vector<16x128xf32>
    %125 = arith.mulf %124, %123 : vector<16x128xf32>
    %126 = math.tanh %125 : vector<16x128xf32>
    %cst_55 = arith.constant 5.000000e-01 : f32
    %127 = vector.broadcast %cst_55 : f32 to vector<16x128xf32>
    %128 = arith.mulf %127, %126 : vector<16x128xf32>
    %cst_56 = arith.constant 5.000000e-01 : f32
    %129 = vector.broadcast %cst_56 : f32 to vector<16x128xf32>
    %130 = arith.addf %128, %129 : vector<16x128xf32>
    %131 = arith.mulf %120, %91 : vector<16x128xf32>
    %132 = arith.mulf %112, %122 : vector<16x128xf32>
    %133 = arith.addf %131, %132 : vector<16x128xf32>
    %134 = math.tanh %133 : vector<16x128xf32>
    %135 = arith.mulf %130, %134 : vector<16x128xf32>
    %136 = arith.truncf %135 : vector<16x128xf32> to vector<16x128xbf16>
    %137 = arith.index_cast %c2_i32 : i32 to index
    %c0_57 = arith.constant 0 : index
    %c0_58 = arith.constant 0 : index
    %138 = vector.load %arg6[%137, %c0_57, %c0_58] : memref<8x16x128xbf16, #tpu.memory_space<vmem>>, vector<1x16x128xbf16>
    %139 = vector.shape_cast %138 : vector<1x16x128xbf16> to vector<16x128xbf16>
    %140 = vector.shape_cast %136 : vector<16x128xbf16> to vector<1x16x128xbf16>
    tpu.vector_store %arg6[%137, %c0_57, %c0_58], %140 {strides = array<i32>} : memref<8x16x128xbf16, #tpu.memory_space<vmem>>, vector<1x16x128xbf16>,
    %c3_i32 = arith.constant 3 : i32
    %141 = arith.index_cast %c3_i32 : i32 to index
    %c0_59 = arith.constant 0 : index
    %c0_60 = arith.constant 0 : index
    %142 = vector.load %arg7[%141, %c0_59, %c0_60] : memref<8x16x512xf32, #tpu.memory_space<vmem>>, vector<1x16x512xf32>
    %143 = vector.shape_cast %142 : vector<1x16x512xf32> to vector<16x512xf32>
    %144 = arith.truncf %135 : vector<16x128xf32> to vector<16x128xbf16>
    %cst_61 = arith.constant dense<0.000000e+00> : vector<16x512xf32>
    %145 = tpu.matmul %144, %12, %cst_61 {dimension_numbers = #tpu.dot_dimension_numbers<[1], [0], [0], [1], [0, 0, 1, 1], [], []>} : vector<16x128xbf16>, vector<128x512xbf16>, vector<16x512xf32> -> vector<16x512xf32>
    %146 = arith.addf %143, %145 : vector<16x512xf32>
    %147 = vector.extract_strided_slice %146 {offsets = [0, 0], sizes = [16, 128], strides = [1, 1]} : vector<16x512xf32> to vector<16x128xf32>
    %cst_62 = arith.constant 5.000000e-01 : f32
    %148 = vector.broadcast %cst_62 : f32 to vector<16x128xf32>
    %149 = arith.mulf %148, %147 : vector<16x128xf32>
    %150 = math.tanh %149 : vector<16x128xf32>
    %cst_63 = arith.constant 5.000000e-01 : f32
    %151 = vector.broadcast %cst_63 : f32 to vector<16x128xf32>
    %152 = arith.mulf %151, %150 : vector<16x128xf32>
    %cst_64 = arith.constant 5.000000e-01 : f32
    %153 = vector.broadcast %cst_64 : f32 to vector<16x128xf32>
    %154 = arith.addf %152, %153 : vector<16x128xf32>
    %155 = vector.extract_strided_slice %146 {offsets = [0, 128], sizes = [16, 128], strides = [1, 1]} : vector<16x512xf32> to vector<16x128xf32>
    %cst_65 = arith.constant 5.000000e-01 : f32
    %156 = vector.broadcast %cst_65 : f32 to vector<16x128xf32>
    %157 = arith.mulf %156, %155 : vector<16x128xf32>
    %158 = math.tanh %157 : vector<16x128xf32>
    %cst_66 = arith.constant 5.000000e-01 : f32
    %159 = vector.broadcast %cst_66 : f32 to vector<16x128xf32>
    %160 = arith.mulf %159, %158 : vector<16x128xf32>
    %cst_67 = arith.constant 5.000000e-01 : f32
    %161 = vector.broadcast %cst_67 : f32 to vector<16x128xf32>
    %162 = arith.addf %160, %161 : vector<16x128xf32>
    %163 = vector.extract_strided_slice %146 {offsets = [0, 256], sizes = [16, 128], strides = [1, 1]} : vector<16x512xf32> to vector<16x128xf32>
    %164 = math.tanh %163 : vector<16x128xf32>
    %165 = vector.extract_strided_slice %146 {offsets = [0, 384], sizes = [16, 128], strides = [1, 1]} : vector<16x512xf32> to vector<16x128xf32>
    %cst_68 = arith.constant 5.000000e-01 : f32
    %166 = vector.broadcast %cst_68 : f32 to vector<16x128xf32>
    %167 = arith.mulf %166, %165 : vector<16x128xf32>
    %168 = math.tanh %167 : vector<16x128xf32>
    %cst_69 = arith.constant 5.000000e-01 : f32
    %169 = vector.broadcast %cst_69 : f32 to vector<16x128xf32>
    %170 = arith.mulf %169, %168 : vector<16x128xf32>
    %cst_70 = arith.constant 5.000000e-01 : f32
    %171 = vector.broadcast %cst_70 : f32 to vector<16x128xf32>
    %172 = arith.addf %170, %171 : vector<16x128xf32>
    %173 = arith.mulf %162, %133 : vector<16x128xf32>
    %174 = arith.mulf %154, %164 : vector<16x128xf32>
    %175 = arith.addf %173, %174 : vector<16x128xf32>
    %176 = math.tanh %175 : vector<16x128xf32>
    %177 = arith.mulf %172, %176 : vector<16x128xf32>
    %178 = arith.truncf %177 : vector<16x128xf32> to vector<16x128xbf16>
    %179 = arith.index_cast %c3_i32 : i32 to index
    %c0_71 = arith.constant 0 : index
    %c0_72 = arith.constant 0 : index
    %180 = vector.load %arg6[%179, %c0_71, %c0_72] : memref<8x16x128xbf16, #tpu.memory_space<vmem>>, vector<1x16x128xbf16>
    %181 = vector.shape_cast %180 : vector<1x16x128xbf16> to vector<16x128xbf16>
    %182 = vector.shape_cast %178 : vector<16x128xbf16> to vector<1x16x128xbf16>
    tpu.vector_store %arg6[%179, %c0_71, %c0_72], %182 {strides = array<i32>} : memref<8x16x128xbf16, #tpu.memory_space<vmem>>, vector<1x16x128xbf16>,
    %c4_i32 = arith.constant 4 : i32
    %183 = arith.index_cast %c4_i32 : i32 to index
    %c0_73 = arith.constant 0 : index
    %c0_74 = arith.constant 0 : index
    %184 = vector.load %arg7[%183, %c0_73, %c0_74] : memref<8x16x512xf32, #tpu.memory_space<vmem>>, vector<1x16x512xf32>
    %185 = vector.shape_cast %184 : vector<1x16x512xf32> to vector<16x512xf32>
    %186 = arith.truncf %177 : vector<16x128xf32> to vector<16x128xbf16>
    %cst_75 = arith.constant dense<0.000000e+00> : vector<16x512xf32>
    %187 = tpu.matmul %186, %12, %cst_75 {dimension_numbers = #tpu.dot_dimension_numbers<[1], [0], [0], [1], [0, 0, 1, 1], [], []>} : vector<16x128xbf16>, vector<128x512xbf16>, vector<16x512xf32> -> vector<16x512xf32>
    %188 = arith.addf %185, %187 : vector<16x512xf32>
    %189 = vector.extract_strided_slice %188 {offsets = [0, 0], sizes = [16, 128], strides = [1, 1]} : vector<16x512xf32> to vector<16x128xf32>
    %cst_76 = arith.constant 5.000000e-01 : f32
    %190 = vector.broadcast %cst_76 : f32 to vector<16x128xf32>
    %191 = arith.mulf %190, %189 : vector<16x128xf32>
    %192 = math.tanh %191 : vector<16x128xf32>
    %cst_77 = arith.constant 5.000000e-01 : f32
    %193 = vector.broadcast %cst_77 : f32 to vector<16x128xf32>
    %194 = arith.mulf %193, %192 : vector<16x128xf32>
    %cst_78 = arith.constant 5.000000e-01 : f32
    %195 = vector.broadcast %cst_78 : f32 to vector<16x128xf32>
    %196 = arith.addf %194, %195 : vector<16x128xf32>
    %197 = vector.extract_strided_slice %188 {offsets = [0, 128], sizes = [16, 128], strides = [1, 1]} : vector<16x512xf32> to vector<16x128xf32>
    %cst_79 = arith.constant 5.000000e-01 : f32
    %198 = vector.broadcast %cst_79 : f32 to vector<16x128xf32>
    %199 = arith.mulf %198, %197 : vector<16x128xf32>
    %200 = math.tanh %199 : vector<16x128xf32>
    %cst_80 = arith.constant 5.000000e-01 : f32
    %201 = vector.broadcast %cst_80 : f32 to vector<16x128xf32>
    %202 = arith.mulf %201, %200 : vector<16x128xf32>
    %cst_81 = arith.constant 5.000000e-01 : f32
    %203 = vector.broadcast %cst_81 : f32 to vector<16x128xf32>
    %204 = arith.addf %202, %203 : vector<16x128xf32>
    %205 = vector.extract_strided_slice %188 {offsets = [0, 256], sizes = [16, 128], strides = [1, 1]} : vector<16x512xf32> to vector<16x128xf32>
    %206 = math.tanh %205 : vector<16x128xf32>
    %207 = vector.extract_strided_slice %188 {offsets = [0, 384], sizes = [16, 128], strides = [1, 1]} : vector<16x512xf32> to vector<16x128xf32>
    %cst_82 = arith.constant 5.000000e-01 : f32
    %208 = vector.broadcast %cst_82 : f32 to vector<16x128xf32>
    %209 = arith.mulf %208, %207 : vector<16x128xf32>
    %210 = math.tanh %209 : vector<16x128xf32>
    %cst_83 = arith.constant 5.000000e-01 : f32
    %211 = vector.broadcast %cst_83 : f32 to vector<16x128xf32>
    %212 = arith.mulf %211, %210 : vector<16x128xf32>
    %cst_84 = arith.constant 5.000000e-01 : f32
    %213 = vector.broadcast %cst_84 : f32 to vector<16x128xf32>
    %214 = arith.addf %212, %213 : vector<16x128xf32>
    %215 = arith.mulf %204, %175 : vector<16x128xf32>
    %216 = arith.mulf %196, %206 : vector<16x128xf32>
    %217 = arith.addf %215, %216 : vector<16x128xf32>
    %218 = math.tanh %217 : vector<16x128xf32>
    %219 = arith.mulf %214, %218 : vector<16x128xf32>
    %220 = arith.truncf %219 : vector<16x128xf32> to vector<16x128xbf16>
    %221 = arith.index_cast %c4_i32 : i32 to index
    %c0_85 = arith.constant 0 : index
    %c0_86 = arith.constant 0 : index
    %222 = vector.load %arg6[%221, %c0_85, %c0_86] : memref<8x16x128xbf16, #tpu.memory_space<vmem>>, vector<1x16x128xbf16>
    %223 = vector.shape_cast %222 : vector<1x16x128xbf16> to vector<16x128xbf16>
    %224 = vector.shape_cast %220 : vector<16x128xbf16> to vector<1x16x128xbf16>
    tpu.vector_store %arg6[%221, %c0_85, %c0_86], %224 {strides = array<i32>} : memref<8x16x128xbf16, #tpu.memory_space<vmem>>, vector<1x16x128xbf16>,
    %c5_i32 = arith.constant 5 : i32
    %225 = arith.index_cast %c5_i32 : i32 to index
    %c0_87 = arith.constant 0 : index
    %c0_88 = arith.constant 0 : index
    %226 = vector.load %arg7[%225, %c0_87, %c0_88] : memref<8x16x512xf32, #tpu.memory_space<vmem>>, vector<1x16x512xf32>
    %227 = vector.shape_cast %226 : vector<1x16x512xf32> to vector<16x512xf32>
    %228 = arith.truncf %219 : vector<16x128xf32> to vector<16x128xbf16>
    %cst_89 = arith.constant dense<0.000000e+00> : vector<16x512xf32>
    %229 = tpu.matmul %228, %12, %cst_89 {dimension_numbers = #tpu.dot_dimension_numbers<[1], [0], [0], [1], [0, 0, 1, 1], [], []>} : vector<16x128xbf16>, vector<128x512xbf16>, vector<16x512xf32> -> vector<16x512xf32>
    %230 = arith.addf %227, %229 : vector<16x512xf32>
    %231 = vector.extract_strided_slice %230 {offsets = [0, 0], sizes = [16, 128], strides = [1, 1]} : vector<16x512xf32> to vector<16x128xf32>
    %cst_90 = arith.constant 5.000000e-01 : f32
    %232 = vector.broadcast %cst_90 : f32 to vector<16x128xf32>
    %233 = arith.mulf %232, %231 : vector<16x128xf32>
    %234 = math.tanh %233 : vector<16x128xf32>
    %cst_91 = arith.constant 5.000000e-01 : f32
    %235 = vector.broadcast %cst_91 : f32 to vector<16x128xf32>
    %236 = arith.mulf %235, %234 : vector<16x128xf32>
    %cst_92 = arith.constant 5.000000e-01 : f32
    %237 = vector.broadcast %cst_92 : f32 to vector<16x128xf32>
    %238 = arith.addf %236, %237 : vector<16x128xf32>
    %239 = vector.extract_strided_slice %230 {offsets = [0, 128], sizes = [16, 128], strides = [1, 1]} : vector<16x512xf32> to vector<16x128xf32>
    %cst_93 = arith.constant 5.000000e-01 : f32
    %240 = vector.broadcast %cst_93 : f32 to vector<16x128xf32>
    %241 = arith.mulf %240, %239 : vector<16x128xf32>
    %242 = math.tanh %241 : vector<16x128xf32>
    %cst_94 = arith.constant 5.000000e-01 : f32
    %243 = vector.broadcast %cst_94 : f32 to vector<16x128xf32>
    %244 = arith.mulf %243, %242 : vector<16x128xf32>
    %cst_95 = arith.constant 5.000000e-01 : f32
    %245 = vector.broadcast %cst_95 : f32 to vector<16x128xf32>
    %246 = arith.addf %244, %245 : vector<16x128xf32>
    %247 = vector.extract_strided_slice %230 {offsets = [0, 256], sizes = [16, 128], strides = [1, 1]} : vector<16x512xf32> to vector<16x128xf32>
    %248 = math.tanh %247 : vector<16x128xf32>
    %249 = vector.extract_strided_slice %230 {offsets = [0, 384], sizes = [16, 128], strides = [1, 1]} : vector<16x512xf32> to vector<16x128xf32>
    %cst_96 = arith.constant 5.000000e-01 : f32
    %250 = vector.broadcast %cst_96 : f32 to vector<16x128xf32>
    %251 = arith.mulf %250, %249 : vector<16x128xf32>
    %252 = math.tanh %251 : vector<16x128xf32>
    %cst_97 = arith.constant 5.000000e-01 : f32
    %253 = vector.broadcast %cst_97 : f32 to vector<16x128xf32>
    %254 = arith.mulf %253, %252 : vector<16x128xf32>
    %cst_98 = arith.constant 5.000000e-01 : f32
    %255 = vector.broadcast %cst_98 : f32 to vector<16x128xf32>
    %256 = arith.addf %254, %255 : vector<16x128xf32>
    %257 = arith.mulf %246, %217 : vector<16x128xf32>
    %258 = arith.mulf %238, %248 : vector<16x128xf32>
    %259 = arith.addf %257, %258 : vector<16x128xf32>
    %260 = math.tanh %259 : vector<16x128xf32>
    %261 = arith.mulf %256, %260 : vector<16x128xf32>
    %262 = arith.truncf %261 : vector<16x128xf32> to vector<16x128xbf16>
    %263 = arith.index_cast %c5_i32 : i32 to index
    %c0_99 = arith.constant 0 : index
    %c0_100 = arith.constant 0 : index
    %264 = vector.load %arg6[%263, %c0_99, %c0_100] : memref<8x16x128xbf16, #tpu.memory_space<vmem>>, vector<1x16x128xbf16>
    %265 = vector.shape_cast %264 : vector<1x16x128xbf16> to vector<16x128xbf16>
    %266 = vector.shape_cast %262 : vector<16x128xbf16> to vector<1x16x128xbf16>
    tpu.vector_store %arg6[%263, %c0_99, %c0_100], %266 {strides = array<i32>} : memref<8x16x128xbf16, #tpu.memory_space<vmem>>, vector<1x16x128xbf16>,
    %c6_i32 = arith.constant 6 : i32
    %267 = arith.index_cast %c6_i32 : i32 to index
    %c0_101 = arith.constant 0 : index
    %c0_102 = arith.constant 0 : index
    %268 = vector.load %arg7[%267, %c0_101, %c0_102] : memref<8x16x512xf32, #tpu.memory_space<vmem>>, vector<1x16x512xf32>
    %269 = vector.shape_cast %268 : vector<1x16x512xf32> to vector<16x512xf32>
    %270 = arith.truncf %261 : vector<16x128xf32> to vector<16x128xbf16>
    %cst_103 = arith.constant dense<0.000000e+00> : vector<16x512xf32>
    %271 = tpu.matmul %270, %12, %cst_103 {dimension_numbers = #tpu.dot_dimension_numbers<[1], [0], [0], [1], [0, 0, 1, 1], [], []>} : vector<16x128xbf16>, vector<128x512xbf16>, vector<16x512xf32> -> vector<16x512xf32>
    %272 = arith.addf %269, %271 : vector<16x512xf32>
    %273 = vector.extract_strided_slice %272 {offsets = [0, 0], sizes = [16, 128], strides = [1, 1]} : vector<16x512xf32> to vector<16x128xf32>
    %cst_104 = arith.constant 5.000000e-01 : f32
    %274 = vector.broadcast %cst_104 : f32 to vector<16x128xf32>
    %275 = arith.mulf %274, %273 : vector<16x128xf32>
    %276 = math.tanh %275 : vector<16x128xf32>
    %cst_105 = arith.constant 5.000000e-01 : f32
    %277 = vector.broadcast %cst_105 : f32 to vector<16x128xf32>
    %278 = arith.mulf %277, %276 : vector<16x128xf32>
    %cst_106 = arith.constant 5.000000e-01 : f32
    %279 = vector.broadcast %cst_106 : f32 to vector<16x128xf32>
    %280 = arith.addf %278, %279 : vector<16x128xf32>
    %281 = vector.extract_strided_slice %272 {offsets = [0, 128], sizes = [16, 128], strides = [1, 1]} : vector<16x512xf32> to vector<16x128xf32>
    %cst_107 = arith.constant 5.000000e-01 : f32
    %282 = vector.broadcast %cst_107 : f32 to vector<16x128xf32>
    %283 = arith.mulf %282, %281 : vector<16x128xf32>
    %284 = math.tanh %283 : vector<16x128xf32>
    %cst_108 = arith.constant 5.000000e-01 : f32
    %285 = vector.broadcast %cst_108 : f32 to vector<16x128xf32>
    %286 = arith.mulf %285, %284 : vector<16x128xf32>
    %cst_109 = arith.constant 5.000000e-01 : f32
    %287 = vector.broadcast %cst_109 : f32 to vector<16x128xf32>
    %288 = arith.addf %286, %287 : vector<16x128xf32>
    %289 = vector.extract_strided_slice %272 {offsets = [0, 256], sizes = [16, 128], strides = [1, 1]} : vector<16x512xf32> to vector<16x128xf32>
    %290 = math.tanh %289 : vector<16x128xf32>
    %291 = vector.extract_strided_slice %272 {offsets = [0, 384], sizes = [16, 128], strides = [1, 1]} : vector<16x512xf32> to vector<16x128xf32>
    %cst_110 = arith.constant 5.000000e-01 : f32
    %292 = vector.broadcast %cst_110 : f32 to vector<16x128xf32>
    %293 = arith.mulf %292, %291 : vector<16x128xf32>
    %294 = math.tanh %293 : vector<16x128xf32>
    %cst_111 = arith.constant 5.000000e-01 : f32
    %295 = vector.broadcast %cst_111 : f32 to vector<16x128xf32>
    %296 = arith.mulf %295, %294 : vector<16x128xf32>
    %cst_112 = arith.constant 5.000000e-01 : f32
    %297 = vector.broadcast %cst_112 : f32 to vector<16x128xf32>
    %298 = arith.addf %296, %297 : vector<16x128xf32>
    %299 = arith.mulf %288, %259 : vector<16x128xf32>
    %300 = arith.mulf %280, %290 : vector<16x128xf32>
    %301 = arith.addf %299, %300 : vector<16x128xf32>
    %302 = math.tanh %301 : vector<16x128xf32>
    %303 = arith.mulf %298, %302 : vector<16x128xf32>
    %304 = arith.truncf %303 : vector<16x128xf32> to vector<16x128xbf16>
    %305 = arith.index_cast %c6_i32 : i32 to index
    %c0_113 = arith.constant 0 : index
    %c0_114 = arith.constant 0 : index
    %306 = vector.load %arg6[%305, %c0_113, %c0_114] : memref<8x16x128xbf16, #tpu.memory_space<vmem>>, vector<1x16x128xbf16>
    %307 = vector.shape_cast %306 : vector<1x16x128xbf16> to vector<16x128xbf16>
    %308 = vector.shape_cast %304 : vector<16x128xbf16> to vector<1x16x128xbf16>
    tpu.vector_store %arg6[%305, %c0_113, %c0_114], %308 {strides = array<i32>} : memref<8x16x128xbf16, #tpu.memory_space<vmem>>, vector<1x16x128xbf16>,
    %c7_i32 = arith.constant 7 : i32
    %309 = arith.index_cast %c7_i32 : i32 to index
    %c0_115 = arith.constant 0 : index
    %c0_116 = arith.constant 0 : index
    %310 = vector.load %arg7[%309, %c0_115, %c0_116] : memref<8x16x512xf32, #tpu.memory_space<vmem>>, vector<1x16x512xf32>
    %311 = vector.shape_cast %310 : vector<1x16x512xf32> to vector<16x512xf32>
    %312 = arith.truncf %303 : vector<16x128xf32> to vector<16x128xbf16>
    %cst_117 = arith.constant dense<0.000000e+00> : vector<16x512xf32>
    %313 = tpu.matmul %312, %12, %cst_117 {dimension_numbers = #tpu.dot_dimension_numbers<[1], [0], [0], [1], [0, 0, 1, 1], [], []>} : vector<16x128xbf16>, vector<128x512xbf16>, vector<16x512xf32> -> vector<16x512xf32>
    %314 = arith.addf %311, %313 : vector<16x512xf32>
    %315 = vector.extract_strided_slice %314 {offsets = [0, 0], sizes = [16, 128], strides = [1, 1]} : vector<16x512xf32> to vector<16x128xf32>
    %cst_118 = arith.constant 5.000000e-01 : f32
    %316 = vector.broadcast %cst_118 : f32 to vector<16x128xf32>
    %317 = arith.mulf %316, %315 : vector<16x128xf32>
    %318 = math.tanh %317 : vector<16x128xf32>
    %cst_119 = arith.constant 5.000000e-01 : f32
    %319 = vector.broadcast %cst_119 : f32 to vector<16x128xf32>
    %320 = arith.mulf %319, %318 : vector<16x128xf32>
    %cst_120 = arith.constant 5.000000e-01 : f32
    %321 = vector.broadcast %cst_120 : f32 to vector<16x128xf32>
    %322 = arith.addf %320, %321 : vector<16x128xf32>
    %323 = vector.extract_strided_slice %314 {offsets = [0, 128], sizes = [16, 128], strides = [1, 1]} : vector<16x512xf32> to vector<16x128xf32>
    %cst_121 = arith.constant 5.000000e-01 : f32
    %324 = vector.broadcast %cst_121 : f32 to vector<16x128xf32>
    %325 = arith.mulf %324, %323 : vector<16x128xf32>
    %326 = math.tanh %325 : vector<16x128xf32>
    %cst_122 = arith.constant 5.000000e-01 : f32
    %327 = vector.broadcast %cst_122 : f32 to vector<16x128xf32>
    %328 = arith.mulf %327, %326 : vector<16x128xf32>
    %cst_123 = arith.constant 5.000000e-01 : f32
    %329 = vector.broadcast %cst_123 : f32 to vector<16x128xf32>
    %330 = arith.addf %328, %329 : vector<16x128xf32>
    %331 = vector.extract_strided_slice %314 {offsets = [0, 256], sizes = [16, 128], strides = [1, 1]} : vector<16x512xf32> to vector<16x128xf32>
    %332 = math.tanh %331 : vector<16x128xf32>
    %333 = vector.extract_strided_slice %314 {offsets = [0, 384], sizes = [16, 128], strides = [1, 1]} : vector<16x512xf32> to vector<16x128xf32>
    %cst_124 = arith.constant 5.000000e-01 : f32
    %334 = vector.broadcast %cst_124 : f32 to vector<16x128xf32>
    %335 = arith.mulf %334, %333 : vector<16x128xf32>
    %336 = math.tanh %335 : vector<16x128xf32>
    %cst_125 = arith.constant 5.000000e-01 : f32
    %337 = vector.broadcast %cst_125 : f32 to vector<16x128xf32>
    %338 = arith.mulf %337, %336 : vector<16x128xf32>
    %cst_126 = arith.constant 5.000000e-01 : f32
    %339 = vector.broadcast %cst_126 : f32 to vector<16x128xf32>
    %340 = arith.addf %338, %339 : vector<16x128xf32>
    %341 = arith.mulf %330, %301 : vector<16x128xf32>
    %342 = arith.mulf %322, %332 : vector<16x128xf32>
    %343 = arith.addf %341, %342 : vector<16x128xf32>
    %344 = math.tanh %343 : vector<16x128xf32>
    %345 = arith.mulf %340, %344 : vector<16x128xf32>
    %346 = arith.truncf %345 : vector<16x128xf32> to vector<16x128xbf16>
    %347 = arith.index_cast %c7_i32 : i32 to index
    %c0_127 = arith.constant 0 : index
    %c0_128 = arith.constant 0 : index
    %348 = vector.load %arg6[%347, %c0_127, %c0_128] : memref<8x16x128xbf16, #tpu.memory_space<vmem>>, vector<1x16x128xbf16>
    %349 = vector.shape_cast %348 : vector<1x16x128xbf16> to vector<16x128xbf16>
    %350 = vector.shape_cast %346 : vector<16x128xbf16> to vector<1x16x128xbf16>
    tpu.vector_store %arg6[%347, %c0_127, %c0_128], %350 {strides = array<i32>} : memref<8x16x128xbf16, #tpu.memory_space<vmem>>, vector<1x16x128xbf16>,
    %c8_i32 = arith.constant 8 : i32
    %c0_129 = arith.constant 0 : index
    %c0_130 = arith.constant 0 : index
    %351 = vector.load %arg8[%c0_129, %c0_130] : memref<16x128xf32, #tpu.memory_space<vmem>>, vector<16x128xf32>
    tpu.vector_store %arg8[%c0_129, %c0_130], %345 {strides = array<i32>} : memref<16x128xf32, #tpu.memory_space<vmem>>, vector<16x128xf32>,
    %c0_131 = arith.constant 0 : index
    %c0_132 = arith.constant 0 : index
    %352 = vector.load %arg9[%c0_131, %c0_132] : memref<16x128xf32, #tpu.memory_space<vmem>>, vector<16x128xf32>
    tpu.vector_store %arg9[%c0_131, %c0_132], %343 {strides = array<i32>} : memref<16x128xf32, #tpu.memory_space<vmem>>, vector<16x128xf32>,
    return
  }
  func.func @transform_0(%arg0: i32, %arg1: i32) -> (i32, i32, i32) {
    %c0_i32 = arith.constant 0 : i32
    %c0_i32_0 = arith.constant 0 : i32
    return %arg1, %arg0, %c0_i32 : i32, i32, i32
  }
  func.func @transform_1(%arg0: i32, %arg1: i32) -> (i32, i32) {
    %c0_i32 = arith.constant 0 : i32
    %c0_i32_0 = arith.constant 0 : i32
    %c0_i32_1 = arith.constant 0 : i32
    return %c0_i32, %c0_i32_0 : i32, i32
  }
  func.func @transform_2(%arg0: i32, %arg1: i32) -> (i32, i32) {
    %c0_i32 = arith.constant 0 : i32
    %c0_i32_0 = arith.constant 0 : i32
    %c0_i32_1 = arith.constant 0 : i32
    return %c0_i32, %c0_i32_0 : i32, i32
  }
  func.func @transform_3(%arg0: i32, %arg1: i32) -> (i32, i32) {
    %c0_i32 = arith.constant 0 : i32
    %c0_i32_0 = arith.constant 0 : i32
    %c0_i32_1 = arith.constant 0 : i32
    return %c0_i32, %c0_i32_0 : i32, i32
  }
  func.func @transform_4(%arg0: i32, %arg1: i32) -> (i32, i32, i32) {
    %c0_i32 = arith.constant 0 : i32
    %c0_i32_0 = arith.constant 0 : i32
    return %arg1, %arg0, %c0_i32 : i32, i32, i32
  }
}

module attributes {stable_mosaic.version = 11 : i64} {
  func.func @_lstm_last_fc_kernel(%arg0: i32, %arg1: i32, %arg2: memref<8x16x128xbf16, #tpu.memory_space<vmem>>, %arg3: memref<128x512xbf16, #tpu.memory_space<vmem>>, %arg4: memref<1x512xf32, #tpu.memory_space<vmem>>, %arg5: memref<128x512xbf16, #tpu.memory_space<vmem>>, %arg6: memref<128x128xbf16, #tpu.memory_space<vmem>>, %arg7: memref<1x128xf32, #tpu.memory_space<vmem>>, %arg8: memref<16x128xf32, #tpu.memory_space<vmem>>, %arg9: memref<8x16x512xf32, #tpu.memory_space<vmem>>, %arg10: memref<16x128xf32, #tpu.memory_space<vmem>>, %arg11: memref<16x128xf32, #tpu.memory_space<vmem>>) attributes {dimension_semantics = [#tpu.dimension_semantics<parallel>, #tpu.dimension_semantics<arbitrary>], iteration_bounds = array<i64: 1, 1>, scalar_prefetch = 0 : i64, scratch_operands = 3 : i64, tpu.core_type = #tpu.core_type<tc>, window_params = [{transform_indices = @transform_0, window_bounds = array<i64: 8, 16, 128>}, {pipeline_mode = #tpu.pipeline_mode<synchronous>, transform_indices = @transform_1, window_bounds = array<i64: 128, 512>}, {pipeline_mode = #tpu.pipeline_mode<synchronous>, transform_indices = @transform_2, window_bounds = array<i64: 1, 512>}, {pipeline_mode = #tpu.pipeline_mode<synchronous>, transform_indices = @transform_3, window_bounds = array<i64: 128, 512>}, {pipeline_mode = #tpu.pipeline_mode<synchronous>, transform_indices = @transform_4, window_bounds = array<i64: 128, 128>}, {pipeline_mode = #tpu.pipeline_mode<synchronous>, transform_indices = @transform_5, window_bounds = array<i64: 1, 128>}, {transform_indices = @transform_6, window_bounds = array<i64: 16, 128>}]} {
    %c0_i32 = arith.constant 0 : i32
    %0 = arith.cmpi eq, %arg1, %c0_i32 : i32
    %1 = arith.extui %0 : i1 to i32
    %c0_i32_0 = arith.constant 0 : i32
    %2 = arith.cmpi ne, %1, %c0_i32_0 : i32
    scf.if %2 {
      %cst_119 = arith.constant 0.000000e+00 : f32
      %316 = vector.broadcast %cst_119 : f32 to vector<16x128xf32>
      %c0_120 = arith.constant 0 : index
      %c0_121 = arith.constant 0 : index
      %317 = vector.load %arg10[%c0_120, %c0_121] : memref<16x128xf32, #tpu.memory_space<vmem>>, vector<16x128xf32>
      tpu.vector_store %arg10[%c0_120, %c0_121], %316 {strides = array<i32>} : memref<16x128xf32, #tpu.memory_space<vmem>>, vector<16x128xf32>,
      %cst_122 = arith.constant 0.000000e+00 : f32
      %318 = vector.broadcast %cst_122 : f32 to vector<16x128xf32>
      %c0_123 = arith.constant 0 : index
      %c0_124 = arith.constant 0 : index
      %319 = vector.load %arg11[%c0_123, %c0_124] : memref<16x128xf32, #tpu.memory_space<vmem>>, vector<16x128xf32>
      tpu.vector_store %arg11[%c0_123, %c0_124], %318 {strides = array<i32>} : memref<16x128xf32, #tpu.memory_space<vmem>>, vector<16x128xf32>,
    } else {
    }
    %c0 = arith.constant 0 : index
    %c0_1 = arith.constant 0 : index
    %c0_2 = arith.constant 0 : index
    %3 = vector.load %arg2[%c0, %c0_1, %c0_2] : memref<8x16x128xbf16, #tpu.memory_space<vmem>>, vector<8x16x128xbf16>
    %4 = vector.shape_cast %3 : vector<8x16x128xbf16> to vector<128x128xbf16>
    %c0_3 = arith.constant 0 : index
    %c0_4 = arith.constant 0 : index
    %5 = vector.load %arg3[%c0_3, %c0_4] : memref<128x512xbf16, #tpu.memory_space<vmem>>, vector<128x512xbf16>
    %cst = arith.constant dense<0.000000e+00> : vector<128x512xf32>
    %6 = tpu.matmul %4, %5, %cst {dimension_numbers = #tpu.dot_dimension_numbers<[1], [0], [0], [1], [0, 0, 1, 1], [], []>} : vector<128x128xbf16>, vector<128x512xbf16>, vector<128x512xf32> -> vector<128x512xf32>
    %c0_5 = arith.constant 0 : index
    %c0_6 = arith.constant 0 : index
    %7 = vector.load %arg4[%c0_5, %c0_6] : memref<1x512xf32, #tpu.memory_space<vmem>>, vector<1x512xf32>
    %8 = vector.broadcast %7 : vector<1x512xf32> to vector<128x512xf32>
    %9 = arith.addf %6, %8 : vector<128x512xf32>
    %10 = vector.shape_cast %9 : vector<128x512xf32> to vector<8x16x512xf32>
    %c0_7 = arith.constant 0 : index
    %c0_8 = arith.constant 0 : index
    %c0_9 = arith.constant 0 : index
    %11 = vector.load %arg9[%c0_7, %c0_8, %c0_9] : memref<8x16x512xf32, #tpu.memory_space<vmem>>, vector<8x16x512xf32>
    tpu.vector_store %arg9[%c0_7, %c0_8, %c0_9], %10 {strides = array<i32>} : memref<8x16x512xf32, #tpu.memory_space<vmem>>, vector<8x16x512xf32>,
    %c0_10 = arith.constant 0 : index
    %c0_11 = arith.constant 0 : index
    %12 = vector.load %arg5[%c0_10, %c0_11] : memref<128x512xbf16, #tpu.memory_space<vmem>>, vector<128x512xbf16>
    %c0_12 = arith.constant 0 : index
    %c0_13 = arith.constant 0 : index
    %13 = vector.load %arg10[%c0_12, %c0_13] : memref<16x128xf32, #tpu.memory_space<vmem>>, vector<16x128xf32>
    %c0_14 = arith.constant 0 : index
    %c0_15 = arith.constant 0 : index
    %14 = vector.load %arg11[%c0_14, %c0_15] : memref<16x128xf32, #tpu.memory_space<vmem>>, vector<16x128xf32>
    %c0_i32_16 = arith.constant 0 : i32
    %15 = arith.index_cast %c0_i32_16 : i32 to index
    %c0_17 = arith.constant 0 : index
    %c0_18 = arith.constant 0 : index
    %16 = vector.load %arg9[%15, %c0_17, %c0_18] : memref<8x16x512xf32, #tpu.memory_space<vmem>>, vector<1x16x512xf32>
    %17 = vector.shape_cast %16 : vector<1x16x512xf32> to vector<16x512xf32>
    %18 = arith.truncf %13 : vector<16x128xf32> to vector<16x128xbf16>
    %cst_19 = arith.constant dense<0.000000e+00> : vector<16x512xf32>
    %19 = tpu.matmul %18, %12, %cst_19 {dimension_numbers = #tpu.dot_dimension_numbers<[1], [0], [0], [1], [0, 0, 1, 1], [], []>} : vector<16x128xbf16>, vector<128x512xbf16>, vector<16x512xf32> -> vector<16x512xf32>
    %20 = arith.addf %17, %19 : vector<16x512xf32>
    %21 = vector.extract_strided_slice %20 {offsets = [0, 0], sizes = [16, 128], strides = [1, 1]} : vector<16x512xf32> to vector<16x128xf32>
    %cst_20 = arith.constant 5.000000e-01 : f32
    %22 = vector.broadcast %cst_20 : f32 to vector<16x128xf32>
    %23 = arith.mulf %22, %21 : vector<16x128xf32>
    %24 = math.tanh %23 : vector<16x128xf32>
    %cst_21 = arith.constant 5.000000e-01 : f32
    %25 = vector.broadcast %cst_21 : f32 to vector<16x128xf32>
    %26 = arith.mulf %25, %24 : vector<16x128xf32>
    %cst_22 = arith.constant 5.000000e-01 : f32
    %27 = vector.broadcast %cst_22 : f32 to vector<16x128xf32>
    %28 = arith.addf %26, %27 : vector<16x128xf32>
    %29 = vector.extract_strided_slice %20 {offsets = [0, 128], sizes = [16, 128], strides = [1, 1]} : vector<16x512xf32> to vector<16x128xf32>
    %cst_23 = arith.constant 5.000000e-01 : f32
    %30 = vector.broadcast %cst_23 : f32 to vector<16x128xf32>
    %31 = arith.mulf %30, %29 : vector<16x128xf32>
    %32 = math.tanh %31 : vector<16x128xf32>
    %cst_24 = arith.constant 5.000000e-01 : f32
    %33 = vector.broadcast %cst_24 : f32 to vector<16x128xf32>
    %34 = arith.mulf %33, %32 : vector<16x128xf32>
    %cst_25 = arith.constant 5.000000e-01 : f32
    %35 = vector.broadcast %cst_25 : f32 to vector<16x128xf32>
    %36 = arith.addf %34, %35 : vector<16x128xf32>
    %37 = vector.extract_strided_slice %20 {offsets = [0, 256], sizes = [16, 128], strides = [1, 1]} : vector<16x512xf32> to vector<16x128xf32>
    %38 = math.tanh %37 : vector<16x128xf32>
    %39 = vector.extract_strided_slice %20 {offsets = [0, 384], sizes = [16, 128], strides = [1, 1]} : vector<16x512xf32> to vector<16x128xf32>
    %cst_26 = arith.constant 5.000000e-01 : f32
    %40 = vector.broadcast %cst_26 : f32 to vector<16x128xf32>
    %41 = arith.mulf %40, %39 : vector<16x128xf32>
    %42 = math.tanh %41 : vector<16x128xf32>
    %cst_27 = arith.constant 5.000000e-01 : f32
    %43 = vector.broadcast %cst_27 : f32 to vector<16x128xf32>
    %44 = arith.mulf %43, %42 : vector<16x128xf32>
    %cst_28 = arith.constant 5.000000e-01 : f32
    %45 = vector.broadcast %cst_28 : f32 to vector<16x128xf32>
    %46 = arith.addf %44, %45 : vector<16x128xf32>
    %47 = arith.mulf %36, %14 : vector<16x128xf32>
    %48 = arith.mulf %28, %38 : vector<16x128xf32>
    %49 = arith.addf %47, %48 : vector<16x128xf32>
    %50 = math.tanh %49 : vector<16x128xf32>
    %51 = arith.mulf %46, %50 : vector<16x128xf32>
    %c1_i32 = arith.constant 1 : i32
    %52 = arith.index_cast %c1_i32 : i32 to index
    %c0_29 = arith.constant 0 : index
    %c0_30 = arith.constant 0 : index
    %53 = vector.load %arg9[%52, %c0_29, %c0_30] : memref<8x16x512xf32, #tpu.memory_space<vmem>>, vector<1x16x512xf32>
    %54 = vector.shape_cast %53 : vector<1x16x512xf32> to vector<16x512xf32>
    %55 = arith.truncf %51 : vector<16x128xf32> to vector<16x128xbf16>
    %cst_31 = arith.constant dense<0.000000e+00> : vector<16x512xf32>
    %56 = tpu.matmul %55, %12, %cst_31 {dimension_numbers = #tpu.dot_dimension_numbers<[1], [0], [0], [1], [0, 0, 1, 1], [], []>} : vector<16x128xbf16>, vector<128x512xbf16>, vector<16x512xf32> -> vector<16x512xf32>
    %57 = arith.addf %54, %56 : vector<16x512xf32>
    %58 = vector.extract_strided_slice %57 {offsets = [0, 0], sizes = [16, 128], strides = [1, 1]} : vector<16x512xf32> to vector<16x128xf32>
    %cst_32 = arith.constant 5.000000e-01 : f32
    %59 = vector.broadcast %cst_32 : f32 to vector<16x128xf32>
    %60 = arith.mulf %59, %58 : vector<16x128xf32>
    %61 = math.tanh %60 : vector<16x128xf32>
    %cst_33 = arith.constant 5.000000e-01 : f32
    %62 = vector.broadcast %cst_33 : f32 to vector<16x128xf32>
    %63 = arith.mulf %62, %61 : vector<16x128xf32>
    %cst_34 = arith.constant 5.000000e-01 : f32
    %64 = vector.broadcast %cst_34 : f32 to vector<16x128xf32>
    %65 = arith.addf %63, %64 : vector<16x128xf32>
    %66 = vector.extract_strided_slice %57 {offsets = [0, 128], sizes = [16, 128], strides = [1, 1]} : vector<16x512xf32> to vector<16x128xf32>
    %cst_35 = arith.constant 5.000000e-01 : f32
    %67 = vector.broadcast %cst_35 : f32 to vector<16x128xf32>
    %68 = arith.mulf %67, %66 : vector<16x128xf32>
    %69 = math.tanh %68 : vector<16x128xf32>
    %cst_36 = arith.constant 5.000000e-01 : f32
    %70 = vector.broadcast %cst_36 : f32 to vector<16x128xf32>
    %71 = arith.mulf %70, %69 : vector<16x128xf32>
    %cst_37 = arith.constant 5.000000e-01 : f32
    %72 = vector.broadcast %cst_37 : f32 to vector<16x128xf32>
    %73 = arith.addf %71, %72 : vector<16x128xf32>
    %74 = vector.extract_strided_slice %57 {offsets = [0, 256], sizes = [16, 128], strides = [1, 1]} : vector<16x512xf32> to vector<16x128xf32>
    %75 = math.tanh %74 : vector<16x128xf32>
    %76 = vector.extract_strided_slice %57 {offsets = [0, 384], sizes = [16, 128], strides = [1, 1]} : vector<16x512xf32> to vector<16x128xf32>
    %cst_38 = arith.constant 5.000000e-01 : f32
    %77 = vector.broadcast %cst_38 : f32 to vector<16x128xf32>
    %78 = arith.mulf %77, %76 : vector<16x128xf32>
    %79 = math.tanh %78 : vector<16x128xf32>
    %cst_39 = arith.constant 5.000000e-01 : f32
    %80 = vector.broadcast %cst_39 : f32 to vector<16x128xf32>
    %81 = arith.mulf %80, %79 : vector<16x128xf32>
    %cst_40 = arith.constant 5.000000e-01 : f32
    %82 = vector.broadcast %cst_40 : f32 to vector<16x128xf32>
    %83 = arith.addf %81, %82 : vector<16x128xf32>
    %84 = arith.mulf %73, %49 : vector<16x128xf32>
    %85 = arith.mulf %65, %75 : vector<16x128xf32>
    %86 = arith.addf %84, %85 : vector<16x128xf32>
    %87 = math.tanh %86 : vector<16x128xf32>
    %88 = arith.mulf %83, %87 : vector<16x128xf32>
    %c2_i32 = arith.constant 2 : i32
    %89 = arith.index_cast %c2_i32 : i32 to index
    %c0_41 = arith.constant 0 : index
    %c0_42 = arith.constant 0 : index
    %90 = vector.load %arg9[%89, %c0_41, %c0_42] : memref<8x16x512xf32, #tpu.memory_space<vmem>>, vector<1x16x512xf32>
    %91 = vector.shape_cast %90 : vector<1x16x512xf32> to vector<16x512xf32>
    %92 = arith.truncf %88 : vector<16x128xf32> to vector<16x128xbf16>
    %cst_43 = arith.constant dense<0.000000e+00> : vector<16x512xf32>
    %93 = tpu.matmul %92, %12, %cst_43 {dimension_numbers = #tpu.dot_dimension_numbers<[1], [0], [0], [1], [0, 0, 1, 1], [], []>} : vector<16x128xbf16>, vector<128x512xbf16>, vector<16x512xf32> -> vector<16x512xf32>
    %94 = arith.addf %91, %93 : vector<16x512xf32>
    %95 = vector.extract_strided_slice %94 {offsets = [0, 0], sizes = [16, 128], strides = [1, 1]} : vector<16x512xf32> to vector<16x128xf32>
    %cst_44 = arith.constant 5.000000e-01 : f32
    %96 = vector.broadcast %cst_44 : f32 to vector<16x128xf32>
    %97 = arith.mulf %96, %95 : vector<16x128xf32>
    %98 = math.tanh %97 : vector<16x128xf32>
    %cst_45 = arith.constant 5.000000e-01 : f32
    %99 = vector.broadcast %cst_45 : f32 to vector<16x128xf32>
    %100 = arith.mulf %99, %98 : vector<16x128xf32>
    %cst_46 = arith.constant 5.000000e-01 : f32
    %101 = vector.broadcast %cst_46 : f32 to vector<16x128xf32>
    %102 = arith.addf %100, %101 : vector<16x128xf32>
    %103 = vector.extract_strided_slice %94 {offsets = [0, 128], sizes = [16, 128], strides = [1, 1]} : vector<16x512xf32> to vector<16x128xf32>
    %cst_47 = arith.constant 5.000000e-01 : f32
    %104 = vector.broadcast %cst_47 : f32 to vector<16x128xf32>
    %105 = arith.mulf %104, %103 : vector<16x128xf32>
    %106 = math.tanh %105 : vector<16x128xf32>
    %cst_48 = arith.constant 5.000000e-01 : f32
    %107 = vector.broadcast %cst_48 : f32 to vector<16x128xf32>
    %108 = arith.mulf %107, %106 : vector<16x128xf32>
    %cst_49 = arith.constant 5.000000e-01 : f32
    %109 = vector.broadcast %cst_49 : f32 to vector<16x128xf32>
    %110 = arith.addf %108, %109 : vector<16x128xf32>
    %111 = vector.extract_strided_slice %94 {offsets = [0, 256], sizes = [16, 128], strides = [1, 1]} : vector<16x512xf32> to vector<16x128xf32>
    %112 = math.tanh %111 : vector<16x128xf32>
    %113 = vector.extract_strided_slice %94 {offsets = [0, 384], sizes = [16, 128], strides = [1, 1]} : vector<16x512xf32> to vector<16x128xf32>
    %cst_50 = arith.constant 5.000000e-01 : f32
    %114 = vector.broadcast %cst_50 : f32 to vector<16x128xf32>
    %115 = arith.mulf %114, %113 : vector<16x128xf32>
    %116 = math.tanh %115 : vector<16x128xf32>
    %cst_51 = arith.constant 5.000000e-01 : f32
    %117 = vector.broadcast %cst_51 : f32 to vector<16x128xf32>
    %118 = arith.mulf %117, %116 : vector<16x128xf32>
    %cst_52 = arith.constant 5.000000e-01 : f32
    %119 = vector.broadcast %cst_52 : f32 to vector<16x128xf32>
    %120 = arith.addf %118, %119 : vector<16x128xf32>
    %121 = arith.mulf %110, %86 : vector<16x128xf32>
    %122 = arith.mulf %102, %112 : vector<16x128xf32>
    %123 = arith.addf %121, %122 : vector<16x128xf32>
    %124 = math.tanh %123 : vector<16x128xf32>
    %125 = arith.mulf %120, %124 : vector<16x128xf32>
    %c3_i32 = arith.constant 3 : i32
    %126 = arith.index_cast %c3_i32 : i32 to index
    %c0_53 = arith.constant 0 : index
    %c0_54 = arith.constant 0 : index
    %127 = vector.load %arg9[%126, %c0_53, %c0_54] : memref<8x16x512xf32, #tpu.memory_space<vmem>>, vector<1x16x512xf32>
    %128 = vector.shape_cast %127 : vector<1x16x512xf32> to vector<16x512xf32>
    %129 = arith.truncf %125 : vector<16x128xf32> to vector<16x128xbf16>
    %cst_55 = arith.constant dense<0.000000e+00> : vector<16x512xf32>
    %130 = tpu.matmul %129, %12, %cst_55 {dimension_numbers = #tpu.dot_dimension_numbers<[1], [0], [0], [1], [0, 0, 1, 1], [], []>} : vector<16x128xbf16>, vector<128x512xbf16>, vector<16x512xf32> -> vector<16x512xf32>
    %131 = arith.addf %128, %130 : vector<16x512xf32>
    %132 = vector.extract_strided_slice %131 {offsets = [0, 0], sizes = [16, 128], strides = [1, 1]} : vector<16x512xf32> to vector<16x128xf32>
    %cst_56 = arith.constant 5.000000e-01 : f32
    %133 = vector.broadcast %cst_56 : f32 to vector<16x128xf32>
    %134 = arith.mulf %133, %132 : vector<16x128xf32>
    %135 = math.tanh %134 : vector<16x128xf32>
    %cst_57 = arith.constant 5.000000e-01 : f32
    %136 = vector.broadcast %cst_57 : f32 to vector<16x128xf32>
    %137 = arith.mulf %136, %135 : vector<16x128xf32>
    %cst_58 = arith.constant 5.000000e-01 : f32
    %138 = vector.broadcast %cst_58 : f32 to vector<16x128xf32>
    %139 = arith.addf %137, %138 : vector<16x128xf32>
    %140 = vector.extract_strided_slice %131 {offsets = [0, 128], sizes = [16, 128], strides = [1, 1]} : vector<16x512xf32> to vector<16x128xf32>
    %cst_59 = arith.constant 5.000000e-01 : f32
    %141 = vector.broadcast %cst_59 : f32 to vector<16x128xf32>
    %142 = arith.mulf %141, %140 : vector<16x128xf32>
    %143 = math.tanh %142 : vector<16x128xf32>
    %cst_60 = arith.constant 5.000000e-01 : f32
    %144 = vector.broadcast %cst_60 : f32 to vector<16x128xf32>
    %145 = arith.mulf %144, %143 : vector<16x128xf32>
    %cst_61 = arith.constant 5.000000e-01 : f32
    %146 = vector.broadcast %cst_61 : f32 to vector<16x128xf32>
    %147 = arith.addf %145, %146 : vector<16x128xf32>
    %148 = vector.extract_strided_slice %131 {offsets = [0, 256], sizes = [16, 128], strides = [1, 1]} : vector<16x512xf32> to vector<16x128xf32>
    %149 = math.tanh %148 : vector<16x128xf32>
    %150 = vector.extract_strided_slice %131 {offsets = [0, 384], sizes = [16, 128], strides = [1, 1]} : vector<16x512xf32> to vector<16x128xf32>
    %cst_62 = arith.constant 5.000000e-01 : f32
    %151 = vector.broadcast %cst_62 : f32 to vector<16x128xf32>
    %152 = arith.mulf %151, %150 : vector<16x128xf32>
    %153 = math.tanh %152 : vector<16x128xf32>
    %cst_63 = arith.constant 5.000000e-01 : f32
    %154 = vector.broadcast %cst_63 : f32 to vector<16x128xf32>
    %155 = arith.mulf %154, %153 : vector<16x128xf32>
    %cst_64 = arith.constant 5.000000e-01 : f32
    %156 = vector.broadcast %cst_64 : f32 to vector<16x128xf32>
    %157 = arith.addf %155, %156 : vector<16x128xf32>
    %158 = arith.mulf %147, %123 : vector<16x128xf32>
    %159 = arith.mulf %139, %149 : vector<16x128xf32>
    %160 = arith.addf %158, %159 : vector<16x128xf32>
    %161 = math.tanh %160 : vector<16x128xf32>
    %162 = arith.mulf %157, %161 : vector<16x128xf32>
    %c4_i32 = arith.constant 4 : i32
    %163 = arith.index_cast %c4_i32 : i32 to index
    %c0_65 = arith.constant 0 : index
    %c0_66 = arith.constant 0 : index
    %164 = vector.load %arg9[%163, %c0_65, %c0_66] : memref<8x16x512xf32, #tpu.memory_space<vmem>>, vector<1x16x512xf32>
    %165 = vector.shape_cast %164 : vector<1x16x512xf32> to vector<16x512xf32>
    %166 = arith.truncf %162 : vector<16x128xf32> to vector<16x128xbf16>
    %cst_67 = arith.constant dense<0.000000e+00> : vector<16x512xf32>
    %167 = tpu.matmul %166, %12, %cst_67 {dimension_numbers = #tpu.dot_dimension_numbers<[1], [0], [0], [1], [0, 0, 1, 1], [], []>} : vector<16x128xbf16>, vector<128x512xbf16>, vector<16x512xf32> -> vector<16x512xf32>
    %168 = arith.addf %165, %167 : vector<16x512xf32>
    %169 = vector.extract_strided_slice %168 {offsets = [0, 0], sizes = [16, 128], strides = [1, 1]} : vector<16x512xf32> to vector<16x128xf32>
    %cst_68 = arith.constant 5.000000e-01 : f32
    %170 = vector.broadcast %cst_68 : f32 to vector<16x128xf32>
    %171 = arith.mulf %170, %169 : vector<16x128xf32>
    %172 = math.tanh %171 : vector<16x128xf32>
    %cst_69 = arith.constant 5.000000e-01 : f32
    %173 = vector.broadcast %cst_69 : f32 to vector<16x128xf32>
    %174 = arith.mulf %173, %172 : vector<16x128xf32>
    %cst_70 = arith.constant 5.000000e-01 : f32
    %175 = vector.broadcast %cst_70 : f32 to vector<16x128xf32>
    %176 = arith.addf %174, %175 : vector<16x128xf32>
    %177 = vector.extract_strided_slice %168 {offsets = [0, 128], sizes = [16, 128], strides = [1, 1]} : vector<16x512xf32> to vector<16x128xf32>
    %cst_71 = arith.constant 5.000000e-01 : f32
    %178 = vector.broadcast %cst_71 : f32 to vector<16x128xf32>
    %179 = arith.mulf %178, %177 : vector<16x128xf32>
    %180 = math.tanh %179 : vector<16x128xf32>
    %cst_72 = arith.constant 5.000000e-01 : f32
    %181 = vector.broadcast %cst_72 : f32 to vector<16x128xf32>
    %182 = arith.mulf %181, %180 : vector<16x128xf32>
    %cst_73 = arith.constant 5.000000e-01 : f32
    %183 = vector.broadcast %cst_73 : f32 to vector<16x128xf32>
    %184 = arith.addf %182, %183 : vector<16x128xf32>
    %185 = vector.extract_strided_slice %168 {offsets = [0, 256], sizes = [16, 128], strides = [1, 1]} : vector<16x512xf32> to vector<16x128xf32>
    %186 = math.tanh %185 : vector<16x128xf32>
    %187 = vector.extract_strided_slice %168 {offsets = [0, 384], sizes = [16, 128], strides = [1, 1]} : vector<16x512xf32> to vector<16x128xf32>
    %cst_74 = arith.constant 5.000000e-01 : f32
    %188 = vector.broadcast %cst_74 : f32 to vector<16x128xf32>
    %189 = arith.mulf %188, %187 : vector<16x128xf32>
    %190 = math.tanh %189 : vector<16x128xf32>
    %cst_75 = arith.constant 5.000000e-01 : f32
    %191 = vector.broadcast %cst_75 : f32 to vector<16x128xf32>
    %192 = arith.mulf %191, %190 : vector<16x128xf32>
    %cst_76 = arith.constant 5.000000e-01 : f32
    %193 = vector.broadcast %cst_76 : f32 to vector<16x128xf32>
    %194 = arith.addf %192, %193 : vector<16x128xf32>
    %195 = arith.mulf %184, %160 : vector<16x128xf32>
    %196 = arith.mulf %176, %186 : vector<16x128xf32>
    %197 = arith.addf %195, %196 : vector<16x128xf32>
    %198 = math.tanh %197 : vector<16x128xf32>
    %199 = arith.mulf %194, %198 : vector<16x128xf32>
    %c5_i32 = arith.constant 5 : i32
    %200 = arith.index_cast %c5_i32 : i32 to index
    %c0_77 = arith.constant 0 : index
    %c0_78 = arith.constant 0 : index
    %201 = vector.load %arg9[%200, %c0_77, %c0_78] : memref<8x16x512xf32, #tpu.memory_space<vmem>>, vector<1x16x512xf32>
    %202 = vector.shape_cast %201 : vector<1x16x512xf32> to vector<16x512xf32>
    %203 = arith.truncf %199 : vector<16x128xf32> to vector<16x128xbf16>
    %cst_79 = arith.constant dense<0.000000e+00> : vector<16x512xf32>
    %204 = tpu.matmul %203, %12, %cst_79 {dimension_numbers = #tpu.dot_dimension_numbers<[1], [0], [0], [1], [0, 0, 1, 1], [], []>} : vector<16x128xbf16>, vector<128x512xbf16>, vector<16x512xf32> -> vector<16x512xf32>
    %205 = arith.addf %202, %204 : vector<16x512xf32>
    %206 = vector.extract_strided_slice %205 {offsets = [0, 0], sizes = [16, 128], strides = [1, 1]} : vector<16x512xf32> to vector<16x128xf32>
    %cst_80 = arith.constant 5.000000e-01 : f32
    %207 = vector.broadcast %cst_80 : f32 to vector<16x128xf32>
    %208 = arith.mulf %207, %206 : vector<16x128xf32>
    %209 = math.tanh %208 : vector<16x128xf32>
    %cst_81 = arith.constant 5.000000e-01 : f32
    %210 = vector.broadcast %cst_81 : f32 to vector<16x128xf32>
    %211 = arith.mulf %210, %209 : vector<16x128xf32>
    %cst_82 = arith.constant 5.000000e-01 : f32
    %212 = vector.broadcast %cst_82 : f32 to vector<16x128xf32>
    %213 = arith.addf %211, %212 : vector<16x128xf32>
    %214 = vector.extract_strided_slice %205 {offsets = [0, 128], sizes = [16, 128], strides = [1, 1]} : vector<16x512xf32> to vector<16x128xf32>
    %cst_83 = arith.constant 5.000000e-01 : f32
    %215 = vector.broadcast %cst_83 : f32 to vector<16x128xf32>
    %216 = arith.mulf %215, %214 : vector<16x128xf32>
    %217 = math.tanh %216 : vector<16x128xf32>
    %cst_84 = arith.constant 5.000000e-01 : f32
    %218 = vector.broadcast %cst_84 : f32 to vector<16x128xf32>
    %219 = arith.mulf %218, %217 : vector<16x128xf32>
    %cst_85 = arith.constant 5.000000e-01 : f32
    %220 = vector.broadcast %cst_85 : f32 to vector<16x128xf32>
    %221 = arith.addf %219, %220 : vector<16x128xf32>
    %222 = vector.extract_strided_slice %205 {offsets = [0, 256], sizes = [16, 128], strides = [1, 1]} : vector<16x512xf32> to vector<16x128xf32>
    %223 = math.tanh %222 : vector<16x128xf32>
    %224 = vector.extract_strided_slice %205 {offsets = [0, 384], sizes = [16, 128], strides = [1, 1]} : vector<16x512xf32> to vector<16x128xf32>
    %cst_86 = arith.constant 5.000000e-01 : f32
    %225 = vector.broadcast %cst_86 : f32 to vector<16x128xf32>
    %226 = arith.mulf %225, %224 : vector<16x128xf32>
    %227 = math.tanh %226 : vector<16x128xf32>
    %cst_87 = arith.constant 5.000000e-01 : f32
    %228 = vector.broadcast %cst_87 : f32 to vector<16x128xf32>
    %229 = arith.mulf %228, %227 : vector<16x128xf32>
    %cst_88 = arith.constant 5.000000e-01 : f32
    %230 = vector.broadcast %cst_88 : f32 to vector<16x128xf32>
    %231 = arith.addf %229, %230 : vector<16x128xf32>
    %232 = arith.mulf %221, %197 : vector<16x128xf32>
    %233 = arith.mulf %213, %223 : vector<16x128xf32>
    %234 = arith.addf %232, %233 : vector<16x128xf32>
    %235 = math.tanh %234 : vector<16x128xf32>
    %236 = arith.mulf %231, %235 : vector<16x128xf32>
    %c6_i32 = arith.constant 6 : i32
    %237 = arith.index_cast %c6_i32 : i32 to index
    %c0_89 = arith.constant 0 : index
    %c0_90 = arith.constant 0 : index
    %238 = vector.load %arg9[%237, %c0_89, %c0_90] : memref<8x16x512xf32, #tpu.memory_space<vmem>>, vector<1x16x512xf32>
    %239 = vector.shape_cast %238 : vector<1x16x512xf32> to vector<16x512xf32>
    %240 = arith.truncf %236 : vector<16x128xf32> to vector<16x128xbf16>
    %cst_91 = arith.constant dense<0.000000e+00> : vector<16x512xf32>
    %241 = tpu.matmul %240, %12, %cst_91 {dimension_numbers = #tpu.dot_dimension_numbers<[1], [0], [0], [1], [0, 0, 1, 1], [], []>} : vector<16x128xbf16>, vector<128x512xbf16>, vector<16x512xf32> -> vector<16x512xf32>
    %242 = arith.addf %239, %241 : vector<16x512xf32>
    %243 = vector.extract_strided_slice %242 {offsets = [0, 0], sizes = [16, 128], strides = [1, 1]} : vector<16x512xf32> to vector<16x128xf32>
    %cst_92 = arith.constant 5.000000e-01 : f32
    %244 = vector.broadcast %cst_92 : f32 to vector<16x128xf32>
    %245 = arith.mulf %244, %243 : vector<16x128xf32>
    %246 = math.tanh %245 : vector<16x128xf32>
    %cst_93 = arith.constant 5.000000e-01 : f32
    %247 = vector.broadcast %cst_93 : f32 to vector<16x128xf32>
    %248 = arith.mulf %247, %246 : vector<16x128xf32>
    %cst_94 = arith.constant 5.000000e-01 : f32
    %249 = vector.broadcast %cst_94 : f32 to vector<16x128xf32>
    %250 = arith.addf %248, %249 : vector<16x128xf32>
    %251 = vector.extract_strided_slice %242 {offsets = [0, 128], sizes = [16, 128], strides = [1, 1]} : vector<16x512xf32> to vector<16x128xf32>
    %cst_95 = arith.constant 5.000000e-01 : f32
    %252 = vector.broadcast %cst_95 : f32 to vector<16x128xf32>
    %253 = arith.mulf %252, %251 : vector<16x128xf32>
    %254 = math.tanh %253 : vector<16x128xf32>
    %cst_96 = arith.constant 5.000000e-01 : f32
    %255 = vector.broadcast %cst_96 : f32 to vector<16x128xf32>
    %256 = arith.mulf %255, %254 : vector<16x128xf32>
    %cst_97 = arith.constant 5.000000e-01 : f32
    %257 = vector.broadcast %cst_97 : f32 to vector<16x128xf32>
    %258 = arith.addf %256, %257 : vector<16x128xf32>
    %259 = vector.extract_strided_slice %242 {offsets = [0, 256], sizes = [16, 128], strides = [1, 1]} : vector<16x512xf32> to vector<16x128xf32>
    %260 = math.tanh %259 : vector<16x128xf32>
    %261 = vector.extract_strided_slice %242 {offsets = [0, 384], sizes = [16, 128], strides = [1, 1]} : vector<16x512xf32> to vector<16x128xf32>
    %cst_98 = arith.constant 5.000000e-01 : f32
    %262 = vector.broadcast %cst_98 : f32 to vector<16x128xf32>
    %263 = arith.mulf %262, %261 : vector<16x128xf32>
    %264 = math.tanh %263 : vector<16x128xf32>
    %cst_99 = arith.constant 5.000000e-01 : f32
    %265 = vector.broadcast %cst_99 : f32 to vector<16x128xf32>
    %266 = arith.mulf %265, %264 : vector<16x128xf32>
    %cst_100 = arith.constant 5.000000e-01 : f32
    %267 = vector.broadcast %cst_100 : f32 to vector<16x128xf32>
    %268 = arith.addf %266, %267 : vector<16x128xf32>
    %269 = arith.mulf %258, %234 : vector<16x128xf32>
    %270 = arith.mulf %250, %260 : vector<16x128xf32>
    %271 = arith.addf %269, %270 : vector<16x128xf32>
    %272 = math.tanh %271 : vector<16x128xf32>
    %273 = arith.mulf %268, %272 : vector<16x128xf32>
    %c7_i32 = arith.constant 7 : i32
    %274 = arith.index_cast %c7_i32 : i32 to index
    %c0_101 = arith.constant 0 : index
    %c0_102 = arith.constant 0 : index
    %275 = vector.load %arg9[%274, %c0_101, %c0_102] : memref<8x16x512xf32, #tpu.memory_space<vmem>>, vector<1x16x512xf32>
    %276 = vector.shape_cast %275 : vector<1x16x512xf32> to vector<16x512xf32>
    %277 = arith.truncf %273 : vector<16x128xf32> to vector<16x128xbf16>
    %cst_103 = arith.constant dense<0.000000e+00> : vector<16x512xf32>
    %278 = tpu.matmul %277, %12, %cst_103 {dimension_numbers = #tpu.dot_dimension_numbers<[1], [0], [0], [1], [0, 0, 1, 1], [], []>} : vector<16x128xbf16>, vector<128x512xbf16>, vector<16x512xf32> -> vector<16x512xf32>
    %279 = arith.addf %276, %278 : vector<16x512xf32>
    %280 = vector.extract_strided_slice %279 {offsets = [0, 0], sizes = [16, 128], strides = [1, 1]} : vector<16x512xf32> to vector<16x128xf32>
    %cst_104 = arith.constant 5.000000e-01 : f32
    %281 = vector.broadcast %cst_104 : f32 to vector<16x128xf32>
    %282 = arith.mulf %281, %280 : vector<16x128xf32>
    %283 = math.tanh %282 : vector<16x128xf32>
    %cst_105 = arith.constant 5.000000e-01 : f32
    %284 = vector.broadcast %cst_105 : f32 to vector<16x128xf32>
    %285 = arith.mulf %284, %283 : vector<16x128xf32>
    %cst_106 = arith.constant 5.000000e-01 : f32
    %286 = vector.broadcast %cst_106 : f32 to vector<16x128xf32>
    %287 = arith.addf %285, %286 : vector<16x128xf32>
    %288 = vector.extract_strided_slice %279 {offsets = [0, 128], sizes = [16, 128], strides = [1, 1]} : vector<16x512xf32> to vector<16x128xf32>
    %cst_107 = arith.constant 5.000000e-01 : f32
    %289 = vector.broadcast %cst_107 : f32 to vector<16x128xf32>
    %290 = arith.mulf %289, %288 : vector<16x128xf32>
    %291 = math.tanh %290 : vector<16x128xf32>
    %cst_108 = arith.constant 5.000000e-01 : f32
    %292 = vector.broadcast %cst_108 : f32 to vector<16x128xf32>
    %293 = arith.mulf %292, %291 : vector<16x128xf32>
    %cst_109 = arith.constant 5.000000e-01 : f32
    %294 = vector.broadcast %cst_109 : f32 to vector<16x128xf32>
    %295 = arith.addf %293, %294 : vector<16x128xf32>
    %296 = vector.extract_strided_slice %279 {offsets = [0, 256], sizes = [16, 128], strides = [1, 1]} : vector<16x512xf32> to vector<16x128xf32>
    %297 = math.tanh %296 : vector<16x128xf32>
    %298 = vector.extract_strided_slice %279 {offsets = [0, 384], sizes = [16, 128], strides = [1, 1]} : vector<16x512xf32> to vector<16x128xf32>
    %cst_110 = arith.constant 5.000000e-01 : f32
    %299 = vector.broadcast %cst_110 : f32 to vector<16x128xf32>
    %300 = arith.mulf %299, %298 : vector<16x128xf32>
    %301 = math.tanh %300 : vector<16x128xf32>
    %cst_111 = arith.constant 5.000000e-01 : f32
    %302 = vector.broadcast %cst_111 : f32 to vector<16x128xf32>
    %303 = arith.mulf %302, %301 : vector<16x128xf32>
    %cst_112 = arith.constant 5.000000e-01 : f32
    %304 = vector.broadcast %cst_112 : f32 to vector<16x128xf32>
    %305 = arith.addf %303, %304 : vector<16x128xf32>
    %306 = arith.mulf %295, %271 : vector<16x128xf32>
    %307 = arith.mulf %287, %297 : vector<16x128xf32>
    %308 = arith.addf %306, %307 : vector<16x128xf32>
    %309 = math.tanh %308 : vector<16x128xf32>
    %310 = arith.mulf %305, %309 : vector<16x128xf32>
    %c8_i32 = arith.constant 8 : i32
    %c0_113 = arith.constant 0 : index
    %c0_114 = arith.constant 0 : index
    %311 = vector.load %arg10[%c0_113, %c0_114] : memref<16x128xf32, #tpu.memory_space<vmem>>, vector<16x128xf32>
    tpu.vector_store %arg10[%c0_113, %c0_114], %310 {strides = array<i32>} : memref<16x128xf32, #tpu.memory_space<vmem>>, vector<16x128xf32>,
    %c0_115 = arith.constant 0 : index
    %c0_116 = arith.constant 0 : index
    %312 = vector.load %arg11[%c0_115, %c0_116] : memref<16x128xf32, #tpu.memory_space<vmem>>, vector<16x128xf32>
    tpu.vector_store %arg11[%c0_115, %c0_116], %308 {strides = array<i32>} : memref<16x128xf32, #tpu.memory_space<vmem>>, vector<16x128xf32>,
    %c0_i32_117 = arith.constant 0 : i32
    %313 = arith.cmpi eq, %arg1, %c0_i32_117 : i32
    %314 = arith.extui %313 : i1 to i32
    %c0_i32_118 = arith.constant 0 : i32
    %315 = arith.cmpi ne, %314, %c0_i32_118 : i32
    scf.if %315 {
      %316 = arith.truncf %310 : vector<16x128xf32> to vector<16x128xbf16>
      %c0_119 = arith.constant 0 : index
      %c0_120 = arith.constant 0 : index
      %317 = vector.load %arg6[%c0_119, %c0_120] : memref<128x128xbf16, #tpu.memory_space<vmem>>, vector<128x128xbf16>
      %cst_121 = arith.constant dense<0.000000e+00> : vector<16x128xf32>
      %318 = tpu.matmul %316, %317, %cst_121 {dimension_numbers = #tpu.dot_dimension_numbers<[1], [0], [0], [1], [0, 0, 1, 1], [], []>} : vector<16x128xbf16>, vector<128x128xbf16>, vector<16x128xf32> -> vector<16x128xf32>
      %c0_122 = arith.constant 0 : index
      %c0_123 = arith.constant 0 : index
      %319 = vector.load %arg7[%c0_122, %c0_123] : memref<1x128xf32, #tpu.memory_space<vmem>>, vector<1x128xf32>
      %320 = vector.broadcast %319 : vector<1x128xf32> to vector<16x128xf32>
      %321 = arith.addf %318, %320 : vector<16x128xf32>
      %c0_124 = arith.constant 0 : index
      %c0_125 = arith.constant 0 : index
      %322 = vector.load %arg8[%c0_124, %c0_125] : memref<16x128xf32, #tpu.memory_space<vmem>>, vector<16x128xf32>
      tpu.vector_store %arg8[%c0_124, %c0_125], %321 {strides = array<i32>} : memref<16x128xf32, #tpu.memory_space<vmem>>, vector<16x128xf32>,
    } else {
    }
    return
  }
  func.func @transform_0(%arg0: i32, %arg1: i32) -> (i32, i32, i32) {
    %c0_i32 = arith.constant 0 : i32
    %c0_i32_0 = arith.constant 0 : i32
    return %arg1, %arg0, %c0_i32 : i32, i32, i32
  }
  func.func @transform_1(%arg0: i32, %arg1: i32) -> (i32, i32) {
    %c0_i32 = arith.constant 0 : i32
    %c0_i32_0 = arith.constant 0 : i32
    %c0_i32_1 = arith.constant 0 : i32
    return %c0_i32, %c0_i32_0 : i32, i32
  }
  func.func @transform_2(%arg0: i32, %arg1: i32) -> (i32, i32) {
    %c0_i32 = arith.constant 0 : i32
    %c0_i32_0 = arith.constant 0 : i32
    %c0_i32_1 = arith.constant 0 : i32
    return %c0_i32, %c0_i32_0 : i32, i32
  }
  func.func @transform_3(%arg0: i32, %arg1: i32) -> (i32, i32) {
    %c0_i32 = arith.constant 0 : i32
    %c0_i32_0 = arith.constant 0 : i32
    %c0_i32_1 = arith.constant 0 : i32
    return %c0_i32, %c0_i32_0 : i32, i32
  }
  func.func @transform_4(%arg0: i32, %arg1: i32) -> (i32, i32) {
    %c0_i32 = arith.constant 0 : i32
    %c0_i32_0 = arith.constant 0 : i32
    %c0_i32_1 = arith.constant 0 : i32
    return %c0_i32, %c0_i32_0 : i32, i32
  }
  func.func @transform_5(%arg0: i32, %arg1: i32) -> (i32, i32) {
    %c0_i32 = arith.constant 0 : i32
    %c0_i32_0 = arith.constant 0 : i32
    %c0_i32_1 = arith.constant 0 : i32
    return %c0_i32, %c0_i32_0 : i32, i32
  }
  func.func @transform_6(%arg0: i32, %arg1: i32) -> (i32, i32) {
    %c0_i32 = arith.constant 0 : i32
    %c0_i32_0 = arith.constant 0 : i32
    return %arg0, %c0_i32 : i32, i32
  }
}

</mosaic_0001>

<bundles_post_ra>
// kernel: lstm_forward.2
= control target key start
LH: loop header
LB: loop body
LE: loop exit
PB: predicated region body
PF: predicated region fallthrough
CT: control target
= control target key end

     0   :  { %9 = vsyncpa [#allocation6], 0  ;;  %s3358_s0 = inlined_call_operand.vmem [shape: bf16[8,16,128], index: 0, kind: input, shape index: {}]   ;;  %s3359_s1 = inlined_call_operand.hbm [shape: bf16[128,512], index: 1, kind: input, shape index: {}]   ;;  %s3360_s2 = inlined_call_operand.vmem [shape: f32[1,512], index: 2, kind: input, shape index: {}]   ;;  %s3361_s3 = inlined_call_operand.hbm [shape: bf16[128,512], index: 3, kind: input, shape index: {}]   ;;  %s3362_s4 = inlined_call_operand.vmem [shape: bf16[8,16,128], index: 4, kind: output, shape index: {}]  }
   0x1   :  { %10 = vsyncpa [#allocation8], 0  ;;  %s2538_s15 = smov [#allocation5]  }
   0x2   :  { %s18_s16 = sshll.u32 %s2538_s15, 4  ;;  %s19_s16 = int_to_ptr.vmem [resolvable:$true] %s18_s16 }
   0x3   :  { %s2502_s17 = scalar_lea.vmem %s19_s16, 4096  ;;  %p2507_p1 = scmp.lt.s32.totalorder %s19_s16, %s19_s16 }
   0x4   :  { %p2503_p0 = scmp.ne.s32.totalorder %s19_s16, %s2502_s17  ;;  %p2508_p2 = scmp.lt.s32.totalorder %s2502_s17, %s2502_s17 }
   0x6   :  { %p2509_p3 = por %p2508_p2, %p2507_p1 }
   0x8   :  { %p2510_p4 = pnand %p2509_p3, %p2503_p0 }
   0xa   :  { %2513 = shalt.err (!%p2510_p4)
}
   0xb   :  { %s2539_s18 = smov 256   ;;  %s2540_s19 = smov 16  }
   0xc   :  { %24 = dma.hbm_to_vmem [thread:$0]  %s3359_s1, 4096, %s19_s16, [#allocation6], %s2539_s18, %s2539_s18, %s2540_s19  }
   0xd   :  { %s2541_s22 = smov [#allocation7]  }
   0xe   :  { %s32_s23 = sshll.u32 %s2541_s22, 4  ;;  %s33_s23 = int_to_ptr.vmem [resolvable:$true] %s32_s23 }
   0xf   :  { %s2522_s24 = scalar_lea.vmem %s33_s23, 4096  ;;  %p2527_p6 = scmp.lt.s32.totalorder %s33_s23, %s33_s23 }
  0x10   :  { %p2523_p5 = scmp.ne.s32.totalorder %s33_s23, %s2522_s24  ;;  %p2528_p7 = scmp.lt.s32.totalorder %s2522_s24, %s2522_s24 }
  0x12   :  { %p2529_p8 = por %p2528_p7, %p2527_p6 }
  0x14   :  { %p2530_p9 = pnand %p2529_p8, %p2523_p5 }
  0x16   :  { %2533 = shalt.err (!%p2530_p9)
}
  0x17   :  { %38 = dma.hbm_to_vmem [thread:$0]  %s3361_s3, 4096, %s33_s23, [#allocation8], %s2539_s18, %s2539_s18, %s2540_s19  }
  0x18   :  { %2534 = dma.done.wait [#allocation6], 4096  }
  0x19   :  { %2535 = vsyncadd [#allocation6], 4294963200 }
  0x1a   :  { %2536 = dma.done.wait [#allocation8], 4096  }
  0x1b   :  { %2537 = vsyncadd [#allocation8], 4294963200  ;;  %v3363_v0 = vmov 0   ;;  %v2198_v1 = vld [vmem:[#allocation5 + $0xe4] ss:$16 sps:$4 sm:$0xff]   ;;  %v2250_v43 = vld [vmem:[%s3358_s0 + $0x8] sm:$0xff]  }
  0x1c   :  { %364 = vmatprep.mubr.bf16.mxu0 %v3363_v0  ;;  %477 = vmatprep.mubr.bf16.mxu1 %v3363_v0  ;;  %v2200_v2 = vld [vmem:[#allocation5 + $0xec] ss:$16 sps:$4 sm:$0xff]   ;;  %v2202_v3 = vld [vmem:[#allocation5 + $0xe0] ss:$16 sps:$4 sm:$0xff]   ;;  %v2203_v4 = vld [vmem:[#allocation5 + $0xe8] ss:$16 sps:$4 sm:$0xff]  }
  0x1d   :  { %332 = vmatprep.subr.bf16.mxu0 %v2198_v1  ;;  %445 = vmatprep.subr.bf16.mxu1 %v2200_v2  ;;  %v2204_v5 = vld [vmem:[#allocation5 + $0xc4] ss:$16 sps:$4 sm:$0xff]   ;;  %v2206_v6 = vld [vmem:[#allocation5 + $0xcc] ss:$16 sps:$4 sm:$0xff]   ;;  %v2208_v7 = vld [vmem:[#allocation5 + $0xc0] ss:$16 sps:$4 sm:$0xff]  }
  0x1e   :  { %333 = vmatpush1.bf16.msra.mxu0 %v2202_v3  ;;  %446 = vmatpush1.bf16.msra.mxu1 %v2203_v4  ;;  %v2209_v8 = vld [vmem:[#allocation5 + $0xc8] ss:$16 sps:$4 sm:$0xff]   ;;  %v2210_v9 = vld [vmem:[#allocation5 + $0xa4] ss:$16 sps:$4 sm:$0xff]   ;;  %v2212_v10 = vld [vmem:[#allocation5 + $0xac] ss:$16 sps:$4 sm:$0xff]  }
  0x1f   :  { %334 = vmatprep.subr.bf16.mxu0 %v2204_v5  ;;  %447 = vmatprep.subr.bf16.mxu1 %v2206_v6  ;;  %v2214_v11 = vld [vmem:[#allocation5 + $0xa0] ss:$16 sps:$4 sm:$0xff]   ;;  %v2215_v12 = vld [vmem:[#allocation5 + $0xa8] ss:$16 sps:$4 sm:$0xff]   ;;  %v2216_v13 = vld [vmem:[#allocation5 + $0x84] ss:$16 sps:$4 sm:$0xff]  }
  0x20   :  { %v2218_v14 = vld [vmem:[#allocation5 + $0x8c] ss:$16 sps:$4 sm:$0xff]   ;;  %v2220_v15 = vld [vmem:[#allocation5 + $0x80] ss:$16 sps:$4 sm:$0xff]   ;;  %v2221_v16 = vld [vmem:[#allocation5 + $0x88] ss:$16 sps:$4 sm:$0xff]  }
  0x21   :  { %v2222_v17 = vld [vmem:[#allocation5 + $0x64] ss:$16 sps:$4 sm:$0xff]   ;;  %v2224_v18 = vld [vmem:[#allocation5 + $0x6c] ss:$16 sps:$4 sm:$0xff]   ;;  %v2226_v19 = vld [vmem:[#allocation5 + $0x60] ss:$16 sps:$4 sm:$0xff]  }
  0x22   :  { %335 = vmatpush1.bf16.msra.mxu0 %v2208_v7  ;;  %448 = vmatpush1.bf16.msra.mxu1 %v2209_v8  ;;  %v2227_v20 = vld [vmem:[#allocation5 + $0x68] ss:$16 sps:$4 sm:$0xff]   ;;  %v2228_v21 = vld [vmem:[#allocation5 + $0x44] ss:$16 sps:$4 sm:$0xff]   ;;  %v2230_v22 = vld [vmem:[#allocation5 + $0x4c] ss:$16 sps:$4 sm:$0xff]  }
  0x23   :  { %336 = vmatprep.subr.bf16.mxu0 %v2210_v9  ;;  %449 = vmatprep.subr.bf16.mxu1 %v2212_v10  ;;  %v2232_v23 = vld [vmem:[#allocation5 + $0x40] ss:$16 sps:$4 sm:$0xff]   ;;  %v2233_v24 = vld [vmem:[#allocation5 + $0x48] ss:$16 sps:$4 sm:$0xff]   ;;  %v2234_v25 = vld [vmem:[#allocation5 + $0x24] ss:$16 sps:$4 sm:$0xff]  }
  0x24   :  { %v2236_v26 = vld [vmem:[#allocation5 + $0x2c] ss:$16 sps:$4 sm:$0xff]   ;;  %v2238_v27 = vld [vmem:[#allocation5 + $0x20] ss:$16 sps:$4 sm:$0xff]   ;;  %v2239_v28 = vld [vmem:[#allocation5 + $0x28] ss:$16 sps:$4 sm:$0xff]  }
  0x25   :  { %v2240_v29 = vld [vmem:[#allocation5 + $0x4] ss:$16 sps:$4 sm:$0xff]   ;;  %v2242_v30 = vld [vmem:[#allocation5 + $0xc] ss:$16 sps:$4 sm:$0xff]   ;;  %v2244_v31 = vld [vmem:[#allocation5] ss:$16 sps:$4 sm:$0xff]  }
  0x26   :  { %337 = vmatpush1.bf16.msra.mxu0 %v2214_v11  ;;  %450 = vmatpush1.bf16.msra.mxu1 %v2215_v12  ;;  %v2245_v32 = vld [vmem:[#allocation5 + $0x8] ss:$16 sps:$4 sm:$0xff]   ;;  %v2577_v33 = vld [vmem:[#allocation7 + $0xe4] ss:$16 sps:$4 sm:$0xff]   ;;  %v2579_v34 = vld [vmem:[#allocation7 + $0xec] ss:$16 sps:$4 sm:$0xff]   ;;  %v104_v11 = vlaneseq }
  0x27   :  { %338 = vmatprep.subr.bf16.mxu0 %v2216_v13  ;;  %451 = vmatprep.subr.bf16.mxu1 %v2218_v14  ;;  %v2246_v35 = vld [vmem:[%s3358_s0] sm:$0xff]   ;;  %v2590_v38 = vld [vmem:[#allocation7 + $0xe8] ss:$16 sps:$4 sm:$0xff]   ;;  %v2592_v39 = vld [vmem:[#allocation7 + $0xcc] ss:$16 sps:$4 sm:$0xff]   ;;  %v2543_v10 = vmov 0.0|0.0  }
  0x28   :  { %v2584_v36 = vld [vmem:[#allocation7 + $0xe0] ss:$16 sps:$4 sm:$0xff]   ;;  %v2587_v37 = vld [vmem:[#allocation7 + $0xc4] ss:$16 sps:$4 sm:$0xff]   ;;  %v2603_v42 = vld [vmem:[#allocation7 + $0xc8] ss:$16 sps:$4 sm:$0xff]  }
  0x29   :  { %v2596_v40 = vld [vmem:[#allocation7 + $0xc0] ss:$16 sps:$4 sm:$0xff]   ;;  %v2600_v41 = vld [vmem:[#allocation7 + $0xa4] ss:$16 sps:$4 sm:$0xff]   ;;  %v2615_v46 = vld [vmem:[#allocation7 + $0xac] ss:$16 sps:$4 sm:$0xff]  }
  0x2a   :  { %339 = vmatpush1.bf16.msra.mxu0 %v2220_v15  ;;  %452 = vmatpush1.bf16.msra.mxu1 %v2221_v16  ;;  %v2611_v44 = vld [vmem:[#allocation7 + $0xa0] ss:$16 sps:$4 sm:$0xff]   ;;  %v2613_v45 = vld [vmem:[#allocation7 + $0x84] ss:$16 sps:$4 sm:$0xff]   ;;  %v2618_v47 = vld [vmem:[#allocation7 + $0xa8] ss:$16 sps:$4 sm:$0xff]  }
  0x2b   :  { %340 = vmatprep.subr.bf16.mxu0 %v2222_v17  ;;  %453 = vmatprep.subr.bf16.mxu1 %v2224_v18  ;;  %v2620_v48 = vld [vmem:[#allocation7 + $0x8c] ss:$16 sps:$4 sm:$0xff]   ;;  %v2626_v49 = vld [vmem:[#allocation7 + $0x80] ss:$16 sps:$4 sm:$0xff]   ;;  %v2628_v50 = vld [vmem:[#allocation7 + $0x64] ss:$16 sps:$4 sm:$0xff]  }
  0x2c   :  { %v2632_v51 = vld [vmem:[#allocation7 + $0x88] ss:$16 sps:$4 sm:$0xff]   ;;  %v2257_v52 = vld [vmem:[%s3358_s0 + $0x10] sm:$0xff]   ;;  %v2641_v54 = vld [vmem:[#allocation7 + $0x6c] ss:$16 sps:$4 sm:$0xff]   ;;  %v105_v12 = vshrl.u32 %v104_v11, 7 }
  0x2d   :  { %v2638_v53 = vld [vmem:[#allocation7 + $0x60] ss:$16 sps:$4 sm:$0xff]   ;;  %v2645_v55 = vld [vmem:[#allocation7 + $0x44] ss:$16 sps:$4 sm:$0xff]   ;;  %v2647_v56 = vld [vmem:[#allocation7 + $0x68] ss:$16 sps:$4 sm:$0xff]  }
  0x2e   :  { %341 = vmatpush1.bf16.msra.mxu0 %v2226_v19  ;;  %454 = vmatpush1.bf16.msra.mxu1 %v2227_v20  ;;  %v2649_v57 = vld [vmem:[#allocation7 + $0x4c] ss:$16 sps:$4 sm:$0xff]   ;;  %v2655_v58 = vld [vmem:[#allocation7 + $0x40] ss:$16 sps:$4 sm:$0xff]   ;;  %v2659_v59 = vld [vmem:[#allocation7 + $0x24] ss:$16 sps:$4 sm:$0xff]  }
  0x2f   :  { %342 = vmatprep.subr.bf16.mxu0 %v2228_v21  ;;  %455 = vmatprep.subr.bf16.mxu1 %v2230_v22  ;;  %v2661_v60 = vld [vmem:[#allocation7 + $0x48] ss:$16 sps:$4 sm:$0xff]   ;;  %v2668_v62 = vld [vmem:[#allocation7 + $0x20] ss:$16 sps:$4 sm:$0xff]   ;;  %v2670_v63 = vld [vmem:[#allocation7 + $0x2c] ss:$16 sps:$4 sm:$0xff]  }
  0x30   :  { %v2264_v61 = vld [vmem:[%s3358_s0 + $0x18] sm:$0xff]   ;;  %v2674_v1 = vld [vmem:[#allocation7 + $0x4] ss:$16 sps:$4 sm:$0xff]   ;;  %v2684_v4 = vld [vmem:[#allocation7] ss:$16 sps:$4 sm:$0xff]   ;;  %v106_v17 = vsub.s32 0, %v105_v12 }
  0x31   :  { %v2676_v2 = vld [vmem:[#allocation7 + $0x28] ss:$16 sps:$4 sm:$0xff]   ;;  %v2678_v3 = vld [vmem:[#allocation7 + $0xc] ss:$16 sps:$4 sm:$0xff]   ;;  %v2271_v6 = vld [vmem:[%s3358_s0 + $0x20] sm:$0xff]   ;;  %v114_v18 = vsub.s32 2, %v105_v12 }
  0x32   :  { %343 = vmatpush1.bf16.msra.mxu0 %v2232_v23  ;;  %456 = vmatpush1.bf16.msra.mxu1 %v2233_v24  ;;  %v2688_v5 = vld [vmem:[#allocation7 + $0x8] ss:$16 sps:$4 sm:$0xff]   ;;  %v2285_v8 = vld [vmem:[%s3358_s0 + $0x30] sm:$0xff]   ;;  %v102_v19 = vld [vmem:[%s3360_s2] sm:$0xf]  ;;  %v110_v22 = vsub.s32 1, %v105_v12 }
  0x33   :  { %344 = vmatprep.subr.bf16.mxu0 %v2234_v25  ;;  %457 = vmatprep.subr.bf16.mxu1 %v2236_v26  ;;  %v2278_v7 = vld [vmem:[%s3358_s0 + $0x28] sm:$0xff]   ;;  %v2292_v9 = vld [vmem:[%s3358_s0 + $0x38] sm:$0xff]   ;;  %v118_v23 = vsub.s32 3, %v105_v12  ;;  %v2768_v26 = vrot.slane %v102_v19, %v106_v17 }
  0x36   :  { %345 = vmatpush1.bf16.msra.mxu0 %v2238_v27  ;;  %458 = vmatpush1.bf16.msra.mxu1 %v2239_v28  ;;  %v2770_v27 = vrot.slane %v102_v19, %v114_v18 }
  0x37   :  { %346 = vmatprep.subr.bf16.mxu0 %v2240_v29  ;;  %459 = vmatprep.subr.bf16.mxu1 %v2242_v30  ;;  %v2772_v30 = vrot.slane %v102_v19, %v110_v22 }
  0x3a   :  { %347 = vmatpush1.bf16.msra.mxu0 %v2244_v31  ;;  %460 = vmatpush1.bf16.msra.mxu1 %v2245_v32  ;;  %v2774_v31 = vrot.slane %v102_v19, %v118_v23 }
  0x3b   :  { %827 = vmatprep.subr.bf16.mxu0 %v2577_v33  ;;  %870 = vmatprep.subr.bf16.mxu1 %v2579_v34 }
  0x3d   :  { %365 = vmatmul.mubr.bf16.vlgmr.msra.gmra.mxu0 %v2246_v35  ;;  %478 = vmatmul.mubr.bf16.vlgmr.msra.gmra.mxu1 %v2246_v35 }
  0x3e   :  { %828 = vmatpush1.bf16.msra.mxu0 %v2584_v36  ;;  %374 = vmatprep.mubr.bf16.mxu0 %v3363_v0 }
  0x3f   :  { %487 = vmatprep.mubr.bf16.mxu1 %v3363_v0  ;;  %829 = vmatprep.subr.bf16.mxu0 %v2587_v37 }
  0x40   :  { %871 = vmatpush1.bf16.msra.mxu1 %v2590_v38 }
  0x41   :  { %872 = vmatprep.subr.bf16.mxu1 %v2592_v39 }
  0x42   :  { %830 = vmatpush1.bf16.msra.mxu0 %v2596_v40 }
  0x43   :  { %831 = vmatprep.subr.bf16.mxu0 %v2600_v41 }
  0x44   :  { %873 = vmatpush1.bf16.msra.mxu1 %v2603_v42 }
  0x45   :  { %375 = vmatmul.mubr.bf16.gmra.mxu0 %v2250_v43  ;;  %488 = vmatmul.mubr.bf16.gmra.mxu1 %v2250_v43 }
  0x46   :  { %384 = vmatprep.mubr.bf16.mxu0 %v3363_v0  ;;  %497 = vmatprep.mubr.bf16.mxu1 %v3363_v0 }
  0x47   :  { %832 = vmatpush1.bf16.msra.mxu0 %v2611_v44  ;;  %874 = vmatprep.subr.bf16.mxu1 %v2615_v46 }
  0x48   :  { %833 = vmatprep.subr.bf16.mxu0 %v2613_v45  ;;  %875 = vmatpush1.bf16.msra.mxu1 %v2618_v47 }
  0x49   :  { %876 = vmatprep.subr.bf16.mxu1 %v2620_v48 }
  0x4b   :  { %834 = vmatpush1.bf16.msra.mxu0 %v2626_v49 }
  0x4c   :  { %835 = vmatprep.subr.bf16.mxu0 %v2628_v50  ;;  %877 = vmatpush1.bf16.msra.mxu1 %v2632_v51 }
  0x4d   :  { %385 = vmatmul.mubr.bf16.gmra.mxu0 %v2257_v52  ;;  %498 = vmatmul.mubr.bf16.gmra.mxu1 %v2257_v52 }
  0x4e   :  { %394 = vmatprep.mubr.bf16.mxu0 %v3363_v0  ;;  %507 = vmatprep.mubr.bf16.mxu1 %v3363_v0 }
  0x4f   :  { %836 = vmatpush1.bf16.msra.mxu0 %v2638_v53  ;;  %878 = vmatprep.subr.bf16.mxu1 %v2641_v54 }
  0x50   :  { %837 = vmatprep.subr.bf16.mxu0 %v2645_v55  ;;  %879 = vmatpush1.bf16.msra.mxu1 %v2647_v56 }
  0x51   :  { %880 = vmatprep.subr.bf16.mxu1 %v2649_v57 }
  0x53   :  { %838 = vmatpush1.bf16.msra.mxu0 %v2655_v58 }
  0x54   :  { %839 = vmatprep.subr.bf16.mxu0 %v2659_v59  ;;  %881 = vmatpush1.bf16.msra.mxu1 %v2661_v60 }
  0x55   :  { %395 = vmatmul.mubr.bf16.gmra.mxu0 %v2264_v61  ;;  %508 = vmatmul.mubr.bf16.gmra.mxu1 %v2264_v61 }
  0x56   :  { %404 = vmatprep.mubr.bf16.mxu0 %v3363_v0  ;;  %517 = vmatprep.mubr.bf16.mxu1 %v3363_v0 }
  0x57   :  { %840 = vmatpush1.bf16.msra.mxu0 %v2668_v62  ;;  %882 = vmatprep.subr.bf16.mxu1 %v2670_v63 }
  0x58   :  { %841 = vmatprep.subr.bf16.mxu0 %v2674_v1  ;;  %883 = vmatpush1.bf16.msra.mxu1 %v2676_v2 }
  0x59   :  { %884 = vmatprep.subr.bf16.mxu1 %v2678_v3 }
  0x5b   :  { %842 = vmatpush1.bf16.msra.mxu0 %v2684_v4 }
  0x5c   :  { %885 = vmatpush1.bf16.msra.mxu1 %v2688_v5  ;;  %976 = vmatprep.subr.bf16.mxu0 %v2577_v33 }
  0x5d   :  { %405 = vmatmul.mubr.bf16.gmra.mxu0 %v2271_v6  ;;  %518 = vmatmul.mubr.bf16.gmra.mxu1 %v2271_v6 }
  0x5e   :  { %414 = vmatprep.mubr.bf16.mxu0 %v3363_v0  ;;  %527 = vmatprep.mubr.bf16.mxu1 %v3363_v0 }
  0x5f   :  { %1019 = vmatprep.subr.bf16.mxu1 %v2579_v34 }
  0x65   :  { %415 = vmatmul.mubr.bf16.gmra.mxu0 %v2278_v7  ;;  %528 = vmatmul.mubr.bf16.gmra.mxu1 %v2278_v7 }
  0x66   :  { %424 = vmatprep.mubr.bf16.mxu0 %v3363_v0  ;;  %537 = vmatprep.mubr.bf16.mxu1 %v3363_v0 }
  0x6d   :  { %425 = vmatmul.mubr.bf16.gmra.mxu0 %v2285_v8  ;;  %538 = vmatmul.mubr.bf16.gmra.mxu1 %v2285_v8 }
  0x6e   :  { %434 = vmatprep.mubr.bf16.mxu0 %v3363_v0  ;;  %547 = vmatprep.mubr.bf16.mxu1 %v3363_v0 }
  0x75   :  { %435 = vmatmul.mubr.bf16.gmra.mxu0 %v2292_v9  ;;  %548 = vmatmul.mubr.bf16.gmra.mxu1 %v2292_v9 }
  0x76   :  { %859 = vmatprep.mubr.bf16.mxu0 %v3363_v0  ;;  %902 = vmatprep.mubr.bf16.mxu1 %v3363_v0 }
  0x7d   :  { %860 = vmatmul.mubr.bf16.vlgmr.msra.gmra.mxu0 %v2543_v10  ;;  %903 = vmatmul.mubr.bf16.vlgmr.msra.gmra.mxu1 %v2543_v10 }
  0x7e   :  { %977 = vmatpush1.bf16.msra.mxu0 %v2584_v36  ;;  %1020 = vmatpush1.bf16.msra.mxu1 %v2590_v38 }
  0x7f   :  { %978 = vmatprep.subr.bf16.mxu0 %v2587_v37  ;;  %1021 = vmatprep.subr.bf16.mxu1 %v2592_v39 }
  0x80   :  { %1008 = vmatprep.mubr.bf16.mxu0 %v3363_v0  ;;  %1051 = vmatprep.mubr.bf16.mxu1 %v3363_v0 }
  0x82   :  { %979 = vmatpush1.bf16.msra.mxu0 %v2596_v40  ;;  %1022 = vmatpush1.bf16.msra.mxu1 %v2603_v42 }
  0x83   :  { %980 = vmatprep.subr.bf16.mxu0 %v2600_v41  ;;  %1023 = vmatprep.subr.bf16.mxu1 %v2615_v46 }
  0x86   :  { %981 = vmatpush1.bf16.msra.mxu0 %v2611_v44  ;;  %1024 = vmatpush1.bf16.msra.mxu1 %v2618_v47 }
  0x87   :  { %982 = vmatprep.subr.bf16.mxu0 %v2613_v45  ;;  %1025 = vmatprep.subr.bf16.mxu1 %v2620_v48 }
  0x8a   :  { %983 = vmatpush1.bf16.msra.mxu0 %v2626_v49  ;;  %1026 = vmatpush1.bf16.msra.mxu1 %v2632_v51 }
  0x8b   :  { %984 = vmatprep.subr.bf16.mxu0 %v2628_v50  ;;  %1027 = vmatprep.subr.bf16.mxu1 %v2641_v54 }
  0x8e   :  { %985 = vmatpush1.bf16.msra.mxu0 %v2638_v53  ;;  %1028 = vmatpush1.bf16.msra.mxu1 %v2647_v56 }
  0x8f   :  { %986 = vmatprep.subr.bf16.mxu0 %v2645_v55  ;;  %1029 = vmatprep.subr.bf16.mxu1 %v2649_v57 }
  0x92   :  { %987 = vmatpush1.bf16.msra.mxu0 %v2655_v58  ;;  %1030 = vmatpush1.bf16.msra.mxu1 %v2661_v60 }
  0x93   :  { %988 = vmatprep.subr.bf16.mxu0 %v2659_v59  ;;  %1031 = vmatprep.subr.bf16.mxu1 %v2670_v63 }
  0x96   :  { %989 = vmatpush1.bf16.msra.mxu0 %v2668_v62  ;;  %1032 = vmatpush1.bf16.msra.mxu1 %v2676_v2 }
  0x97   :  { %990 = vmatprep.subr.bf16.mxu0 %v2674_v1  ;;  %1033 = vmatprep.subr.bf16.mxu1 %v2678_v3 }
  0x9a   :  { %991 = vmatpush1.bf16.msra.mxu0 %v2684_v4  ;;  %1034 = vmatpush1.bf16.msra.mxu1 %v2688_v5 }
  0x9b   :  { %1126 = vmatprep.subr.bf16.mxu0 %v2577_v33  ;;  %1169 = vmatprep.subr.bf16.mxu1 %v2579_v34 }
  0xfd   :  { %v2749_v13 = vpop.f32.mrf.mxu0  ;;  %v2751_v14 = vpop.f32.mrf.mxu1 }
  0xff   :  { %v2753_v15 = vpop.f32.mrf.mxu0  ;;  %v2755_v16 = vpop.f32.mrf.mxu1 }
 0x101   :  { %v2760_v20 = vpop.f32.mrf.mxu0  ;;  %v2762_v21 = vpop.f32.mrf.mxu1 }
 0x103   :  { %v2764_v24 = vpop.f32.mrf.mxu0  ;;  %v2766_v25 = vpop.f32.mrf.mxu1 }
 0x105   :  { %v376_v28 = vpop.f32.mrf.mxu0  ;;  %v489_v29 = vpop.f32.mrf.mxu1 }
 0x106   :  { %v2777_v32 = vadd.f32 %v376_v28, %v2768_v26  ;;  %v2780_v35 = vadd.f32 %v489_v29, %v2770_v27 }
 0x107   :  { %v378_v43 = vpop.f32.mrf.mxu0  ;;  %v491_v52 = vpop.f32.mrf.mxu1 }
 0x108   :  { %v2783_v61 = vadd.f32 %v378_v43, %v2772_v30  ;;  %v2786_v6 = vadd.f32 %v491_v52, %v2774_v31 }
 0x109   :  { %v380_v7 = vpop.f32.mrf.mxu0  ;;  %v493_v8 = vpop.f32.mrf.mxu1 }
 0x10a   :  { %3365 = vst [vmem:[#allocation11_spill] sm:$0xff] %v2786_v6  ;;  %v2789_v9 = vadd.f32 %v380_v7, %v2768_v26  ;;  %v2792_v10 = vadd.f32 %v493_v8, %v2770_v27 }
 0x10b   :  { %v382_v11 = vpop.f32.mrf.mxu0  ;;  %v495_v12 = vpop.f32.mrf.mxu1 }
 0x10c   :  { %3366 = vst [vmem:[#allocation12_spill] sm:$0xff] %v2792_v10  ;;  %v2795_v17 = vadd.f32 %v382_v11, %v2772_v30  ;;  %v2798_v18 = vadd.f32 %v495_v12, %v2774_v31 }
 0x10d   :  { %v386_v19 = vpop.f32.mrf.mxu0  ;;  %v499_v22 = vpop.f32.mrf.mxu1 }
 0x10e   :  { %3367 = vst [vmem:[#allocation13_spill] sm:$0xff] %v2798_v18  ;;  %v2801_v23 = vadd.f32 %v386_v19, %v2768_v26  ;;  %v2804_v28 = vadd.f32 %v499_v22, %v2770_v27 }
 0x10f   :  { %v388_v29 = vpop.f32.mrf.mxu0  ;;  %v501_v43 = vpop.f32.mrf.mxu1 }
 0x110   :  { %3368 = vst [vmem:[#allocation14_spill] sm:$0xff] %v2801_v23  ;;  %3369 = vst [vmem:[#allocation15_spill] sm:$0xff] %v2804_v28  ;;  %v2807_v52 = vadd.f32 %v388_v29, %v2772_v30  ;;  %v2810_v7 = vadd.f32 %v501_v43, %v2774_v31 }
 0x111   :  { %v390_v8 = vpop.f32.mrf.mxu0  ;;  %v503_v11 = vpop.f32.mrf.mxu1 }
 0x112   :  { %3370 = vst [vmem:[#allocation16_spill] sm:$0xff] %v2807_v52  ;;  %3371 = vst [vmem:[#allocation17_spill] sm:$0xff] %v2810_v7  ;;  %v2813_v12 = vadd.f32 %v390_v8, %v2768_v26  ;;  %v2816_v0 = vadd.f32 %v503_v11, %v2770_v27 }
 0x113   :  { %v392_v19 = vpop.f32.mrf.mxu0  ;;  %v505_v23 = vpop.f32.mrf.mxu1 }
 0x114   :  { %3372 = vst [vmem:[#allocation18_spill] sm:$0xff] %v2813_v12  ;;  %3373 = vst [vmem:[#allocation19_spill] sm:$0xff] %v2816_v0  ;;  %v2819_v22 = vadd.f32 %v392_v19, %v2772_v30  ;;  %v2822_v28 = vadd.f32 %v505_v23, %v2774_v31 }
 0x115   :  { %v396_v29 = vpop.f32.mrf.mxu0  ;;  %v509_v52 = vpop.f32.mrf.mxu1 }
 0x116   :  { %3374 = vst [vmem:[#allocation20_spill] sm:$0xff] %v2819_v22  ;;  %3375 = vst [vmem:[#allocation21_spill] sm:$0xff] %v2822_v28  ;;  %v2825_v43 = vadd.f32 %v396_v29, %v2768_v26  ;;  %v2828_v7 = vadd.f32 %v509_v52, %v2770_v27 }
 0x117   :  { %v398_v8 = vpop.f32.mrf.mxu0  ;;  %v511_v12 = vpop.f32.mrf.mxu1 }
 0x118   :  { %3376 = vst [vmem:[#allocation22_spill] sm:$0xff] %v2825_v43  ;;  %3377 = vst [vmem:[#allocation23_spill] sm:$0xff] %v2828_v7  ;;  %v2831_v11 = vadd.f32 %v398_v8, %v2772_v30  ;;  %v2834_v0 = vadd.f32 %v511_v12, %v2774_v31 }
 0x119   :  { %v400_v19 = vpop.f32.mrf.mxu0  ;;  %v513_v22 = vpop.f32.mrf.mxu1 }
 0x11a   :  { %3378 = vst [vmem:[#allocation24_spill] sm:$0xff] %v2831_v11  ;;  %3379 = vst [vmem:[#allocation25_spill] sm:$0xff] %v2834_v0  ;;  %v2837_v23 = vadd.f32 %v400_v19, %v2768_v26  ;;  %v2840_v28 = vadd.f32 %v513_v22, %v2770_v27 }
 0x11b   :  { %v402_v29 = vpop.f32.mrf.mxu0  ;;  %v515_v43 = vpop.f32.mrf.mxu1 }
 0x11c   :  { %3380 = vst [vmem:[#allocation26_spill] sm:$0xff] %v2837_v23  ;;  %3381 = vst [vmem:[#allocation27_spill] sm:$0xff] %v2840_v28  ;;  %v2843_v52 = vadd.f32 %v402_v29, %v2772_v30  ;;  %v2846_v7 = vadd.f32 %v515_v43, %v2774_v31 }
 0x11d   :  { %v406_v8 = vpop.f32.mrf.mxu0  ;;  %v519_v11 = vpop.f32.mrf.mxu1 }
 0x11e   :  { %3382 = vst [vmem:[#allocation28_spill] sm:$0xff] %v2843_v52  ;;  %3383 = vst [vmem:[#allocation29_spill] sm:$0xff] %v2846_v7  ;;  %v2849_v12 = vadd.f32 %v406_v8, %v2768_v26  ;;  %v2852_v0 = vadd.f32 %v519_v11, %v2770_v27 }
 0x11f   :  { %v408_v19 = vpop.f32.mrf.mxu0  ;;  %v521_v23 = vpop.f32.mrf.mxu1 }
 0x120   :  { %3384 = vst [vmem:[#allocation30_spill] sm:$0xff] %v2849_v12  ;;  %3385 = vst [vmem:[#allocation31_spill] sm:$0xff] %v2852_v0  ;;  %v2855_v22 = vadd.f32 %v408_v19, %v2772_v30  ;;  %v2858_v28 = vadd.f32 %v521_v23, %v2774_v31 }
 0x121   :  { %v410_v29 = vpop.f32.mrf.mxu0  ;;  %v523_v52 = vpop.f32.mrf.mxu1 }
 0x122   :  { %3386 = vst [vmem:[#allocation32_spill] sm:$0xff] %v2855_v22  ;;  %3387 = vst [vmem:[#allocation33_spill] sm:$0xff] %v2858_v28  ;;  %v2861_v43 = vadd.f32 %v410_v29, %v2768_v26  ;;  %v2864_v7 = vadd.f32 %v523_v52, %v2770_v27 }
 0x123   :  { %v412_v8 = vpop.f32.mrf.mxu0  ;;  %v525_v12 = vpop.f32.mrf.mxu1 }
 0x124   :  { %3388 = vst [vmem:[#allocation34_spill] sm:$0xff] %v2861_v43  ;;  %3389 = vst [vmem:[#allocation35_spill] sm:$0xff] %v2864_v7  ;;  %v2867_v11 = vadd.f32 %v412_v8, %v2772_v30  ;;  %v2870_v0 = vadd.f32 %v525_v12, %v2774_v31 }
 0x125   :  { %v416_v19 = vpop.f32.mrf.mxu0  ;;  %v529_v22 = vpop.f32.mrf.mxu1 }
 0x126   :  { %3390 = vst [vmem:[#allocation36_spill] sm:$0xff] %v2867_v11  ;;  %3391 = vst [vmem:[#allocation37_spill] sm:$0xff] %v2870_v0  ;;  %v2873_v23 = vadd.f32 %v416_v19, %v2768_v26  ;;  %v2876_v28 = vadd.f32 %v529_v22, %v2770_v27 }
 0x127   :  { %v418_v29 = vpop.f32.mrf.mxu0  ;;  %v531_v43 = vpop.f32.mrf.mxu1 }
 0x128   :  { %3392 = vst [vmem:[#allocation38_spill] sm:$0xff] %v2873_v23  ;;  %3393 = vst [vmem:[#allocation39_spill] sm:$0xff] %v2876_v28  ;;  %v2879_v52 = vadd.f32 %v418_v29, %v2772_v30  ;;  %v2882_v7 = vadd.f32 %v531_v43, %v2774_v31 }
 0x129   :  { %v420_v8 = vpop.f32.mrf.mxu0  ;;  %v533_v11 = vpop.f32.mrf.mxu1 }
 0x12a   :  { %3394 = vst [vmem:[#allocation40_spill] sm:$0xff] %v2879_v52  ;;  %3395 = vst [vmem:[#allocation41_spill] sm:$0xff] %v2882_v7  ;;  %v2885_v12 = vadd.f32 %v420_v8, %v2768_v26  ;;  %v2888_v0 = vadd.f32 %v533_v11, %v2770_v27 }
 0x12b   :  { %v422_v19 = vpop.f32.mrf.mxu0  ;;  %v535_v23 = vpop.f32.mrf.mxu1 }
 0x12c   :  { %3396 = vst [vmem:[#allocation42_spill] sm:$0xff] %v2885_v12  ;;  %3397 = vst [vmem:[#allocation43_spill] sm:$0xff] %v2888_v0  ;;  %v2891_v22 = vadd.f32 %v422_v19, %v2772_v30  ;;  %v2894_v28 = vadd.f32 %v535_v23, %v2774_v31 }
 0x12d   :  { %v426_v29 = vpop.f32.mrf.mxu0  ;;  %v539_v52 = vpop.f32.mrf.mxu1 }
 0x12e   :  { %3398 = vst [vmem:[#allocation44_spill] sm:$0xff] %v2891_v22  ;;  %3399 = vst [vmem:[#allocation45_spill] sm:$0xff] %v2894_v28  ;;  %v2897_v43 = vadd.f32 %v426_v29, %v2768_v26  ;;  %v2900_v7 = vadd.f32 %v539_v52, %v2770_v27 }
 0x12f   :  { %v428_v8 = vpop.f32.mrf.mxu0  ;;  %v541_v12 = vpop.f32.mrf.mxu1 }
 0x130   :  { %3400 = vst [vmem:[#allocation46_spill] sm:$0xff] %v2897_v43  ;;  %3401 = vst [vmem:[#allocation47_spill] sm:$0xff] %v2900_v7  ;;  %v2903_v11 = vadd.f32 %v428_v8, %v2772_v30  ;;  %v2906_v0 = vadd.f32 %v541_v12, %v2774_v31 }
 0x131   :  { %v430_v19 = vpop.f32.mrf.mxu0  ;;  %v543_v22 = vpop.f32.mrf.mxu1 }
 0x132   :  { %3402 = vst [vmem:[#allocation48_spill] sm:$0xff] %v2903_v11  ;;  %3403 = vst [vmem:[#allocation49_spill] sm:$0xff] %v2906_v0  ;;  %v2909_v23 = vadd.f32 %v430_v19, %v2768_v26  ;;  %v2912_v28 = vadd.f32 %v543_v22, %v2770_v27 }
 0x133   :  { %v432_v29 = vpop.f32.mrf.mxu0  ;;  %v545_v43 = vpop.f32.mrf.mxu1 }
 0x134   :  { %3404 = vst [vmem:[#allocation50_spill] sm:$0xff] %v2909_v23  ;;  %3405 = vst [vmem:[#allocation51_spill] sm:$0xff] %v2912_v28  ;;  %v2915_v52 = vadd.f32 %v432_v29, %v2772_v30  ;;  %v2918_v7 = vadd.f32 %v545_v43, %v2774_v31 }
 0x135   :  { %v436_v8 = vpop.f32.mrf.mxu0  ;;  %v549_v11 = vpop.f32.mrf.mxu1 }
 0x136   :  { %3406 = vst [vmem:[#allocation52_spill] sm:$0xff] %v2915_v52  ;;  %3407 = vst [vmem:[#allocation53_spill] sm:$0xff] %v2918_v7  ;;  %v2921_v12 = vadd.f32 %v436_v8, %v2768_v26  ;;  %v2924_v0 = vadd.f32 %v549_v11, %v2770_v27  ;;  %v367_v11 = vadd.f32 %v2749_v13, %v2768_v26 }
 0x137   :  { %v438_v19 = vpop.f32.mrf.mxu0  ;;  %v551_v23 = vpop.f32.mrf.mxu1 }
 0x138   :  { %3408 = vst [vmem:[#allocation54_spill] sm:$0xff] %v2921_v12  ;;  %3409 = vst [vmem:[#allocation55_spill] sm:$0xff] %v2924_v0  ;;  %v2927_v22 = vadd.f32 %v438_v19, %v2772_v30  ;;  %v2930_v28 = vadd.f32 %v551_v23, %v2774_v31 }
 0x139   :  { %v440_v29 = vpop.f32.mrf.mxu0  ;;  %v553_v52 = vpop.f32.mrf.mxu1 }
 0x13a   :  { %3410 = vst [vmem:[#allocation56_spill] sm:$0xff] %v2927_v22  ;;  %3411 = vst [vmem:[#allocation57_spill] sm:$0xff] %v2930_v28  ;;  %v2933_v43 = vadd.f32 %v440_v29, %v2768_v26  ;;  %v2936_v7 = vadd.f32 %v553_v52, %v2770_v27  ;;  %v369_v29 = vadd.f32 %v2753_v15, %v2772_v30 }
 0x13b   :  { %v442_v8 = vpop.f32.mrf.mxu0  ;;  %v555_v12 = vpop.f32.mrf.mxu1  ;;  %v480_v52 = vadd.f32 %v2751_v14, %v2770_v27  ;;  %v371_v22 = vadd.f32 %v2760_v20, %v2768_v26  ;;  %v484_v20 = vadd.f32 %v2762_v21, %v2770_v27 }
 0x13c   :  { %3412 = vst [vmem:[#allocation58_spill] sm:$0xff] %v2933_v43  ;;  %3413 = vst [vmem:[#allocation59_spill] sm:$0xff] %v2936_v7  ;;  %v2941_v0 = vadd.f32 %v442_v8, %v2772_v30  ;;  %v2944_v19 = vadd.f32 %v555_v12, %v2774_v31  ;;  %v373_v12 = vadd.f32 %v2764_v24, %v2772_v30 }
 0x13d   :  { %v861_v23 = vpop.f32.mrf.mxu0  ;;  %v904_v28 = vpop.f32.mrf.mxu1  ;;  %v486_v30 = vadd.f32 %v2766_v25, %v2774_v31 }
 0x13e   :  { %3414 = vst [vmem:[#allocation60_spill] sm:$0xff] %v2941_v0  ;;  %3415 = vst [vmem:[#allocation61_spill] sm:$0xff] %v2944_v19  ;;  %v913_v43 = vadd.f32 %v861_v23, %v367_v11  ;;  %v915_v8 = vadd.f32 %v904_v28, %v480_v52 }
 0x13f   :  { %v863_v7 = vpop.f32.mrf.mxu0  ;;  %v906_v0 = vpop.f32.mrf.mxu1 }
 0x140   :  { %v921_v13 = vmul.f32 0.5, %v913_v43  ;;  %v914_v18 = vadd.f32 %v863_v7, %v369_v29  ;;  %v482_v7 = vadd.f32 %v2755_v16, %v2774_v31 }
 0x141   :  { %v865_v6 = vpop.f32.mrf.mxu0  ;;  %v908_v14 = vpop.f32.mrf.mxu1 }
 0x142   :  { %2302 = vtanh.f32 %v921_v13  ;;  %v929_v19 = vmul.f32 0.5, %v914_v18  ;;  %v917_v10 = vadd.f32 %v865_v6, %v371_v22  ;;  %v919_v28 = vadd.f32 %v908_v14, %v484_v20 }
 0x143   :  { %v867_v15 = vpop.f32.mrf.mxu0  ;;  %v910_v24 = vpop.f32.mrf.mxu1  ;;  %v916_v6 = vadd.f32 %v906_v0, %v482_v7 }
 0x144   :  { %2304 = vtanh.f32 %v929_v19  ;;  %v922_v11 = vmul.f32 0.5, %v917_v10  ;;  %v918_v23 = vadd.f32 %v867_v15, %v373_v12  ;;  %v920_v10 = vadd.f32 %v910_v24, %v486_v30 }
 0x145   :  { %2306 = vtanh.f32 %v915_v8  ;;  %v939_v19 = vmul.f32 0.5, %v916_v6 }
 0x146   :  { %2308 = vtanh.f32 %v922_v11  ;;  %v930_v26 = vmul.f32 0.5, %v918_v23  ;;  %v940_v52 = vmul.f32 0.5, %v920_v10 }
 0x148   :  { %2310 = vtanh.f32 %v930_v26 }
 0x149   :  { %2312 = vtanh.f32 %v919_v28 }
 0x14a   :  { %2314 = vtanh.f32 %v939_v19 }
 0x14b   :  { %2316 = vtanh.f32 %v940_v52 }
 0x14f   :  { %v2303_v18 = vpop.eup %2302 }
 0x150   :  { %v925_v22 = vmul.f32 0.5, %v2303_v18 }
 0x151   :  { %v2305_v43 = vpop.eup %2304 }
 0x152   :  { %v2307_v29 = vpop.eup %2306  ;;  %v927_v21 = vadd.f32 0.5, %v925_v22  ;;  %v933_v27 = vmul.f32 0.5, %v2305_v43 }
 0x153   :  { %v2309_v13 = vpop.eup %2308 }
 0x154   :  { %v935_v8 = vadd.f32 0.5, %v933_v27  ;;  %v949_v12 = vmul.f32 %v2307_v29, %v927_v21  ;;  %v926_v15 = vmul.f32 0.5, %v2309_v13  ;;  %v3416_v27 = vmov 0  }
 0x155   :  { %v2311_v16 = vpop.eup %2310 }
 0x156   :  { %v947_v11 = vmul.f32 0.0, %v935_v8  ;;  %v928_v23 = vadd.f32 0.5, %v926_v15  ;;  %v934_v25 = vmul.f32 0.5, %v2311_v16  ;;  %v2313_v14 = vpop.eup %2312 }
 0x157   :  { %v2315_v7 = vpop.eup %2314 }
 0x158   :  { %v2960_v0 = vadd.f32 %v949_v12, %v947_v11  ;;  %v936_v31 = vadd.f32 0.5, %v934_v25  ;;  %v950_v26 = vmul.f32 %v2313_v14, %v928_v23  ;;  %v2317_v24 = vpop.eup %2316  ;;  %v943_v30 = vmul.f32 0.5, %v2315_v7 }
 0x159   :  { %v944_v6 = vmul.f32 0.5, %v2317_v24 }
 0x15a   :  { %v948_v20 = vmul.f32 0.0, %v936_v31  ;;  %2318 = vtanh.f32 %v2960_v0  ;;  %v945_v18 = vadd.f32 0.5, %v943_v30 }
 0x15b   :  { %v946_v22 = vadd.f32 0.5, %v944_v6  ;;  %v3419_v6 = vld [vmem:[#allocation13_spill] sm:$0xff] }
 0x15c   :  { %v2963_v28 = vadd.f32 %v950_v26, %v948_v20 }
 0x15e   :  { %2320 = vtanh.f32 %v2963_v28 }
 0x167   :  { %v2319_v10 = vpop.eup %2318 }
 0x168   :  { %v955_v19 = vmul.f32 %v2319_v10, %v945_v18 }
 0x16b   :  { %v2321_v43 = vpop.eup %2320 }
 0x16c   :  { %v956_v29 = vmul.f32 %v2321_v43, %v946_v22 }
 0x16e   :  { %v957_v21 = vpack.c.bf16 %v956_v29, %v955_v19 }
 0x170   :  { %2149 = vst [vmem:[%s3362_s4] sm:$0xff] %v957_v21   ;;  %1009 = vmatmul.mubr.bf16.vlgmr.msra.gmra.mxu0 %v957_v21  ;;  %1052 = vmatmul.mubr.bf16.vlgmr.msra.gmra.mxu1 %v957_v21 }
 0x171   :  { %1127 = vmatpush1.bf16.msra.mxu0 %v2584_v36  ;;  %1170 = vmatpush1.bf16.msra.mxu1 %v2590_v38 }
 0x172   :  { %1128 = vmatprep.subr.bf16.mxu0 %v2587_v37  ;;  %1171 = vmatprep.subr.bf16.mxu1 %v2592_v39 }
 0x173   :  { %1158 = vmatprep.mubr.bf16.mxu0 %v3416_v27  ;;  %1201 = vmatprep.mubr.bf16.mxu1 %v3416_v27 }
 0x175   :  { %1129 = vmatpush1.bf16.msra.mxu0 %v2596_v40  ;;  %1172 = vmatpush1.bf16.msra.mxu1 %v2603_v42 }
 0x176   :  { %1130 = vmatprep.subr.bf16.mxu0 %v2600_v41  ;;  %1173 = vmatprep.subr.bf16.mxu1 %v2615_v46 }
 0x179   :  { %1131 = vmatpush1.bf16.msra.mxu0 %v2611_v44  ;;  %1174 = vmatpush1.bf16.msra.mxu1 %v2618_v47 }
 0x17a   :  { %1132 = vmatprep.subr.bf16.mxu0 %v2613_v45  ;;  %1175 = vmatprep.subr.bf16.mxu1 %v2620_v48 }
 0x17d   :  { %1133 = vmatpush1.bf16.msra.mxu0 %v2626_v49  ;;  %1176 = vmatpush1.bf16.msra.mxu1 %v2632_v51 }
 0x17e   :  { %1134 = vmatprep.subr.bf16.mxu0 %v2628_v50  ;;  %1177 = vmatprep.subr.bf16.mxu1 %v2641_v54 }
 0x181   :  { %1135 = vmatpush1.bf16.msra.mxu0 %v2638_v53  ;;  %1178 = vmatpush1.bf16.msra.mxu1 %v2647_v56 }
 0x182   :  { %1136 = vmatprep.subr.bf16.mxu0 %v2645_v55  ;;  %1179 = vmatprep.subr.bf16.mxu1 %v2649_v57 }
 0x185   :  { %1137 = vmatpush1.bf16.msra.mxu0 %v2655_v58  ;;  %1180 = vmatpush1.bf16.msra.mxu1 %v2661_v60 }
 0x186   :  { %1138 = vmatprep.subr.bf16.mxu0 %v2659_v59  ;;  %1181 = vmatprep.subr.bf16.mxu1 %v2670_v63 }
 0x189   :  { %1139 = vmatpush1.bf16.msra.mxu0 %v2668_v62  ;;  %1182 = vmatpush1.bf16.msra.mxu1 %v2676_v2 }
 0x18a   :  { %1140 = vmatprep.subr.bf16.mxu0 %v2674_v1  ;;  %1183 = vmatprep.subr.bf16.mxu1 %v2678_v3 }
 0x18d   :  { %1141 = vmatpush1.bf16.msra.mxu0 %v2684_v4  ;;  %1184 = vmatpush1.bf16.msra.mxu1 %v2688_v5 }
 0x18e   :  { %1276 = vmatprep.subr.bf16.mxu0 %v2577_v33  ;;  %1319 = vmatprep.subr.bf16.mxu1 %v2579_v34 }
 0x230   :  { %v1010_v52 = vpop.f32.mrf.mxu0  ;;  %v1053_v13 = vpop.f32.mrf.mxu1 }
 0x231   :  { %v1062_v8 = vadd.f32 %v1010_v52, %v2777_v32  ;;  %v1064_v23 = vadd.f32 %v1053_v13, %v2780_v35  ;;  %v3417_v32 = vld [vmem:[#allocation12_spill] sm:$0xff]  ;;  %v3418_v35 = vld [vmem:[#allocation11_spill] sm:$0xff] }
 0x232   :  { %v1012_v12 = vpop.f32.mrf.mxu0  ;;  %v1055_v15 = vpop.f32.mrf.mxu1 }
 0x233   :  { %v1070_v16 = vmul.f32 0.5, %v1062_v8  ;;  %v1063_v11 = vadd.f32 %v1012_v12, %v2783_v61  ;;  %v1065_v30 = vadd.f32 %v1055_v15, %v3418_v35 }
 0x234   :  { %v1014_v25 = vpop.f32.mrf.mxu0  ;;  %v1057_v20 = vpop.f32.mrf.mxu1 }
 0x235   :  { %2322 = vtanh.f32 %v1070_v16  ;;  %v1078_v31 = vmul.f32 0.5, %v1063_v11  ;;  %v1066_v14 = vadd.f32 %v1014_v25, %v2789_v9  ;;  %v1068_v7 = vadd.f32 %v1057_v20, %v3417_v32 }
 0x236   :  { %v1016_v33 = vpop.f32.mrf.mxu0  ;;  %v1059_v61 = vpop.f32.mrf.mxu1  ;;  %v1088_v43 = vmul.f32 0.5, %v1065_v30 }
 0x237   :  { %2324 = vtanh.f32 %v1078_v31  ;;  %v1071_v34 = vmul.f32 0.5, %v1066_v14  ;;  %v1067_v26 = vadd.f32 %v1016_v33, %v2795_v17  ;;  %v1069_v10 = vadd.f32 %v1059_v61, %v3419_v6 }
 0x238   :  { %2326 = vtanh.f32 %v1064_v23 }
 0x239   :  { %2328 = vtanh.f32 %v1071_v34  ;;  %v1079_v24 = vmul.f32 0.5, %v1067_v26  ;;  %v1089_v17 = vmul.f32 0.5, %v1069_v10 }
 0x23b   :  { %2330 = vtanh.f32 %v1079_v24 }
 0x23c   :  { %2332 = vtanh.f32 %v1068_v7 }
 0x23d   :  { %2334 = vtanh.f32 %v1088_v43 }
 0x23e   :  { %2336 = vtanh.f32 %v1089_v17 }
 0x242   :  { %v2323_v18 = vpop.eup %2322 }
 0x243   :  { %v1074_v9 = vmul.f32 0.5, %v2323_v18 }
 0x244   :  { %v2325_v22 = vpop.eup %2324 }
 0x245   :  { %v2327_v19 = vpop.eup %2326  ;;  %v1076_v29 = vadd.f32 0.5, %v1074_v9  ;;  %v1082_v21 = vmul.f32 0.5, %v2325_v22 }
 0x246   :  { %v2329_v52 = vpop.eup %2328 }
 0x247   :  { %v1084_v13 = vadd.f32 0.5, %v1082_v21  ;;  %v1098_v8 = vmul.f32 %v2327_v19, %v1076_v29  ;;  %v1075_v12 = vmul.f32 0.5, %v2329_v52  ;;  %v3426_v19 = vld [vmem:[#allocation17_spill] sm:$0xff] }
 0x248   :  { %v2331_v16 = vpop.eup %2330  ;;  %v3427_v21 = vld [vmem:[#allocation21_spill] sm:$0xff] }
 0x249   :  { %v1096_v11 = vmul.f32 %v1084_v13, %v2960_v0  ;;  %v1077_v23 = vadd.f32 0.5, %v1075_v12  ;;  %v1083_v15 = vmul.f32 0.5, %v2331_v16  ;;  %v2333_v25 = vpop.eup %2332 }
 0x24a   :  { %v2335_v26 = vpop.eup %2334 }
 0x24b   :  { %v3012_v31 = vadd.f32 %v1098_v8, %v1096_v11  ;;  %v1085_v14 = vadd.f32 0.5, %v1083_v15  ;;  %v1099_v20 = vmul.f32 %v2333_v25, %v1077_v23  ;;  %v2337_v32 = vpop.eup %2336  ;;  %v1092_v7 = vmul.f32 0.5, %v2335_v26 }
 0x24c   :  { %v1093_v0 = vmul.f32 0.5, %v2337_v32 }
 0x24d   :  { %v1097_v33 = vmul.f32 %v1085_v14, %v2963_v28  ;;  %2338 = vtanh.f32 %v3012_v31  ;;  %v1094_v61 = vadd.f32 0.5, %v1092_v7  ;;  %v3425_v28 = vld [vmem:[#allocation19_spill] sm:$0xff] }
 0x24e   :  { %v1095_v35 = vadd.f32 0.5, %v1093_v0 }
 0x24f   :  { %v3016_v34 = vadd.f32 %v1099_v20, %v1097_v33 }
 0x251   :  { %2340 = vtanh.f32 %v3016_v34 }
 0x25a   :  { %v2339_v24 = vpop.eup %2338 }
 0x25b   :  { %v1104_v6 = vmul.f32 %v2339_v24, %v1094_v61 }
 0x25e   :  { %v2341_v30 = vpop.eup %2340 }
 0x25f   :  { %v1105_v10 = vmul.f32 %v2341_v30, %v1095_v35 }
 0x261   :  { %v1106_v18 = vpack.c.bf16 %v1105_v10, %v1104_v6 }
 0x263   :  { %2185 = vst [vmem:[%s3362_s4 + $0x8] sm:$0xff] %v1106_v18   ;;  %1159 = vmatmul.mubr.bf16.vlgmr.msra.gmra.mxu0 %v1106_v18  ;;  %1202 = vmatmul.mubr.bf16.vlgmr.msra.gmra.mxu1 %v1106_v18 }
 0x264   :  { %1277 = vmatpush1.bf16.msra.mxu0 %v2584_v36  ;;  %1320 = vmatpush1.bf16.msra.mxu1 %v2590_v38  ;;  %v3054_v36 = vld [vmem:[#allocation7 + $0xe4] ss:$16 sps:$4 sm:$0xff]  }
 0x265   :  { %1278 = vmatprep.subr.bf16.mxu0 %v2587_v37  ;;  %1321 = vmatprep.subr.bf16.mxu1 %v2592_v39  ;;  %v3057_v37 = vld [vmem:[#allocation7 + $0xec] ss:$16 sps:$4 sm:$0xff]  }
 0x266   :  { %1308 = vmatprep.mubr.bf16.mxu0 %v3416_v27  ;;  %1351 = vmatprep.mubr.bf16.mxu1 %v3416_v27 }
 0x268   :  { %1279 = vmatpush1.bf16.msra.mxu0 %v2596_v40  ;;  %1322 = vmatpush1.bf16.msra.mxu1 %v2603_v42  ;;  %v3420_v40 = vld [vmem:[#allocation14_spill] sm:$0xff] }
 0x269   :  { %1280 = vmatprep.subr.bf16.mxu0 %v2600_v41  ;;  %1323 = vmatprep.subr.bf16.mxu1 %v2615_v46  ;;  %v3421_v46 = vld [vmem:[#allocation16_spill] sm:$0xff] }
 0x26c   :  { %1281 = vmatpush1.bf16.msra.mxu0 %v2611_v44  ;;  %1324 = vmatpush1.bf16.msra.mxu1 %v2618_v47 }
 0x26d   :  { %1282 = vmatprep.subr.bf16.mxu0 %v2613_v45  ;;  %1325 = vmatprep.subr.bf16.mxu1 %v2620_v48  ;;  %v3422_v48 = vld [vmem:[#allocation15_spill] sm:$0xff] }
 0x270   :  { %1283 = vmatpush1.bf16.msra.mxu0 %v2626_v49  ;;  %1326 = vmatpush1.bf16.msra.mxu1 %v2632_v51 }
 0x271   :  { %1284 = vmatprep.subr.bf16.mxu0 %v2628_v50  ;;  %1327 = vmatprep.subr.bf16.mxu1 %v2641_v54 }
 0x274   :  { %1285 = vmatpush1.bf16.msra.mxu0 %v2638_v53  ;;  %1328 = vmatpush1.bf16.msra.mxu1 %v2647_v56  ;;  %v3423_v53 = vld [vmem:[#allocation18_spill] sm:$0xff] }
 0x275   :  { %1286 = vmatprep.subr.bf16.mxu0 %v2645_v55  ;;  %1329 = vmatprep.subr.bf16.mxu1 %v2649_v57 }
 0x278   :  { %1287 = vmatpush1.bf16.msra.mxu0 %v2655_v58  ;;  %1330 = vmatpush1.bf16.msra.mxu1 %v2661_v60  ;;  %v3424_v58 = vld [vmem:[#allocation20_spill] sm:$0xff] }
 0x279   :  { %1288 = vmatprep.subr.bf16.mxu0 %v2659_v59  ;;  %1331 = vmatprep.subr.bf16.mxu1 %v2670_v63 }
 0x27c   :  { %1289 = vmatpush1.bf16.msra.mxu0 %v2668_v62  ;;  %1332 = vmatpush1.bf16.msra.mxu1 %v2676_v2 }
 0x27d   :  { %1290 = vmatprep.subr.bf16.mxu0 %v2674_v1  ;;  %1333 = vmatprep.subr.bf16.mxu1 %v2678_v3 }
 0x280   :  { %1291 = vmatpush1.bf16.msra.mxu0 %v2684_v4  ;;  %1334 = vmatpush1.bf16.msra.mxu1 %v2688_v5 }
 0x281   :  { %1426 = vmatprep.subr.bf16.mxu0 %v3054_v36  ;;  %1469 = vmatprep.subr.bf16.mxu1 %v3057_v37 }
 0x323   :  { %v1160_v38 = vpop.f32.mrf.mxu0  ;;  %v1203_v39 = vpop.f32.mrf.mxu1 }
 0x324   :  { %v1212_v41 = vadd.f32 %v1160_v38, %v3420_v40  ;;  %v1214_v49 = vadd.f32 %v1203_v39, %v3422_v48  ;;  %v3082_v48 = vld [vmem:[#allocation7 + $0xe8] ss:$16 sps:$4 sm:$0xff]  }
 0x325   :  { %v1162_v42 = vpop.f32.mrf.mxu0  ;;  %v1205_v44 = vpop.f32.mrf.mxu1 }
 0x326   :  { %v1220_v45 = vmul.f32 0.5, %v1212_v41  ;;  %v1213_v47 = vadd.f32 %v1162_v42, %v3421_v46  ;;  %v1215_v29 = vadd.f32 %v1205_v44, %v3426_v19  ;;  %v3129_v19 = vld [vmem:[#allocation7 + $0x60] ss:$16 sps:$4 sm:$0xff]  }
 0x327   :  { %v1164_v50 = vpop.f32.mrf.mxu0  ;;  %v1207_v55 = vpop.f32.mrf.mxu1 }
 0x328   :  { %2342 = vtanh.f32 %v1220_v45  ;;  %v1228_v51 = vmul.f32 0.5, %v1213_v47  ;;  %v1216_v54 = vadd.f32 %v1164_v50, %v3423_v53  ;;  %v1218_v9 = vadd.f32 %v1207_v55, %v3425_v28  ;;  %v3088_v50 = vld [vmem:[#allocation7 + $0xcc] ss:$16 sps:$4 sm:$0xff]   ;;  %v3096_v53 = vld [vmem:[#allocation7 + $0xc8] ss:$16 sps:$4 sm:$0xff]  }
 0x329   :  { %v1166_v56 = vpop.f32.mrf.mxu0  ;;  %v1209_v43 = vpop.f32.mrf.mxu1  ;;  %v1238_v12 = vmul.f32 0.5, %v1215_v29  ;;  %v3102_v55 = vld [vmem:[#allocation7 + $0xac] ss:$16 sps:$4 sm:$0xff]   ;;  %v3117_v28 = vld [vmem:[#allocation7 + $0x80] ss:$16 sps:$4 sm:$0xff]  }
 0x32a   :  { %2344 = vtanh.f32 %v1228_v51  ;;  %v1221_v57 = vmul.f32 0.5, %v1216_v54  ;;  %v1217_v59 = vadd.f32 %v1166_v56, %v3424_v58  ;;  %v1219_v17 = vadd.f32 %v1209_v43, %v3427_v21  ;;  %v3093_v51 = vld [vmem:[#allocation7 + $0xc0] ss:$16 sps:$4 sm:$0xff]   ;;  %v3099_v54 = vld [vmem:[#allocation7 + $0xa4] ss:$16 sps:$4 sm:$0xff]  }
 0x32b   :  { %2346 = vtanh.f32 %v1214_v49  ;;  %v3085_v49 = vld [vmem:[#allocation7 + $0xc4] ss:$16 sps:$4 sm:$0xff]   ;;  %v3105_v56 = vld [vmem:[#allocation7 + $0xa0] ss:$16 sps:$4 sm:$0xff]   ;;  %v3126_v43 = vld [vmem:[#allocation7 + $0x6c] ss:$16 sps:$4 sm:$0xff]  }
 0x32c   :  { %2348 = vtanh.f32 %v1221_v57  ;;  %v1229_v22 = vmul.f32 0.5, %v1217_v59  ;;  %v1239_v15 = vmul.f32 0.5, %v1219_v17  ;;  %v3108_v57 = vld [vmem:[#allocation7 + $0xa8] ss:$16 sps:$4 sm:$0xff]   ;;  %v3111_v58 = vld [vmem:[#allocation7 + $0x84] ss:$16 sps:$4 sm:$0xff]  }
 0x32d   :  { %v3114_v59 = vld [vmem:[#allocation7 + $0x8c] ss:$16 sps:$4 sm:$0xff]   ;;  %v3132_v29 = vld [vmem:[#allocation7 + $0x68] ss:$16 sps:$4 sm:$0xff]   ;;  %v3135_v21 = vld [vmem:[#allocation7 + $0x44] ss:$16 sps:$4 sm:$0xff]  }
 0x32e   :  { %2350 = vtanh.f32 %v1229_v22  ;;  %v3123_v22 = vld [vmem:[#allocation7 + $0x64] ss:$16 sps:$4 sm:$0xff]   ;;  %v3138_v17 = vld [vmem:[#allocation7 + $0x4c] ss:$16 sps:$4 sm:$0xff]  }
 0x32f   :  { %2352 = vtanh.f32 %v1218_v9  ;;  %v3120_v9 = vld [vmem:[#allocation7 + $0x88] ss:$16 sps:$4 sm:$0xff]  }
 0x330   :  { %2354 = vtanh.f32 %v1238_v12  ;;  %v3428_v12 = vld [vmem:[#allocation22_spill] sm:$0xff] }
 0x331   :  { %2356 = vtanh.f32 %v1239_v15 }
 0x335   :  { %v2343_v52 = vpop.eup %2342 }
 0x336   :  { %v1224_v13 = vmul.f32 0.5, %v2343_v52  ;;  %v3141_v52 = vld [vmem:[#allocation7 + $0x40] ss:$16 sps:$4 sm:$0xff]  }
 0x337   :  { %v2345_v8 = vpop.eup %2344 }
 0x338   :  { %v2347_v16 = vpop.eup %2346  ;;  %v1226_v11 = vadd.f32 0.5, %v1224_v13  ;;  %v1232_v23 = vmul.f32 0.5, %v2345_v8  ;;  %v3145_v13 = vld [vmem:[#allocation7 + $0x24] ss:$16 sps:$4 sm:$0xff]  }
 0x339   :  { %v2349_v25 = vpop.eup %2348 }
 0x33a   :  { %v1234_v14 = vadd.f32 0.5, %v1232_v23  ;;  %v1248_v20 = vmul.f32 %v2347_v16, %v1226_v11  ;;  %v1225_v33 = vmul.f32 0.5, %v2349_v25  ;;  %v3431_v25 = vld [vmem:[#allocation26_spill] sm:$0xff] }
 0x33b   :  { %v2351_v26 = vpop.eup %2350 }
 0x33c   :  { %v1246_v32 = vmul.f32 %v1234_v14, %v3012_v31  ;;  %v1227_v7 = vadd.f32 0.5, %v1225_v33  ;;  %v1233_v0 = vmul.f32 0.5, %v2351_v26  ;;  %v2353_v24 = vpop.eup %2352  ;;  %v3432_v26 = vld [vmem:[#allocation28_spill] sm:$0xff] }
 0x33d   :  { %v2355_v18 = vpop.eup %2354 }
 0x33e   :  { %v3069_v61 = vadd.f32 %v1248_v20, %v1246_v32  ;;  %v1235_v35 = vadd.f32 0.5, %v1233_v0  ;;  %v1249_v30 = vmul.f32 %v2353_v24, %v1227_v7  ;;  %v2357_v38 = vpop.eup %2356  ;;  %v1242_v39 = vmul.f32 0.5, %v2355_v18  ;;  %v3433_v7 = vld [vmem:[#allocation27_spill] sm:$0xff]  ;;  %v3435_v18 = vld [vmem:[#allocation29_spill] sm:$0xff] }
 0x33f   :  { %v1243_v31 = vmul.f32 0.5, %v2357_v38 }
 0x340   :  { %v1247_v6 = vmul.f32 %v1235_v35, %v3016_v34  ;;  %2358 = vtanh.f32 %v3069_v61  ;;  %v1244_v41 = vadd.f32 0.5, %v1242_v39  ;;  %v3079_v34 = vld [vmem:[#allocation7 + $0xe0] ss:$16 sps:$4 sm:$0xff]  }
 0x341   :  { %v1245_v42 = vadd.f32 0.5, %v1243_v31 }
 0x342   :  { %v3073_v10 = vadd.f32 %v1249_v30, %v1247_v6  ;;  %v3434_v30 = vld [vmem:[#allocation25_spill] sm:$0xff] }
 0x344   :  { %2360 = vtanh.f32 %v3073_v10 }
 0x34d   :  { %v2359_v40 = vpop.eup %2358 }
 0x34e   :  { %v1254_v45 = vmul.f32 %v2359_v40, %v1244_v41 }
 0x351   :  { %v2361_v44 = vpop.eup %2360 }
 0x352   :  { %v1255_v46 = vmul.f32 %v2361_v44, %v1245_v42 }
 0x354   :  { %v1256_v47 = vpack.c.bf16 %v1255_v46, %v1254_v45 }
 0x356   :  { %2186 = vst [vmem:[%s3362_s4 + $0x10] sm:$0xff] %v1256_v47   ;;  %1309 = vmatmul.mubr.bf16.vlgmr.msra.gmra.mxu0 %v1256_v47  ;;  %1352 = vmatmul.mubr.bf16.vlgmr.msra.gmra.mxu1 %v1256_v47 }
 0x357   :  { %1427 = vmatpush1.bf16.msra.mxu0 %v3079_v34  ;;  %1470 = vmatpush1.bf16.msra.mxu1 %v3082_v48 }
 0x358   :  { %1428 = vmatprep.subr.bf16.mxu0 %v3085_v49  ;;  %1471 = vmatprep.subr.bf16.mxu1 %v3088_v50 }
 0x359   :  { %1458 = vmatprep.mubr.bf16.mxu0 %v3416_v27  ;;  %1501 = vmatprep.mubr.bf16.mxu1 %v3416_v27 }
 0x35b   :  { %1429 = vmatpush1.bf16.msra.mxu0 %v3093_v51  ;;  %1472 = vmatpush1.bf16.msra.mxu1 %v3096_v53 }
 0x35c   :  { %1430 = vmatprep.subr.bf16.mxu0 %v3099_v54  ;;  %1473 = vmatprep.subr.bf16.mxu1 %v3102_v55 }
 0x35f   :  { %1431 = vmatpush1.bf16.msra.mxu0 %v3105_v56  ;;  %1474 = vmatpush1.bf16.msra.mxu1 %v3108_v57 }
 0x360   :  { %1432 = vmatprep.subr.bf16.mxu0 %v3111_v58  ;;  %1475 = vmatprep.subr.bf16.mxu1 %v3114_v59 }
 0x363   :  { %1433 = vmatpush1.bf16.msra.mxu0 %v3117_v28  ;;  %1476 = vmatpush1.bf16.msra.mxu1 %v3120_v9 }
 0x364   :  { %1434 = vmatprep.subr.bf16.mxu0 %v3123_v22  ;;  %1477 = vmatprep.subr.bf16.mxu1 %v3126_v43 }
 0x367   :  { %1435 = vmatpush1.bf16.msra.mxu0 %v3129_v19  ;;  %1478 = vmatpush1.bf16.msra.mxu1 %v3132_v29 }
 0x368   :  { %1436 = vmatprep.subr.bf16.mxu0 %v3135_v21  ;;  %1479 = vmatprep.subr.bf16.mxu1 %v3138_v17 }
 0x36b   :  { %1437 = vmatpush1.bf16.msra.mxu0 %v3141_v52  ;;  %1480 = vmatpush1.bf16.msra.mxu1 %v2661_v60 }
 0x36c   :  { %1438 = vmatprep.subr.bf16.mxu0 %v3145_v13  ;;  %1481 = vmatprep.subr.bf16.mxu1 %v2670_v63 }
 0x36f   :  { %1439 = vmatpush1.bf16.msra.mxu0 %v2668_v62  ;;  %1482 = vmatpush1.bf16.msra.mxu1 %v2676_v2  ;;  %v3429_v2 = vld [vmem:[#allocation24_spill] sm:$0xff] }
 0x370   :  { %1440 = vmatprep.subr.bf16.mxu0 %v2674_v1  ;;  %1483 = vmatprep.subr.bf16.mxu1 %v2678_v3  ;;  %v3430_v1 = vld [vmem:[#allocation23_spill] sm:$0xff] }
 0x373   :  { %1441 = vmatpush1.bf16.msra.mxu0 %v2684_v4  ;;  %1484 = vmatpush1.bf16.msra.mxu1 %v2688_v5 }
 0x374   :  { %1576 = vmatprep.subr.bf16.mxu0 %v3054_v36  ;;  %1619 = vmatprep.subr.bf16.mxu1 %v3057_v37 }
 0x416   :  { %v1310_v60 = vpop.f32.mrf.mxu0  ;;  %v1353_v8 = vpop.f32.mrf.mxu1 }
 0x417   :  { %v1362_v63 = vadd.f32 %v1310_v60, %v3428_v12  ;;  %v1364_v15 = vadd.f32 %v1353_v8, %v3430_v1 }
 0x418   :  { %v1312_v16 = vpop.f32.mrf.mxu0  ;;  %v1355_v62 = vpop.f32.mrf.mxu1 }
 0x419   :  { %v1370_v11 = vmul.f32 0.5, %v1362_v63  ;;  %v1363_v23 = vadd.f32 %v1312_v16, %v3429_v2  ;;  %v1365_v6 = vadd.f32 %v1355_v62, %v3434_v30  ;;  %v3206_v30 = vld [vmem:[#allocation7 + $0x20] ss:$16 sps:$4 sm:$0xff]  }
 0x41a   :  { %v1314_v3 = vpop.f32.mrf.mxu0  ;;  %v1357_v14 = vpop.f32.mrf.mxu1 }
 0x41b   :  { %2362 = vtanh.f32 %v1370_v11  ;;  %v1378_v4 = vmul.f32 0.5, %v1363_v23  ;;  %v1366_v5 = vadd.f32 %v1314_v3, %v3431_v25  ;;  %v1368_v0 = vadd.f32 %v1357_v14, %v3433_v7 }
 0x41c   :  { %v1316_v20 = vpop.f32.mrf.mxu0  ;;  %v1359_v35 = vpop.f32.mrf.mxu1  ;;  %v1388_v41 = vmul.f32 0.5, %v1365_v6  ;;  %v3209_v6 = vld [vmem:[#allocation7 + $0x28] ss:$16 sps:$4 sm:$0xff]  }
 0x41d   :  { %2364 = vtanh.f32 %v1378_v4  ;;  %v1371_v33 = vmul.f32 0.5, %v1366_v5  ;;  %v1367_v32 = vadd.f32 %v1316_v20, %v3432_v26  ;;  %v1369_v38 = vadd.f32 %v1359_v35, %v3435_v18  ;;  %v3203_v35 = vld [vmem:[#allocation7 + $0x2c] ss:$16 sps:$4 sm:$0xff]   ;;  %v3212_v18 = vld [vmem:[#allocation7 + $0x4] ss:$16 sps:$4 sm:$0xff]  }
 0x41e   :  { %2366 = vtanh.f32 %v1364_v15 }
 0x41f   :  { %2368 = vtanh.f32 %v1371_v33  ;;  %v1379_v24 = vmul.f32 0.5, %v1367_v32  ;;  %v1389_v46 = vmul.f32 0.5, %v1369_v38  ;;  %v3215_v38 = vld [vmem:[#allocation7 + $0xc] ss:$16 sps:$4 sm:$0xff]  }
 0x421   :  { %2370 = vtanh.f32 %v1379_v24 }
 0x422   :  { %2372 = vtanh.f32 %v1368_v0 }
 0x423   :  { %2374 = vtanh.f32 %v1388_v41 }
 0x424   :  { %2376 = vtanh.f32 %v1389_v46 }
 0x428   :  { %v2363_v39 = vpop.eup %2362 }
 0x429   :  { %v1374_v31 = vmul.f32 0.5, %v2363_v39  ;;  %v3218_v39 = vld [vmem:[#allocation7] ss:$16 sps:$4 sm:$0xff]  }
 0x42a   :  { %v2365_v40 = vpop.eup %2364 }
 0x42b   :  { %v2367_v42 = vpop.eup %2366  ;;  %v1376_v44 = vadd.f32 0.5, %v1374_v31  ;;  %v1382_v45 = vmul.f32 0.5, %v2365_v40  ;;  %v3221_v31 = vld [vmem:[#allocation7 + $0x8] ss:$16 sps:$4 sm:$0xff]  }
 0x42c   :  { %v2369_v47 = vpop.eup %2368 }
 0x42d   :  { %v1384_v60 = vadd.f32 0.5, %v1382_v45  ;;  %v1398_v8 = vmul.f32 %v2367_v42, %v1376_v44  ;;  %v1375_v12 = vmul.f32 0.5, %v2369_v47  ;;  %v3436_v42 = vld [vmem:[#allocation30_spill] sm:$0xff] }
 0x42e   :  { %v2371_v63 = vpop.eup %2370 }
 0x42f   :  { %v1396_v16 = vmul.f32 %v1384_v60, %v3069_v61  ;;  %v1377_v11 = vadd.f32 0.5, %v1375_v12  ;;  %v1383_v62 = vmul.f32 0.5, %v2371_v63  ;;  %v2373_v2 = vpop.eup %2372  ;;  %v3437_v60 = vld [vmem:[#allocation32_spill] sm:$0xff]  ;;  %v3438_v12 = vld [vmem:[#allocation31_spill] sm:$0xff] }
 0x430   :  { %v2375_v25 = vpop.eup %2374 }
 0x431   :  { %v3166_v23 = vadd.f32 %v1398_v8, %v1396_v16  ;;  %v1385_v1 = vadd.f32 0.5, %v1383_v62  ;;  %v1399_v15 = vmul.f32 %v2373_v2, %v1377_v11  ;;  %v2377_v5 = vpop.eup %2376  ;;  %v1392_v14 = vmul.f32 0.5, %v2375_v25  ;;  %v3439_v62 = vld [vmem:[#allocation34_spill] sm:$0xff]  ;;  %v3440_v25 = vld [vmem:[#allocation36_spill] sm:$0xff] }
 0x432   :  { %v1393_v61 = vmul.f32 0.5, %v2377_v5 }
 0x433   :  { %v1397_v3 = vmul.f32 %v1385_v1, %v3073_v10  ;;  %2378 = vtanh.f32 %v3166_v23  ;;  %v1394_v33 = vadd.f32 0.5, %v1392_v14  ;;  %v3199_v10 = vld [vmem:[#allocation7 + $0x48] ss:$16 sps:$4 sm:$0xff]   ;;  %v3441_v14 = vld [vmem:[#allocation35_spill] sm:$0xff] }
 0x434   :  { %v1395_v26 = vadd.f32 0.5, %v1393_v61 }
 0x435   :  { %v3170_v4 = vadd.f32 %v1399_v15, %v1397_v3 }
 0x437   :  { %2380 = vtanh.f32 %v3170_v4 }
 0x440   :  { %v2379_v20 = vpop.eup %2378 }
 0x441   :  { %v1404_v7 = vmul.f32 %v2379_v20, %v1394_v33 }
 0x444   :  { %v2381_v32 = vpop.eup %2380 }
 0x445   :  { %v1405_v0 = vmul.f32 %v2381_v32, %v1395_v26  ;;  %v3442_v26 = vld [vmem:[#allocation33_spill] sm:$0xff] }
 0x447   :  { %v1406_v24 = vpack.c.bf16 %v1405_v0, %v1404_v7  ;;  %v3443_v7 = vld [vmem:[#allocation37_spill] sm:$0xff] }
 0x449   :  { %2187 = vst [vmem:[%s3362_s4 + $0x18] sm:$0xff] %v1406_v24   ;;  %1459 = vmatmul.mubr.bf16.vlgmr.msra.gmra.mxu0 %v1406_v24  ;;  %1502 = vmatmul.mubr.bf16.vlgmr.msra.gmra.mxu1 %v1406_v24 }
 0x44a   :  { %1577 = vmatpush1.bf16.msra.mxu0 %v3079_v34  ;;  %1620 = vmatpush1.bf16.msra.mxu1 %v3082_v48 }
 0x44b   :  { %1578 = vmatprep.subr.bf16.mxu0 %v3085_v49  ;;  %1621 = vmatprep.subr.bf16.mxu1 %v3088_v50 }
 0x44c   :  { %1608 = vmatprep.mubr.bf16.mxu0 %v3416_v27  ;;  %1651 = vmatprep.mubr.bf16.mxu1 %v3416_v27 }
 0x44e   :  { %1579 = vmatpush1.bf16.msra.mxu0 %v3093_v51  ;;  %1622 = vmatpush1.bf16.msra.mxu1 %v3096_v53 }
 0x44f   :  { %1580 = vmatprep.subr.bf16.mxu0 %v3099_v54  ;;  %1623 = vmatprep.subr.bf16.mxu1 %v3102_v55 }
 0x452   :  { %1581 = vmatpush1.bf16.msra.mxu0 %v3105_v56  ;;  %1624 = vmatpush1.bf16.msra.mxu1 %v3108_v57 }
 0x453   :  { %1582 = vmatprep.subr.bf16.mxu0 %v3111_v58  ;;  %1625 = vmatprep.subr.bf16.mxu1 %v3114_v59 }
 0x456   :  { %1583 = vmatpush1.bf16.msra.mxu0 %v3117_v28  ;;  %1626 = vmatpush1.bf16.msra.mxu1 %v3120_v9 }
 0x457   :  { %1584 = vmatprep.subr.bf16.mxu0 %v3123_v22  ;;  %1627 = vmatprep.subr.bf16.mxu1 %v3126_v43 }
 0x45a   :  { %1585 = vmatpush1.bf16.msra.mxu0 %v3129_v19  ;;  %1628 = vmatpush1.bf16.msra.mxu1 %v3132_v29 }
 0x45b   :  { %1586 = vmatprep.subr.bf16.mxu0 %v3135_v21  ;;  %1629 = vmatprep.subr.bf16.mxu1 %v3138_v17 }
 0x45e   :  { %1587 = vmatpush1.bf16.msra.mxu0 %v3141_v52  ;;  %1630 = vmatpush1.bf16.msra.mxu1 %v3199_v10 }
 0x45f   :  { %1588 = vmatprep.subr.bf16.mxu0 %v3145_v13  ;;  %1631 = vmatprep.subr.bf16.mxu1 %v3203_v35 }
 0x462   :  { %1589 = vmatpush1.bf16.msra.mxu0 %v3206_v30  ;;  %1632 = vmatpush1.bf16.msra.mxu1 %v3209_v6 }
 0x463   :  { %1590 = vmatprep.subr.bf16.mxu0 %v3212_v18  ;;  %1633 = vmatprep.subr.bf16.mxu1 %v3215_v38 }
 0x466   :  { %1591 = vmatpush1.bf16.msra.mxu0 %v3218_v39  ;;  %1634 = vmatpush1.bf16.msra.mxu1 %v3221_v31 }
 0x467   :  { %1726 = vmatprep.subr.bf16.mxu0 %v3054_v36  ;;  %1769 = vmatprep.subr.bf16.mxu1 %v3057_v37 }
 0x509   :  { %v1460_v40 = vpop.f32.mrf.mxu0  ;;  %v1503_v41 = vpop.f32.mrf.mxu1 }
 0x50a   :  { %v1512_v44 = vadd.f32 %v1460_v40, %v3436_v42  ;;  %v1514_v63 = vadd.f32 %v1503_v41, %v3438_v12 }
 0x50b   :  { %v1462_v45 = vpop.f32.mrf.mxu0  ;;  %v1505_v46 = vpop.f32.mrf.mxu1 }
 0x50c   :  { %v1520_v47 = vmul.f32 0.5, %v1512_v44  ;;  %v1513_v8 = vadd.f32 %v1462_v45, %v3437_v60  ;;  %v1515_v32 = vadd.f32 %v1505_v46, %v3442_v26 }
 0x50d   :  { %v1464_v16 = vpop.f32.mrf.mxu0  ;;  %v1507_v1 = vpop.f32.mrf.mxu1 }
 0x50e   :  { %2382 = vtanh.f32 %v1520_v47  ;;  %v1528_v11 = vmul.f32 0.5, %v1513_v8  ;;  %v1516_v2 = vadd.f32 %v1464_v16, %v3439_v62  ;;  %v1518_v61 = vadd.f32 %v1507_v1, %v3441_v14 }
 0x50f   :  { %v1466_v15 = vpop.f32.mrf.mxu0  ;;  %v1509_v33 = vpop.f32.mrf.mxu1  ;;  %v1538_v42 = vmul.f32 0.5, %v1515_v32 }
 0x510   :  { %2384 = vtanh.f32 %v1528_v11  ;;  %v1521_v3 = vmul.f32 0.5, %v1516_v2  ;;  %v1517_v5 = vadd.f32 %v1466_v15, %v3440_v25  ;;  %v1519_v0 = vadd.f32 %v1509_v33, %v3443_v7 }
 0x511   :  { %2386 = vtanh.f32 %v1514_v63 }
 0x512   :  { %2388 = vtanh.f32 %v1521_v3  ;;  %v1529_v20 = vmul.f32 0.5, %v1517_v5  ;;  %v1539_v60 = vmul.f32 0.5, %v1519_v0 }
 0x514   :  { %2390 = vtanh.f32 %v1529_v20 }
 0x515   :  { %2392 = vtanh.f32 %v1518_v61 }
 0x516   :  { %2394 = vtanh.f32 %v1538_v42 }
 0x517   :  { %2396 = vtanh.f32 %v1539_v60 }
 0x51b   :  { %v2383_v24 = vpop.eup %2382 }
 0x51c   :  { %v1524_v40 = vmul.f32 0.5, %v2383_v24 }
 0x51d   :  { %v2385_v41 = vpop.eup %2384 }
 0x51e   :  { %v2387_v44 = vpop.eup %2386  ;;  %v1526_v45 = vadd.f32 0.5, %v1524_v40  ;;  %v1532_v47 = vmul.f32 0.5, %v2385_v41 }
 0x51f   :  { %v2389_v8 = vpop.eup %2388 }
 0x520   :  { %v1534_v12 = vadd.f32 0.5, %v1532_v47  ;;  %v1548_v63 = vmul.f32 %v2387_v44, %v1526_v45  ;;  %v1525_v16 = vmul.f32 0.5, %v2389_v8  ;;  %v3444_v44 = vld [vmem:[#allocation38_spill] sm:$0xff] }
 0x521   :  { %v2391_v11 = vpop.eup %2390 }
 0x522   :  { %v1546_v62 = vmul.f32 %v1534_v12, %v3166_v23  ;;  %v1527_v2 = vadd.f32 0.5, %v1525_v16  ;;  %v1533_v46 = vmul.f32 0.5, %v2391_v11  ;;  %v2393_v1 = vpop.eup %2392  ;;  %v3445_v12 = vld [vmem:[#allocation40_spill] sm:$0xff]  ;;  %v3446_v16 = vld [vmem:[#allocation39_spill] sm:$0xff] }
 0x523   :  { %v2395_v61 = vpop.eup %2394 }
 0x524   :  { %v3235_v15 = vadd.f32 %v1548_v63, %v1546_v62  ;;  %v1535_v3 = vadd.f32 0.5, %v1533_v46  ;;  %v1549_v25 = vmul.f32 %v2393_v1, %v1527_v2  ;;  %v2397_v20 = vpop.eup %2396  ;;  %v1542_v33 = vmul.f32 0.5, %v2395_v61  ;;  %v3447_v46 = vld [vmem:[#allocation42_spill] sm:$0xff]  ;;  %v3449_v61 = vld [vmem:[#allocation43_spill] sm:$0xff] }
 0x525   :  { %v1543_v23 = vmul.f32 0.5, %v2397_v20 }
 0x526   :  { %v1547_v5 = vmul.f32 %v1535_v3, %v3170_v4  ;;  %2398 = vtanh.f32 %v3235_v15  ;;  %v1544_v32 = vadd.f32 0.5, %v1542_v33 }
 0x527   :  { %v1545_v7 = vadd.f32 0.5, %v1543_v23 }
 0x528   :  { %v3239_v14 = vadd.f32 %v1549_v25, %v1547_v5  ;;  %v3448_v25 = vld [vmem:[#allocation44_spill] sm:$0xff] }
 0x52a   :  { %2400 = vtanh.f32 %v3239_v14 }
 0x533   :  { %v2399_v26 = vpop.eup %2398 }
 0x534   :  { %v1554_v24 = vmul.f32 %v2399_v26, %v1544_v32  ;;  %v3450_v26 = vld [vmem:[#allocation41_spill] sm:$0xff] }
 0x537   :  { %v2401_v0 = vpop.eup %2400 }
 0x538   :  { %v1555_v40 = vmul.f32 %v2401_v0, %v1545_v7  ;;  %v3451_v7 = vld [vmem:[#allocation45_spill] sm:$0xff] }
 0x53a   :  { %v1556_v41 = vpack.c.bf16 %v1555_v40, %v1554_v24 }
 0x53c   :  { %2188 = vst [vmem:[%s3362_s4 + $0x20] sm:$0xff] %v1556_v41   ;;  %1609 = vmatmul.mubr.bf16.vlgmr.msra.gmra.mxu0 %v1556_v41  ;;  %1652 = vmatmul.mubr.bf16.vlgmr.msra.gmra.mxu1 %v1556_v41 }
 0x53d   :  { %1727 = vmatpush1.bf16.msra.mxu0 %v3079_v34  ;;  %1770 = vmatpush1.bf16.msra.mxu1 %v3082_v48 }
 0x53e   :  { %1728 = vmatprep.subr.bf16.mxu0 %v3085_v49  ;;  %1771 = vmatprep.subr.bf16.mxu1 %v3088_v50 }
 0x53f   :  { %1758 = vmatprep.mubr.bf16.mxu0 %v3416_v27  ;;  %1801 = vmatprep.mubr.bf16.mxu1 %v3416_v27 }
 0x541   :  { %1729 = vmatpush1.bf16.msra.mxu0 %v3093_v51  ;;  %1772 = vmatpush1.bf16.msra.mxu1 %v3096_v53 }
 0x542   :  { %1730 = vmatprep.subr.bf16.mxu0 %v3099_v54  ;;  %1773 = vmatprep.subr.bf16.mxu1 %v3102_v55 }
 0x545   :  { %1731 = vmatpush1.bf16.msra.mxu0 %v3105_v56  ;;  %1774 = vmatpush1.bf16.msra.mxu1 %v3108_v57 }
 0x546   :  { %1732 = vmatprep.subr.bf16.mxu0 %v3111_v58  ;;  %1775 = vmatprep.subr.bf16.mxu1 %v3114_v59 }
 0x549   :  { %1733 = vmatpush1.bf16.msra.mxu0 %v3117_v28  ;;  %1776 = vmatpush1.bf16.msra.mxu1 %v3120_v9 }
 0x54a   :  { %1734 = vmatprep.subr.bf16.mxu0 %v3123_v22  ;;  %1777 = vmatprep.subr.bf16.mxu1 %v3126_v43 }
 0x54d   :  { %1735 = vmatpush1.bf16.msra.mxu0 %v3129_v19  ;;  %1778 = vmatpush1.bf16.msra.mxu1 %v3132_v29 }
 0x54e   :  { %1736 = vmatprep.subr.bf16.mxu0 %v3135_v21  ;;  %1779 = vmatprep.subr.bf16.mxu1 %v3138_v17 }
 0x551   :  { %1737 = vmatpush1.bf16.msra.mxu0 %v3141_v52  ;;  %1780 = vmatpush1.bf16.msra.mxu1 %v3199_v10 }
 0x552   :  { %1738 = vmatprep.subr.bf16.mxu0 %v3145_v13  ;;  %1781 = vmatprep.subr.bf16.mxu1 %v3203_v35 }
 0x555   :  { %1739 = vmatpush1.bf16.msra.mxu0 %v3206_v30  ;;  %1782 = vmatpush1.bf16.msra.mxu1 %v3209_v6 }
 0x556   :  { %1740 = vmatprep.subr.bf16.mxu0 %v3212_v18  ;;  %1783 = vmatprep.subr.bf16.mxu1 %v3215_v38 }
 0x559   :  { %1741 = vmatpush1.bf16.msra.mxu0 %v3218_v39  ;;  %1784 = vmatpush1.bf16.msra.mxu1 %v3221_v31 }
 0x55a   :  { %1876 = vmatprep.subr.bf16.mxu0 %v3054_v36  ;;  %1919 = vmatprep.subr.bf16.mxu1 %v3057_v37 }
 0x5fc   :  { %v1610_v4 = vpop.f32.mrf.mxu0  ;;  %v1653_v42 = vpop.f32.mrf.mxu1 }
 0x5fd   :  { %v1662_v45 = vadd.f32 %v1610_v4, %v3444_v44  ;;  %v1664_v11 = vadd.f32 %v1653_v42, %v3446_v16 }
 0x5fe   :  { %v1612_v47 = vpop.f32.mrf.mxu0  ;;  %v1655_v60 = vpop.f32.mrf.mxu1 }
 0x5ff   :  { %v1670_v8 = vmul.f32 0.5, %v1662_v45  ;;  %v1663_v63 = vadd.f32 %v1612_v47, %v3445_v12  ;;  %v1665_v32 = vadd.f32 %v1655_v60, %v3450_v26 }
 0x600   :  { %v1614_v62 = vpop.f32.mrf.mxu0  ;;  %v1657_v3 = vpop.f32.mrf.mxu1 }
 0x601   :  { %2402 = vtanh.f32 %v1670_v8  ;;  %v1678_v2 = vmul.f32 0.5, %v1663_v63  ;;  %v1666_v1 = vadd.f32 %v1614_v62, %v3447_v46  ;;  %v1668_v20 = vadd.f32 %v1657_v3, %v3449_v61 }
 0x602   :  { %v1616_v36 = vpop.f32.mrf.mxu0  ;;  %v1659_v23 = vpop.f32.mrf.mxu1  ;;  %v1688_v4 = vmul.f32 0.5, %v1665_v32 }
 0x603   :  { %2404 = vtanh.f32 %v1678_v2  ;;  %v1671_v37 = vmul.f32 0.5, %v1666_v1  ;;  %v1667_v5 = vadd.f32 %v1616_v36, %v3448_v25  ;;  %v1669_v0 = vadd.f32 %v1659_v23, %v3451_v7 }
 0x604   :  { %2406 = vtanh.f32 %v1664_v11 }
 0x605   :  { %2408 = vtanh.f32 %v1671_v37  ;;  %v1679_v33 = vmul.f32 0.5, %v1667_v5  ;;  %v1689_v47 = vmul.f32 0.5, %v1669_v0 }
 0x607   :  { %2410 = vtanh.f32 %v1679_v33 }
 0x608   :  { %2412 = vtanh.f32 %v1668_v20 }
 0x609   :  { %2414 = vtanh.f32 %v1688_v4 }
 0x60a   :  { %2416 = vtanh.f32 %v1689_v47 }
 0x60e   :  { %v2403_v24 = vpop.eup %2402 }
 0x60f   :  { %v1674_v40 = vmul.f32 0.5, %v2403_v24 }
 0x610   :  { %v2405_v41 = vpop.eup %2404 }
 0x611   :  { %v2407_v42 = vpop.eup %2406  ;;  %v1676_v44 = vadd.f32 0.5, %v1674_v40  ;;  %v1682_v45 = vmul.f32 0.5, %v2405_v41 }
 0x612   :  { %v2409_v8 = vpop.eup %2408 }
 0x613   :  { %v1684_v12 = vadd.f32 0.5, %v1682_v45  ;;  %v1698_v63 = vmul.f32 %v2407_v42, %v1676_v44  ;;  %v1675_v16 = vmul.f32 0.5, %v2409_v8 }
 0x614   :  { %v2411_v11 = vpop.eup %2410 }
 0x615   :  { %v1696_v62 = vmul.f32 %v1684_v12, %v3235_v15  ;;  %v1677_v2 = vadd.f32 0.5, %v1675_v16  ;;  %v1683_v60 = vmul.f32 0.5, %v2411_v11  ;;  %v2413_v46 = vpop.eup %2412 }
 0x616   :  { %v2415_v5 = vpop.eup %2414 }
 0x617   :  { %v3288_v1 = vadd.f32 %v1698_v63, %v1696_v62  ;;  %v1685_v3 = vadd.f32 0.5, %v1683_v60  ;;  %v1699_v36 = vmul.f32 %v2413_v46, %v1677_v2  ;;  %v2417_v61 = vpop.eup %2416  ;;  %v1692_v20 = vmul.f32 0.5, %v2415_v5 }
 0x618   :  { %v1693_v15 = vmul.f32 0.5, %v2417_v61 }
 0x619   :  { %v1697_v37 = vmul.f32 %v1685_v3, %v3239_v14  ;;  %2418 = vtanh.f32 %v3288_v1  ;;  %v1694_v23 = vadd.f32 0.5, %v1692_v20 }
 0x61a   :  { %v1695_v26 = vadd.f32 0.5, %v1693_v15 }
 0x61b   :  { %v3292_v25 = vadd.f32 %v1699_v36, %v1697_v37 }
 0x61d   :  { %2420 = vtanh.f32 %v3292_v25 }
 0x626   :  { %v2419_v33 = vpop.eup %2418 }
 0x627   :  { %v1704_v7 = vmul.f32 %v2419_v33, %v1694_v23 }
 0x62a   :  { %v2421_v32 = vpop.eup %2420 }
 0x62b   :  { %v1705_v0 = vmul.f32 %v2421_v32, %v1695_v26 }
 0x62d   :  { %v1706_v24 = vpack.c.bf16 %v1705_v0, %v1704_v7 }
 0x62f   :  { %2189 = vst [vmem:[%s3362_s4 + $0x28] sm:$0xff] %v1706_v24   ;;  %1759 = vmatmul.mubr.bf16.vlgmr.msra.gmra.mxu0 %v1706_v24  ;;  %1802 = vmatmul.mubr.bf16.vlgmr.msra.gmra.mxu1 %v1706_v24  ;;  %v3460_v24 = vld [vmem:[#allocation54_spill] sm:$0xff] }
 0x630   :  { %1877 = vmatpush1.bf16.msra.mxu0 %v3079_v34  ;;  %1920 = vmatpush1.bf16.msra.mxu1 %v3082_v48  ;;  %v3452_v48 = vld [vmem:[#allocation46_spill] sm:$0xff] }
 0x631   :  { %1878 = vmatprep.subr.bf16.mxu0 %v3085_v49  ;;  %1921 = vmatprep.subr.bf16.mxu1 %v3088_v50 }
 0x632   :  { %1908 = vmatprep.mubr.bf16.mxu0 %v3416_v27  ;;  %1951 = vmatprep.mubr.bf16.mxu1 %v3416_v27 }
 0x634   :  { %1879 = vmatpush1.bf16.msra.mxu0 %v3093_v51  ;;  %1922 = vmatpush1.bf16.msra.mxu1 %v3096_v53 }
 0x635   :  { %1880 = vmatprep.subr.bf16.mxu0 %v3099_v54  ;;  %1923 = vmatprep.subr.bf16.mxu1 %v3102_v55  ;;  %v3453_v54 = vld [vmem:[#allocation48_spill] sm:$0xff] }
 0x638   :  { %1881 = vmatpush1.bf16.msra.mxu0 %v3105_v56  ;;  %1924 = vmatpush1.bf16.msra.mxu1 %v3108_v57  ;;  %v3454_v56 = vld [vmem:[#allocation47_spill] sm:$0xff] }
 0x639   :  { %1882 = vmatprep.subr.bf16.mxu0 %v3111_v58  ;;  %1925 = vmatprep.subr.bf16.mxu1 %v3114_v59 }
 0x63c   :  { %1883 = vmatpush1.bf16.msra.mxu0 %v3117_v28  ;;  %1926 = vmatpush1.bf16.msra.mxu1 %v3120_v9  ;;  %v3455_v28 = vld [vmem:[#allocation50_spill] sm:$0xff] }
 0x63d   :  { %1884 = vmatprep.subr.bf16.mxu0 %v3123_v22  ;;  %1927 = vmatprep.subr.bf16.mxu1 %v3126_v43 }
 0x640   :  { %1885 = vmatpush1.bf16.msra.mxu0 %v3129_v19  ;;  %1928 = vmatpush1.bf16.msra.mxu1 %v3132_v29  ;;  %v3456_v29 = vld [vmem:[#allocation52_spill] sm:$0xff] }
 0x641   :  { %1886 = vmatprep.subr.bf16.mxu0 %v3135_v21  ;;  %1929 = vmatprep.subr.bf16.mxu1 %v3138_v17  ;;  %v3457_v17 = vld [vmem:[#allocation51_spill] sm:$0xff] }
 0x644   :  { %1887 = vmatpush1.bf16.msra.mxu0 %v3141_v52  ;;  %1930 = vmatpush1.bf16.msra.mxu1 %v3199_v10 }
 0x645   :  { %1888 = vmatprep.subr.bf16.mxu0 %v3145_v13  ;;  %1931 = vmatprep.subr.bf16.mxu1 %v3203_v35  ;;  %v3458_v35 = vld [vmem:[#allocation49_spill] sm:$0xff] }
 0x648   :  { %1889 = vmatpush1.bf16.msra.mxu0 %v3206_v30  ;;  %1932 = vmatpush1.bf16.msra.mxu1 %v3209_v6  ;;  %v3459_v6 = vld [vmem:[#allocation53_spill] sm:$0xff] }
 0x649   :  { %1890 = vmatprep.subr.bf16.mxu0 %v3212_v18  ;;  %1933 = vmatprep.subr.bf16.mxu1 %v3215_v38 }
 0x64c   :  { %1891 = vmatpush1.bf16.msra.mxu0 %v3218_v39  ;;  %1934 = vmatpush1.bf16.msra.mxu1 %v3221_v31 }
 0x6ef   :  { %v1760_v27 = vpop.f32.mrf.mxu0  ;;  %v1803_v34 = vpop.f32.mrf.mxu1 }
 0x6f0   :  { %v1812_v49 = vadd.f32 %v1760_v27, %v3452_v48  ;;  %v1814_v57 = vadd.f32 %v1803_v34, %v3454_v56 }
 0x6f1   :  { %v1762_v50 = vpop.f32.mrf.mxu0  ;;  %v1805_v51 = vpop.f32.mrf.mxu1 }
 0x6f2   :  { %v1820_v53 = vmul.f32 0.5, %v1812_v49  ;;  %v1813_v55 = vadd.f32 %v1762_v50, %v3453_v54  ;;  %v1815_v30 = vadd.f32 %v1805_v51, %v3458_v35  ;;  %v3461_v50 = vld [vmem:[#allocation56_spill] sm:$0xff]  ;;  %v3467_v35 = vld [vmem:[#allocation61_spill] sm:$0xff] }
 0x6f3   :  { %v1764_v58 = vpop.f32.mrf.mxu0  ;;  %v1807_v22 = vpop.f32.mrf.mxu1 }
 0x6f4   :  { %2422 = vtanh.f32 %v1820_v53  ;;  %v1828_v59 = vmul.f32 0.5, %v1813_v55  ;;  %v1816_v9 = vadd.f32 %v1764_v58, %v3455_v28  ;;  %v1818_v52 = vadd.f32 %v1807_v22, %v3457_v17  ;;  %v3462_v53 = vld [vmem:[#allocation55_spill] sm:$0xff]  ;;  %v3464_v22 = vld [vmem:[#allocation60_spill] sm:$0xff]  ;;  %v3466_v17 = vld [vmem:[#allocation57_spill] sm:$0xff] }
 0x6f5   :  { %v1766_v43 = vpop.f32.mrf.mxu0  ;;  %v1809_v10 = vpop.f32.mrf.mxu1  ;;  %v1838_v14 = vmul.f32 0.5, %v1815_v30 }
 0x6f6   :  { %2424 = vtanh.f32 %v1828_v59  ;;  %v1821_v19 = vmul.f32 0.5, %v1816_v9  ;;  %v1817_v21 = vadd.f32 %v1766_v43, %v3456_v29  ;;  %v1819_v18 = vadd.f32 %v1809_v10, %v3459_v6 }
 0x6f7   :  { %2426 = vtanh.f32 %v1814_v57  ;;  %v3463_v57 = vld [vmem:[#allocation58_spill] sm:$0xff] }
 0x6f8   :  { %2428 = vtanh.f32 %v1821_v19  ;;  %v1829_v13 = vmul.f32 0.5, %v1817_v21  ;;  %v1839_v42 = vmul.f32 0.5, %v1819_v18  ;;  %v3465_v19 = vld [vmem:[#allocation59_spill] sm:$0xff] }
 0x6fa   :  { %2430 = vtanh.f32 %v1829_v13 }
 0x6fb   :  { %2432 = vtanh.f32 %v1818_v52 }
 0x6fc   :  { %2434 = vtanh.f32 %v1838_v14 }
 0x6fd   :  { %2436 = vtanh.f32 %v1839_v42 }
 0x701   :  { %v2423_v38 = vpop.eup %2422 }
 0x702   :  { %v1824_v39 = vmul.f32 0.5, %v2423_v38 }
 0x703   :  { %v2425_v31 = vpop.eup %2424 }
 0x704   :  { %v2427_v40 = vpop.eup %2426  ;;  %v1826_v41 = vadd.f32 0.5, %v1824_v39  ;;  %v1832_v4 = vmul.f32 0.5, %v2425_v31 }
 0x705   :  { %v2429_v44 = vpop.eup %2428 }
 0x706   :  { %v1834_v45 = vadd.f32 0.5, %v1832_v4  ;;  %v1848_v47 = vmul.f32 %v2427_v40, %v1826_v41  ;;  %v1825_v8 = vmul.f32 0.5, %v2429_v44 }
 0x707   :  { %v2431_v12 = vpop.eup %2430 }
 0x708   :  { %v1846_v63 = vmul.f32 %v1834_v45, %v3288_v1  ;;  %v1827_v16 = vadd.f32 0.5, %v1825_v8  ;;  %v1833_v11 = vmul.f32 0.5, %v2431_v12  ;;  %v2433_v62 = vpop.eup %2432 }
 0x709   :  { %v2435_v37 = vpop.eup %2434 }
 0x70a   :  { %v1850_v2 = vadd.f32 %v1848_v47, %v1846_v63  ;;  %v1835_v60 = vadd.f32 0.5, %v1833_v11  ;;  %v1849_v46 = vmul.f32 %v2433_v62, %v1827_v16  ;;  %v2437_v5 = vpop.eup %2436  ;;  %v1842_v61 = vmul.f32 0.5, %v2435_v37 }
 0x70b   :  { %v1843_v20 = vmul.f32 0.5, %v2437_v5 }
 0x70c   :  { %v1847_v3 = vmul.f32 %v1835_v60, %v3292_v25  ;;  %2438 = vtanh.f32 %v1850_v2  ;;  %v1844_v1 = vadd.f32 0.5, %v1842_v61 }
 0x70d   :  { %v1845_v33 = vadd.f32 0.5, %v1843_v20 }
 0x70e   :  { %v3340_v36 = vadd.f32 %v1849_v46, %v1847_v3 }
 0x710   :  { %2440 = vtanh.f32 %v3340_v36 }
 0x719   :  { %v2439_v15 = vpop.eup %2438 }
 0x71a   :  { %v1854_v26 = vmul.f32 %v2439_v15, %v1844_v1 }
 0x71d   :  { %v2441_v23 = vpop.eup %2440 }
 0x71e   :  { %v1855_v32 = vmul.f32 %v2441_v23, %v1845_v33 }
 0x720   :  { %v1856_v7 = vpack.c.bf16 %v1855_v32, %v1854_v26 }
 0x722   :  { %2190 = vst [vmem:[%s3362_s4 + $0x30] sm:$0xff] %v1856_v7   ;;  %1909 = vmatmul.mubr.bf16.vlgmr.msra.gmra.mxu0 %v1856_v7  ;;  %1952 = vmatmul.mubr.bf16.vlgmr.msra.gmra.mxu1 %v1856_v7 }
 0x7e2   :  { %v1910_v25 = vpop.f32.mrf.mxu0  ;;  %v1953_v0 = vpop.f32.mrf.mxu1 }
 0x7e3   :  { %v1962_v27 = vadd.f32 %v1910_v25, %v3460_v24  ;;  %v1964_v54 = vadd.f32 %v1953_v0, %v3462_v53 }
 0x7e4   :  { %v1912_v34 = vpop.f32.mrf.mxu0  ;;  %v1955_v48 = vpop.f32.mrf.mxu1 }
 0x7e5   :  { %v1970_v49 = vmul.f32 0.5, %v1962_v27  ;;  %v1963_v51 = vadd.f32 %v1912_v34, %v3461_v50  ;;  %v1965_v52 = vadd.f32 %v1955_v48, %v3466_v17 }
 0x7e6   :  { %v1914_v55 = vpop.f32.mrf.mxu0  ;;  %v1957_v59 = vpop.f32.mrf.mxu1 }
 0x7e7   :  { %2442 = vtanh.f32 %v1970_v49  ;;  %v1978_v56 = vmul.f32 0.5, %v1963_v51  ;;  %v1966_v58 = vadd.f32 %v1914_v55, %v3463_v57  ;;  %v1968_v29 = vadd.f32 %v1957_v59, %v3465_v19 }
 0x7e8   :  { %v1916_v28 = vpop.f32.mrf.mxu0  ;;  %v1959_v13 = vpop.f32.mrf.mxu1  ;;  %v1988_v10 = vmul.f32 0.5, %v1965_v52 }
 0x7e9   :  { %2444 = vtanh.f32 %v1978_v56  ;;  %v1971_v9 = vmul.f32 0.5, %v1966_v58  ;;  %v1967_v43 = vadd.f32 %v1916_v28, %v3464_v22  ;;  %v1969_v30 = vadd.f32 %v1959_v13, %v3467_v35 }
 0x7ea   :  { %2446 = vtanh.f32 %v1964_v54 }
 0x7eb   :  { %2448 = vtanh.f32 %v1971_v9  ;;  %v1979_v21 = vmul.f32 0.5, %v1967_v43  ;;  %v1989_v40 = vmul.f32 0.5, %v1969_v30 }
 0x7ed   :  { %2450 = vtanh.f32 %v1979_v21 }
 0x7ee   :  { %2452 = vtanh.f32 %v1968_v29 }
 0x7ef   :  { %2454 = vtanh.f32 %v1988_v10 }
 0x7f0   :  { %2456 = vtanh.f32 %v1989_v40 }
 0x7f4   :  { %v2443_v6 = vpop.eup %2442 }
 0x7f5   :  { %v1974_v18 = vmul.f32 0.5, %v2443_v6 }
 0x7f6   :  { %v2445_v38 = vpop.eup %2444 }
 0x7f7   :  { %v2447_v39 = vpop.eup %2446  ;;  %v1976_v31 = vadd.f32 0.5, %v1974_v18  ;;  %v1982_v14 = vmul.f32 0.5, %v2445_v38 }
 0x7f8   :  { %v2449_v41 = vpop.eup %2448 }
 0x7f9   :  { %v1984_v4 = vadd.f32 0.5, %v1982_v14  ;;  %v1998_v42 = vmul.f32 %v2447_v39, %v1976_v31  ;;  %v1975_v44 = vmul.f32 0.5, %v2449_v41 }
 0x7fa   :  { %v2451_v45 = vpop.eup %2450 }
 0x7fb   :  { %v1996_v47 = vmul.f32 %v1984_v4, %v1850_v2  ;;  %v1977_v8 = vadd.f32 0.5, %v1975_v44  ;;  %v1983_v12 = vmul.f32 0.5, %v2451_v45  ;;  %v2453_v63 = vpop.eup %2452 }
 0x7fc   :  { %v2455_v3 = vpop.eup %2454 }
 0x7fd   :  { %v2000_v16 = vadd.f32 %v1998_v42, %v1996_v47  ;;  %v1985_v11 = vadd.f32 0.5, %v1983_v12  ;;  %v1999_v62 = vmul.f32 %v2453_v63, %v1977_v8  ;;  %v1992_v37 = vmul.f32 0.5, %v2455_v3  ;;  %v2457_v5 = vpop.eup %2456 }
 0x7fe   :  { %v1993_v20 = vmul.f32 0.5, %v2457_v5 }
 0x7ff   :  { %2458 = vtanh.f32 %v2000_v16  ;;  %v1997_v60 = vmul.f32 %v1985_v11, %v3340_v36  ;;  %v1994_v61 = vadd.f32 0.5, %v1992_v37 }
 0x800   :  { %v1995_v2 = vadd.f32 0.5, %v1993_v20 }
 0x801   :  { %v2001_v46 = vadd.f32 %v1999_v62, %v1997_v60 }
 0x803   :  { %2460 = vtanh.f32 %v2001_v46 }
 0x80c   :  { %v2459_v15 = vpop.eup %2458 }
 0x80d   :  { %v2004_v1 = vmul.f32 %v2459_v15, %v1994_v61 }
 0x810   :  { %v2461_v33 = vpop.eup %2460 }
 0x811   :  { %v2005_v23 = vmul.f32 %v2461_v33, %v1995_v2 }
 0x813   :  { %v2183_v26 = vpack.c.bf16 %v2005_v23, %v2004_v1 }
 0x815   :  { %2191 = vst [vmem:[%s3362_s4 + $0x38] sm:$0xff] %v2183_v26  }
 0x816   :  { %2025 = vsyncpa [#allocation6], 1 }
 0x817   :  { %2026 = vsyncpa [#allocation8], 1 }

// kernel: lstm_forward.3
= control target key start
LH: loop header
LB: loop body
LE: loop exit
PB: predicated region body
PF: predicated region fallthrough
CT: control target
= control target key end

     0   :  { %v3589_v1 = vmov 0   ;;  %vm2462_vm0 = vmmov 0   ;;  %s3582_s1 = inlined_call_operand.vmem [shape: bf16[128,512], index: 1, kind: input, shape index: {}]   ;;  %s3583_s0 = inlined_call_operand.vmem [shape: bf16[8,16,128], index: 0, kind: input, shape index: {}]   ;;  %s3584_s3 = inlined_call_operand.vmem [shape: bf16[128,512], index: 3, kind: input, shape index: {}]   ;;  %s3585_s2 = inlined_call_operand.vmem [shape: f32[1,512], index: 2, kind: input, shape index: {}]   ;;  %s3586_s4 = inlined_call_operand.vmem [shape: bf16[128,128], index: 4, kind: input, shape index: {}]   ;;  %s3587_s5 = inlined_call_operand.vmem [shape: f32[1,128], index: 5, kind: input, shape index: {}]   ;;  %s3588_s6 = inlined_call_operand.vmem [shape: f32[16,128], index: 6, kind: output, shape index: {}]  }
   0x1   :  { %v2155_v0 = vld [vmem:[%s3582_s1 + $0xe4] ss:$16 sps:$4 sm:$0xff]   ;;  %342 = vmatprep.mubr.bf16.mxu0 %v3589_v1  ;;  %455 = vmatprep.mubr.bf16.mxu1 %v3589_v1  ;;  %v2157_v2 = vld [vmem:[%s3582_s1 + $0xec] ss:$16 sps:$4 sm:$0xff]   ;;  %v2159_v3 = vld [vmem:[%s3582_s1 + $0xe0] ss:$16 sps:$4 sm:$0xff]  }
   0x2   :  { %310 = vmatprep.subr.bf16.mxu0 %v2155_v0  ;;  %v2160_v4 = vld [vmem:[%s3582_s1 + $0xe8] ss:$16 sps:$4 sm:$0xff]   ;;  %423 = vmatprep.subr.bf16.mxu1 %v2157_v2  ;;  %v2161_v5 = vld [vmem:[%s3582_s1 + $0xc4] ss:$16 sps:$4 sm:$0xff]   ;;  %v2163_v6 = vld [vmem:[%s3582_s1 + $0xcc] ss:$16 sps:$4 sm:$0xff]  }
   0x3   :  { %311 = vmatpush1.bf16.msra.mxu0 %v2159_v3  ;;  %424 = vmatpush1.bf16.msra.mxu1 %v2160_v4  ;;  %v2165_v7 = vld [vmem:[%s3582_s1 + $0xc0] ss:$16 sps:$4 sm:$0xff]   ;;  %v2166_v8 = vld [vmem:[%s3582_s1 + $0xc8] ss:$16 sps:$4 sm:$0xff]   ;;  %v2167_v9 = vld [vmem:[%s3582_s1 + $0xa4] ss:$16 sps:$4 sm:$0xff]  }
   0x4   :  { %312 = vmatprep.subr.bf16.mxu0 %v2161_v5  ;;  %425 = vmatprep.subr.bf16.mxu1 %v2163_v6  ;;  %v2169_v10 = vld [vmem:[%s3582_s1 + $0xac] ss:$16 sps:$4 sm:$0xff]   ;;  %v2171_v11 = vld [vmem:[%s3582_s1 + $0xa0] ss:$16 sps:$4 sm:$0xff]   ;;  %v2172_v12 = vld [vmem:[%s3582_s1 + $0xa8] ss:$16 sps:$4 sm:$0xff]  }
   0x5   :  { %v2173_v13 = vld [vmem:[%s3582_s1 + $0x84] ss:$16 sps:$4 sm:$0xff]   ;;  %v2175_v14 = vld [vmem:[%s3582_s1 + $0x8c] ss:$16 sps:$4 sm:$0xff]   ;;  %v2177_v15 = vld [vmem:[%s3582_s1 + $0x80] ss:$16 sps:$4 sm:$0xff]  }
   0x6   :  { %v2178_v16 = vld [vmem:[%s3582_s1 + $0x88] ss:$16 sps:$4 sm:$0xff]   ;;  %v2179_v17 = vld [vmem:[%s3582_s1 + $0x64] ss:$16 sps:$4 sm:$0xff]   ;;  %v2181_v18 = vld [vmem:[%s3582_s1 + $0x6c] ss:$16 sps:$4 sm:$0xff]  }
   0x7   :  { %313 = vmatpush1.bf16.msra.mxu0 %v2165_v7  ;;  %426 = vmatpush1.bf16.msra.mxu1 %v2166_v8  ;;  %v2183_v19 = vld [vmem:[%s3582_s1 + $0x60] ss:$16 sps:$4 sm:$0xff]   ;;  %v2184_v20 = vld [vmem:[%s3582_s1 + $0x68] ss:$16 sps:$4 sm:$0xff]   ;;  %v2185_v21 = vld [vmem:[%s3582_s1 + $0x44] ss:$16 sps:$4 sm:$0xff]  }
   0x8   :  { %314 = vmatprep.subr.bf16.mxu0 %v2167_v9  ;;  %427 = vmatprep.subr.bf16.mxu1 %v2169_v10  ;;  %v2187_v22 = vld [vmem:[%s3582_s1 + $0x4c] ss:$16 sps:$4 sm:$0xff]   ;;  %v2189_v23 = vld [vmem:[%s3582_s1 + $0x40] ss:$16 sps:$4 sm:$0xff]   ;;  %v2190_v24 = vld [vmem:[%s3582_s1 + $0x48] ss:$16 sps:$4 sm:$0xff]  }
   0x9   :  { %v2191_v25 = vld [vmem:[%s3582_s1 + $0x24] ss:$16 sps:$4 sm:$0xff]   ;;  %v2193_v26 = vld [vmem:[%s3582_s1 + $0x2c] ss:$16 sps:$4 sm:$0xff]   ;;  %v2195_v27 = vld [vmem:[%s3582_s1 + $0x20] ss:$16 sps:$4 sm:$0xff]  }
   0xa   :  { %v2196_v28 = vld [vmem:[%s3582_s1 + $0x28] ss:$16 sps:$4 sm:$0xff]   ;;  %v2197_v29 = vld [vmem:[%s3582_s1 + $0x4] ss:$16 sps:$4 sm:$0xff]   ;;  %v2199_v30 = vld [vmem:[%s3582_s1 + $0xc] ss:$16 sps:$4 sm:$0xff]  }
   0xb   :  { %315 = vmatpush1.bf16.msra.mxu0 %v2171_v11  ;;  %428 = vmatpush1.bf16.msra.mxu1 %v2172_v12  ;;  %v2201_v31 = vld [vmem:[%s3582_s1] ss:$16 sps:$4 sm:$0xff]   ;;  %v2202_v32 = vld [vmem:[%s3582_s1 + $0x8] ss:$16 sps:$4 sm:$0xff]   ;;  %v2599_v33 = vld [vmem:[%s3584_s3 + $0xe4] ss:$16 sps:$4 sm:$0xff]   ;;  %v82_v11 = vlaneseq }
   0xc   :  { %316 = vmatprep.subr.bf16.mxu0 %v2173_v13  ;;  %429 = vmatprep.subr.bf16.mxu1 %v2175_v14  ;;  %v2604_v34 = vld [vmem:[%s3584_s3 + $0xec] ss:$16 sps:$4 sm:$0xff]   ;;  %v2203_v35 = vld [vmem:[%s3583_s0] sm:$0xff]   ;;  %v2624_v38 = vld [vmem:[%s3584_s3 + $0xe8] ss:$16 sps:$4 sm:$0xff]   ;;  %v2460_v10 = vmov 0.0|0.0  }
   0xd   :  { %v2612_v36 = vld [vmem:[%s3584_s3 + $0xe0] ss:$16 sps:$4 sm:$0xff]   ;;  %v2618_v37 = vld [vmem:[%s3584_s3 + $0xc4] ss:$16 sps:$4 sm:$0xff]   ;;  %v2629_v39 = vld [vmem:[%s3584_s3 + $0xcc] ss:$16 sps:$4 sm:$0xff]  }
   0xe   :  { %v2636_v40 = vld [vmem:[%s3584_s3 + $0xc0] ss:$16 sps:$4 sm:$0xff]   ;;  %v2643_v41 = vld [vmem:[%s3584_s3 + $0xa4] ss:$16 sps:$4 sm:$0xff]   ;;  %v2649_v42 = vld [vmem:[%s3584_s3 + $0xc8] ss:$16 sps:$4 sm:$0xff]  }
   0xf   :  { %317 = vmatpush1.bf16.msra.mxu0 %v2177_v15  ;;  %430 = vmatpush1.bf16.msra.mxu1 %v2178_v16  ;;  %v2207_v43 = vld [vmem:[%s3583_s0 + $0x8] sm:$0xff]   ;;  %v2660_v44 = vld [vmem:[%s3584_s3 + $0xa0] ss:$16 sps:$4 sm:$0xff]   ;;  %v2665_v45 = vld [vmem:[%s3584_s3 + $0x84] ss:$16 sps:$4 sm:$0xff]   ;;  %v83_v12 = vshrl.u32 %v82_v11, 7 }
  0x10   :  { %318 = vmatprep.subr.bf16.mxu0 %v2179_v17  ;;  %431 = vmatprep.subr.bf16.mxu1 %v2181_v18  ;;  %v2670_v46 = vld [vmem:[%s3584_s3 + $0xac] ss:$16 sps:$4 sm:$0xff]   ;;  %v2676_v47 = vld [vmem:[%s3584_s3 + $0xa8] ss:$16 sps:$4 sm:$0xff]   ;;  %v2690_v49 = vld [vmem:[%s3584_s3 + $0x80] ss:$16 sps:$4 sm:$0xff]  }
  0x11   :  { %v2681_v48 = vld [vmem:[%s3584_s3 + $0x8c] ss:$16 sps:$4 sm:$0xff]   ;;  %v2695_v50 = vld [vmem:[%s3584_s3 + $0x64] ss:$16 sps:$4 sm:$0xff]   ;;  %v2702_v51 = vld [vmem:[%s3584_s3 + $0x88] ss:$16 sps:$4 sm:$0xff]  }
  0x12   :  { %v2214_v52 = vld [vmem:[%s3583_s0 + $0x10] sm:$0xff]   ;;  %v2717_v54 = vld [vmem:[%s3584_s3 + $0x6c] ss:$16 sps:$4 sm:$0xff]   ;;  %v2729_v56 = vld [vmem:[%s3584_s3 + $0x68] ss:$16 sps:$4 sm:$0xff]   ;;  %v84_v17 = vsub.s32 0, %v83_v12 }
  0x13   :  { %319 = vmatpush1.bf16.msra.mxu0 %v2183_v19  ;;  %432 = vmatpush1.bf16.msra.mxu1 %v2184_v20  ;;  %v2711_v53 = vld [vmem:[%s3584_s3 + $0x60] ss:$16 sps:$4 sm:$0xff]   ;;  %v2724_v55 = vld [vmem:[%s3584_s3 + $0x44] ss:$16 sps:$4 sm:$0xff]   ;;  %v2734_v57 = vld [vmem:[%s3584_s3 + $0x4c] ss:$16 sps:$4 sm:$0xff]  }
  0x14   :  { %320 = vmatprep.subr.bf16.mxu0 %v2185_v21  ;;  %433 = vmatprep.subr.bf16.mxu1 %v2187_v22  ;;  %v2743_v58 = vld [vmem:[%s3584_s3 + $0x40] ss:$16 sps:$4 sm:$0xff]   ;;  %v2750_v59 = vld [vmem:[%s3584_s3 + $0x24] ss:$16 sps:$4 sm:$0xff]   ;;  %v2755_v60 = vld [vmem:[%s3584_s3 + $0x48] ss:$16 sps:$4 sm:$0xff]  }
  0x15   :  { %v2221_v61 = vld [vmem:[%s3583_s0 + $0x18] sm:$0xff]   ;;  %v2765_v62 = vld [vmem:[%s3584_s3 + $0x20] ss:$16 sps:$4 sm:$0xff]   ;;  %v2777_v0 = vld [vmem:[%s3584_s3 + $0x4] ss:$16 sps:$4 sm:$0xff]   ;;  %v92_v18 = vsub.s32 2, %v83_v12 }
  0x16   :  { %v2770_v63 = vld [vmem:[%s3584_s3 + $0x2c] ss:$16 sps:$4 sm:$0xff]   ;;  %v2782_v2 = vld [vmem:[%s3584_s3 + $0x28] ss:$16 sps:$4 sm:$0xff]   ;;  %v2796_v4 = vld [vmem:[%s3584_s3] ss:$16 sps:$4 sm:$0xff]  }
  0x17   :  { %321 = vmatpush1.bf16.msra.mxu0 %v2189_v23  ;;  %434 = vmatpush1.bf16.msra.mxu1 %v2190_v24  ;;  %v2787_v3 = vld [vmem:[%s3584_s3 + $0xc] ss:$16 sps:$4 sm:$0xff]   ;;  %v2803_v5 = vld [vmem:[%s3584_s3 + $0x8] ss:$16 sps:$4 sm:$0xff]   ;;  %v2228_v6 = vld [vmem:[%s3583_s0 + $0x20] sm:$0xff]   ;;  %v88_v22 = vsub.s32 1, %v83_v12 }
  0x18   :  { %322 = vmatprep.subr.bf16.mxu0 %v2191_v25  ;;  %435 = vmatprep.subr.bf16.mxu1 %v2193_v26  ;;  %v2235_v7 = vld [vmem:[%s3583_s0 + $0x28] sm:$0xff]   ;;  %v2242_v8 = vld [vmem:[%s3583_s0 + $0x30] sm:$0xff]   ;;  %v2249_v9 = vld [vmem:[%s3583_s0 + $0x38] sm:$0xff]   ;;  %v96_v23 = vsub.s32 3, %v83_v12 }
  0x19   :  { %v80_v19 = vld [vmem:[%s3585_s2] sm:$0xf] }
  0x1a   :  { %v2883_v26 = vrot.slane %v80_v19, %v84_v17 }
  0x1b   :  { %323 = vmatpush1.bf16.msra.mxu0 %v2195_v27  ;;  %436 = vmatpush1.bf16.msra.mxu1 %v2196_v28  ;;  %v2885_v27 = vrot.slane %v80_v19, %v92_v18 }
  0x1c   :  { %324 = vmatprep.subr.bf16.mxu0 %v2197_v29  ;;  %437 = vmatprep.subr.bf16.mxu1 %v2199_v30  ;;  %v2887_v30 = vrot.slane %v80_v19, %v88_v22 }
  0x1f   :  { %325 = vmatpush1.bf16.msra.mxu0 %v2201_v31  ;;  %438 = vmatpush1.bf16.msra.mxu1 %v2202_v32  ;;  %v2889_v31 = vrot.slane %v80_v19, %v96_v23 }
  0x20   :  { %805 = vmatprep.subr.bf16.mxu0 %v2599_v33  ;;  %848 = vmatprep.subr.bf16.mxu1 %v2604_v34 }
  0x22   :  { %343 = vmatmul.mubr.bf16.vlgmr.msra.gmra.mxu0 %v2203_v35  ;;  %456 = vmatmul.mubr.bf16.vlgmr.msra.gmra.mxu1 %v2203_v35 }
  0x23   :  { %806 = vmatpush1.bf16.msra.mxu0 %v2612_v36  ;;  %352 = vmatprep.mubr.bf16.mxu0 %v3589_v1 }
  0x24   :  { %465 = vmatprep.mubr.bf16.mxu1 %v3589_v1  ;;  %807 = vmatprep.subr.bf16.mxu0 %v2618_v37 }
  0x25   :  { %849 = vmatpush1.bf16.msra.mxu1 %v2624_v38 }
  0x26   :  { %850 = vmatprep.subr.bf16.mxu1 %v2629_v39 }
  0x27   :  { %808 = vmatpush1.bf16.msra.mxu0 %v2636_v40 }
  0x28   :  { %809 = vmatprep.subr.bf16.mxu0 %v2643_v41 }
  0x29   :  { %851 = vmatpush1.bf16.msra.mxu1 %v2649_v42 }
  0x2a   :  { %353 = vmatmul.mubr.bf16.gmra.mxu0 %v2207_v43  ;;  %466 = vmatmul.mubr.bf16.gmra.mxu1 %v2207_v43 }
  0x2b   :  { %362 = vmatprep.mubr.bf16.mxu0 %v3589_v1  ;;  %475 = vmatprep.mubr.bf16.mxu1 %v3589_v1 }
  0x2c   :  { %810 = vmatpush1.bf16.msra.mxu0 %v2660_v44  ;;  %852 = vmatprep.subr.bf16.mxu1 %v2670_v46 }
  0x2d   :  { %811 = vmatprep.subr.bf16.mxu0 %v2665_v45  ;;  %853 = vmatpush1.bf16.msra.mxu1 %v2676_v47 }
  0x2e   :  { %854 = vmatprep.subr.bf16.mxu1 %v2681_v48 }
  0x30   :  { %812 = vmatpush1.bf16.msra.mxu0 %v2690_v49 }
  0x31   :  { %813 = vmatprep.subr.bf16.mxu0 %v2695_v50  ;;  %855 = vmatpush1.bf16.msra.mxu1 %v2702_v51 }
  0x32   :  { %363 = vmatmul.mubr.bf16.gmra.mxu0 %v2214_v52  ;;  %476 = vmatmul.mubr.bf16.gmra.mxu1 %v2214_v52 }
  0x33   :  { %372 = vmatprep.mubr.bf16.mxu0 %v3589_v1  ;;  %485 = vmatprep.mubr.bf16.mxu1 %v3589_v1 }
  0x34   :  { %814 = vmatpush1.bf16.msra.mxu0 %v2711_v53  ;;  %856 = vmatprep.subr.bf16.mxu1 %v2717_v54 }
  0x35   :  { %815 = vmatprep.subr.bf16.mxu0 %v2724_v55  ;;  %857 = vmatpush1.bf16.msra.mxu1 %v2729_v56 }
  0x36   :  { %858 = vmatprep.subr.bf16.mxu1 %v2734_v57 }
  0x38   :  { %816 = vmatpush1.bf16.msra.mxu0 %v2743_v58 }
  0x39   :  { %817 = vmatprep.subr.bf16.mxu0 %v2750_v59  ;;  %859 = vmatpush1.bf16.msra.mxu1 %v2755_v60 }
  0x3a   :  { %373 = vmatmul.mubr.bf16.gmra.mxu0 %v2221_v61  ;;  %486 = vmatmul.mubr.bf16.gmra.mxu1 %v2221_v61 }
  0x3b   :  { %382 = vmatprep.mubr.bf16.mxu0 %v3589_v1  ;;  %495 = vmatprep.mubr.bf16.mxu1 %v3589_v1 }
  0x3c   :  { %818 = vmatpush1.bf16.msra.mxu0 %v2765_v62  ;;  %860 = vmatprep.subr.bf16.mxu1 %v2770_v63 }
  0x3d   :  { %819 = vmatprep.subr.bf16.mxu0 %v2777_v0  ;;  %861 = vmatpush1.bf16.msra.mxu1 %v2782_v2 }
  0x3e   :  { %862 = vmatprep.subr.bf16.mxu1 %v2787_v3 }
  0x40   :  { %820 = vmatpush1.bf16.msra.mxu0 %v2796_v4 }
  0x41   :  { %863 = vmatpush1.bf16.msra.mxu1 %v2803_v5  ;;  %945 = vmatprep.subr.bf16.mxu0 %v2599_v33 }
  0x42   :  { %383 = vmatmul.mubr.bf16.gmra.mxu0 %v2228_v6  ;;  %496 = vmatmul.mubr.bf16.gmra.mxu1 %v2228_v6 }
  0x43   :  { %392 = vmatprep.mubr.bf16.mxu0 %v3589_v1  ;;  %505 = vmatprep.mubr.bf16.mxu1 %v3589_v1 }
  0x44   :  { %988 = vmatprep.subr.bf16.mxu1 %v2604_v34 }
  0x4a   :  { %393 = vmatmul.mubr.bf16.gmra.mxu0 %v2235_v7  ;;  %506 = vmatmul.mubr.bf16.gmra.mxu1 %v2235_v7 }
  0x4b   :  { %402 = vmatprep.mubr.bf16.mxu0 %v3589_v1  ;;  %515 = vmatprep.mubr.bf16.mxu1 %v3589_v1 }
  0x52   :  { %403 = vmatmul.mubr.bf16.gmra.mxu0 %v2242_v8  ;;  %516 = vmatmul.mubr.bf16.gmra.mxu1 %v2242_v8 }
  0x53   :  { %412 = vmatprep.mubr.bf16.mxu0 %v3589_v1  ;;  %525 = vmatprep.mubr.bf16.mxu1 %v3589_v1 }
  0x5a   :  { %413 = vmatmul.mubr.bf16.gmra.mxu0 %v2249_v9  ;;  %526 = vmatmul.mubr.bf16.gmra.mxu1 %v2249_v9 }
  0x5b   :  { %837 = vmatprep.mubr.bf16.mxu0 %v3589_v1  ;;  %880 = vmatprep.mubr.bf16.mxu1 %v3589_v1 }
  0x62   :  { %838 = vmatmul.mubr.bf16.vlgmr.msra.gmra.mxu0 %v2460_v10  ;;  %881 = vmatmul.mubr.bf16.vlgmr.msra.gmra.mxu1 %v2460_v10 }
  0x63   :  { %946 = vmatpush1.bf16.msra.mxu0 %v2612_v36  ;;  %989 = vmatpush1.bf16.msra.mxu1 %v2624_v38 }
  0x64   :  { %947 = vmatprep.subr.bf16.mxu0 %v2618_v37  ;;  %990 = vmatprep.subr.bf16.mxu1 %v2629_v39 }
  0x65   :  { %977 = vmatprep.mubr.bf16.mxu0 %v3589_v1  ;;  %1020 = vmatprep.mubr.bf16.mxu1 %v3589_v1 }
  0x67   :  { %948 = vmatpush1.bf16.msra.mxu0 %v2636_v40  ;;  %991 = vmatpush1.bf16.msra.mxu1 %v2649_v42 }
  0x68   :  { %949 = vmatprep.subr.bf16.mxu0 %v2643_v41  ;;  %992 = vmatprep.subr.bf16.mxu1 %v2670_v46 }
  0x6b   :  { %950 = vmatpush1.bf16.msra.mxu0 %v2660_v44  ;;  %993 = vmatpush1.bf16.msra.mxu1 %v2676_v47 }
  0x6c   :  { %951 = vmatprep.subr.bf16.mxu0 %v2665_v45  ;;  %994 = vmatprep.subr.bf16.mxu1 %v2681_v48 }
  0x6f   :  { %952 = vmatpush1.bf16.msra.mxu0 %v2690_v49  ;;  %995 = vmatpush1.bf16.msra.mxu1 %v2702_v51 }
  0x70   :  { %953 = vmatprep.subr.bf16.mxu0 %v2695_v50  ;;  %996 = vmatprep.subr.bf16.mxu1 %v2717_v54 }
  0x73   :  { %954 = vmatpush1.bf16.msra.mxu0 %v2711_v53  ;;  %997 = vmatpush1.bf16.msra.mxu1 %v2729_v56 }
  0x74   :  { %955 = vmatprep.subr.bf16.mxu0 %v2724_v55  ;;  %998 = vmatprep.subr.bf16.mxu1 %v2734_v57 }
  0x77   :  { %956 = vmatpush1.bf16.msra.mxu0 %v2743_v58  ;;  %999 = vmatpush1.bf16.msra.mxu1 %v2755_v60 }
  0x78   :  { %957 = vmatprep.subr.bf16.mxu0 %v2750_v59  ;;  %1000 = vmatprep.subr.bf16.mxu1 %v2770_v63 }
  0x7b   :  { %958 = vmatpush1.bf16.msra.mxu0 %v2765_v62  ;;  %1001 = vmatpush1.bf16.msra.mxu1 %v2782_v2 }
  0x7c   :  { %959 = vmatprep.subr.bf16.mxu0 %v2777_v0  ;;  %1002 = vmatprep.subr.bf16.mxu1 %v2787_v3 }
  0x7f   :  { %960 = vmatpush1.bf16.msra.mxu0 %v2796_v4  ;;  %1003 = vmatpush1.bf16.msra.mxu1 %v2803_v5 }
  0x80   :  { %1085 = vmatprep.subr.bf16.mxu0 %v2599_v33  ;;  %1128 = vmatprep.subr.bf16.mxu1 %v2604_v34 }
  0xe2   :  { %v2864_v13 = vpop.f32.mrf.mxu0  ;;  %v2866_v14 = vpop.f32.mrf.mxu1 }
  0xe4   :  { %v2868_v15 = vpop.f32.mrf.mxu0  ;;  %v2870_v16 = vpop.f32.mrf.mxu1 }
  0xe6   :  { %v2875_v20 = vpop.f32.mrf.mxu0  ;;  %v2877_v21 = vpop.f32.mrf.mxu1 }
  0xe8   :  { %v2879_v24 = vpop.f32.mrf.mxu0  ;;  %v2881_v25 = vpop.f32.mrf.mxu1 }
  0xea   :  { %v354_v28 = vpop.f32.mrf.mxu0  ;;  %v467_v29 = vpop.f32.mrf.mxu1 }
  0xeb   :  { %v2892_v32 = vadd.f32 %v354_v28, %v2883_v26  ;;  %v2895_v35 = vadd.f32 %v467_v29, %v2885_v27 }
  0xec   :  { %v356_v43 = vpop.f32.mrf.mxu0  ;;  %v469_v52 = vpop.f32.mrf.mxu1 }
  0xed   :  { %v2898_v61 = vadd.f32 %v356_v43, %v2887_v30  ;;  %v2901_v6 = vadd.f32 %v469_v52, %v2889_v31 }
  0xee   :  { %v358_v7 = vpop.f32.mrf.mxu0  ;;  %v471_v8 = vpop.f32.mrf.mxu1 }
  0xef   :  { %3591 = vst [vmem:[#allocation5_spill] sm:$0xff] %v2901_v6  ;;  %v2904_v9 = vadd.f32 %v358_v7, %v2883_v26  ;;  %v2907_v10 = vadd.f32 %v471_v8, %v2885_v27 }
  0xf0   :  { %v360_v11 = vpop.f32.mrf.mxu0  ;;  %v473_v12 = vpop.f32.mrf.mxu1 }
  0xf1   :  { %3592 = vst [vmem:[#allocation6_spill] sm:$0xff] %v2907_v10  ;;  %v2910_v17 = vadd.f32 %v360_v11, %v2887_v30  ;;  %v2913_v18 = vadd.f32 %v473_v12, %v2889_v31 }
  0xf2   :  { %v364_v19 = vpop.f32.mrf.mxu0  ;;  %v477_v22 = vpop.f32.mrf.mxu1 }
  0xf3   :  { %3593 = vst [vmem:[#allocation7_spill] sm:$0xff] %v2913_v18  ;;  %v2916_v23 = vadd.f32 %v364_v19, %v2883_v26  ;;  %v2919_v28 = vadd.f32 %v477_v22, %v2885_v27 }
  0xf4   :  { %v366_v29 = vpop.f32.mrf.mxu0  ;;  %v479_v43 = vpop.f32.mrf.mxu1 }
  0xf5   :  { %3594 = vst [vmem:[#allocation8_spill] sm:$0xff] %v2916_v23  ;;  %3595 = vst [vmem:[#allocation9_spill] sm:$0xff] %v2919_v28  ;;  %v2922_v52 = vadd.f32 %v366_v29, %v2887_v30  ;;  %v2925_v7 = vadd.f32 %v479_v43, %v2889_v31 }
  0xf6   :  { %v368_v8 = vpop.f32.mrf.mxu0  ;;  %v481_v11 = vpop.f32.mrf.mxu1 }
  0xf7   :  { %3596 = vst [vmem:[#allocation10_spill] sm:$0xff] %v2922_v52  ;;  %3597 = vst [vmem:[#allocation11_spill] sm:$0xff] %v2925_v7  ;;  %v2928_v12 = vadd.f32 %v368_v8, %v2883_v26  ;;  %v2931_v1 = vadd.f32 %v481_v11, %v2885_v27 }
  0xf8   :  { %v370_v19 = vpop.f32.mrf.mxu0  ;;  %v483_v23 = vpop.f32.mrf.mxu1 }
  0xf9   :  { %3598 = vst [vmem:[#allocation12_spill] sm:$0xff] %v2928_v12  ;;  %3599 = vst [vmem:[#allocation13_spill] sm:$0xff] %v2931_v1  ;;  %v2934_v22 = vadd.f32 %v370_v19, %v2887_v30  ;;  %v2937_v28 = vadd.f32 %v483_v23, %v2889_v31 }
  0xfa   :  { %v374_v29 = vpop.f32.mrf.mxu0  ;;  %v487_v52 = vpop.f32.mrf.mxu1 }
  0xfb   :  { %3600 = vst [vmem:[#allocation14_spill] sm:$0xff] %v2934_v22  ;;  %3601 = vst [vmem:[#allocation15_spill] sm:$0xff] %v2937_v28  ;;  %v2940_v43 = vadd.f32 %v374_v29, %v2883_v26  ;;  %v2943_v7 = vadd.f32 %v487_v52, %v2885_v27 }
  0xfc   :  { %v376_v8 = vpop.f32.mrf.mxu0  ;;  %v489_v12 = vpop.f32.mrf.mxu1 }
  0xfd   :  { %3602 = vst [vmem:[#allocation16_spill] sm:$0xff] %v2940_v43  ;;  %3603 = vst [vmem:[#allocation17_spill] sm:$0xff] %v2943_v7  ;;  %v2946_v11 = vadd.f32 %v376_v8, %v2887_v30  ;;  %v2949_v1 = vadd.f32 %v489_v12, %v2889_v31 }
  0xfe   :  { %v378_v19 = vpop.f32.mrf.mxu0  ;;  %v491_v22 = vpop.f32.mrf.mxu1 }
  0xff   :  { %3604 = vst [vmem:[#allocation18_spill] sm:$0xff] %v2946_v11  ;;  %3605 = vst [vmem:[#allocation19_spill] sm:$0xff] %v2949_v1  ;;  %v2952_v23 = vadd.f32 %v378_v19, %v2883_v26  ;;  %v2955_v28 = vadd.f32 %v491_v22, %v2885_v27 }
 0x100   :  { %v380_v29 = vpop.f32.mrf.mxu0  ;;  %v493_v43 = vpop.f32.mrf.mxu1 }
 0x101   :  { %3606 = vst [vmem:[#allocation20_spill] sm:$0xff] %v2952_v23  ;;  %3607 = vst [vmem:[#allocation21_spill] sm:$0xff] %v2955_v28  ;;  %v2958_v52 = vadd.f32 %v380_v29, %v2887_v30  ;;  %v2961_v7 = vadd.f32 %v493_v43, %v2889_v31 }
 0x102   :  { %v384_v8 = vpop.f32.mrf.mxu0  ;;  %v497_v11 = vpop.f32.mrf.mxu1 }
 0x103   :  { %3608 = vst [vmem:[#allocation22_spill] sm:$0xff] %v2958_v52  ;;  %3609 = vst [vmem:[#allocation23_spill] sm:$0xff] %v2961_v7  ;;  %v2964_v12 = vadd.f32 %v384_v8, %v2883_v26  ;;  %v2967_v1 = vadd.f32 %v497_v11, %v2885_v27 }
 0x104   :  { %v386_v19 = vpop.f32.mrf.mxu0  ;;  %v499_v23 = vpop.f32.mrf.mxu1 }
 0x105   :  { %3610 = vst [vmem:[#allocation24_spill] sm:$0xff] %v2964_v12  ;;  %3611 = vst [vmem:[#allocation25_spill] sm:$0xff] %v2967_v1  ;;  %v2970_v22 = vadd.f32 %v386_v19, %v2887_v30  ;;  %v2973_v28 = vadd.f32 %v499_v23, %v2889_v31 }
 0x106   :  { %v388_v29 = vpop.f32.mrf.mxu0  ;;  %v501_v52 = vpop.f32.mrf.mxu1 }
 0x107   :  { %3612 = vst [vmem:[#allocation26_spill] sm:$0xff] %v2970_v22  ;;  %3613 = vst [vmem:[#allocation27_spill] sm:$0xff] %v2973_v28  ;;  %v2976_v43 = vadd.f32 %v388_v29, %v2883_v26  ;;  %v2979_v7 = vadd.f32 %v501_v52, %v2885_v27 }
 0x108   :  { %v390_v8 = vpop.f32.mrf.mxu0  ;;  %v503_v12 = vpop.f32.mrf.mxu1 }
 0x109   :  { %3614 = vst [vmem:[#allocation28_spill] sm:$0xff] %v2976_v43  ;;  %3615 = vst [vmem:[#allocation29_spill] sm:$0xff] %v2979_v7  ;;  %v2982_v11 = vadd.f32 %v390_v8, %v2887_v30  ;;  %v2985_v1 = vadd.f32 %v503_v12, %v2889_v31 }
 0x10a   :  { %v394_v19 = vpop.f32.mrf.mxu0  ;;  %v507_v22 = vpop.f32.mrf.mxu1 }
 0x10b   :  { %3616 = vst [vmem:[#allocation30_spill] sm:$0xff] %v2982_v11  ;;  %3617 = vst [vmem:[#allocation31_spill] sm:$0xff] %v2985_v1  ;;  %v2988_v23 = vadd.f32 %v394_v19, %v2883_v26  ;;  %v2991_v28 = vadd.f32 %v507_v22, %v2885_v27 }
 0x10c   :  { %v396_v29 = vpop.f32.mrf.mxu0  ;;  %v509_v43 = vpop.f32.mrf.mxu1 }
 0x10d   :  { %3618 = vst [vmem:[#allocation32_spill] sm:$0xff] %v2988_v23  ;;  %3619 = vst [vmem:[#allocation33_spill] sm:$0xff] %v2991_v28  ;;  %v2994_v52 = vadd.f32 %v396_v29, %v2887_v30  ;;  %v2997_v7 = vadd.f32 %v509_v43, %v2889_v31 }
 0x10e   :  { %v398_v8 = vpop.f32.mrf.mxu0  ;;  %v511_v11 = vpop.f32.mrf.mxu1 }
 0x10f   :  { %3620 = vst [vmem:[#allocation34_spill] sm:$0xff] %v2994_v52  ;;  %3621 = vst [vmem:[#allocation35_spill] sm:$0xff] %v2997_v7  ;;  %v3000_v12 = vadd.f32 %v398_v8, %v2883_v26  ;;  %v3003_v1 = vadd.f32 %v511_v11, %v2885_v27 }
 0x110   :  { %v400_v19 = vpop.f32.mrf.mxu0  ;;  %v513_v23 = vpop.f32.mrf.mxu1 }
 0x111   :  { %3622 = vst [vmem:[#allocation36_spill] sm:$0xff] %v3000_v12  ;;  %3623 = vst [vmem:[#allocation37_spill] sm:$0xff] %v3003_v1  ;;  %v3006_v22 = vadd.f32 %v400_v19, %v2887_v30  ;;  %v3009_v28 = vadd.f32 %v513_v23, %v2889_v31 }
 0x112   :  { %v404_v29 = vpop.f32.mrf.mxu0  ;;  %v517_v52 = vpop.f32.mrf.mxu1 }
 0x113   :  { %3624 = vst [vmem:[#allocation38_spill] sm:$0xff] %v3006_v22  ;;  %3625 = vst [vmem:[#allocation39_spill] sm:$0xff] %v3009_v28  ;;  %v3012_v43 = vadd.f32 %v404_v29, %v2883_v26  ;;  %v3015_v7 = vadd.f32 %v517_v52, %v2885_v27 }
 0x114   :  { %v406_v8 = vpop.f32.mrf.mxu0  ;;  %v519_v12 = vpop.f32.mrf.mxu1 }
 0x115   :  { %3626 = vst [vmem:[#allocation40_spill] sm:$0xff] %v3012_v43  ;;  %3627 = vst [vmem:[#allocation41_spill] sm:$0xff] %v3015_v7  ;;  %v3018_v11 = vadd.f32 %v406_v8, %v2887_v30  ;;  %v3021_v1 = vadd.f32 %v519_v12, %v2889_v31 }
 0x116   :  { %v408_v19 = vpop.f32.mrf.mxu0  ;;  %v521_v22 = vpop.f32.mrf.mxu1 }
 0x117   :  { %3628 = vst [vmem:[#allocation42_spill] sm:$0xff] %v3018_v11  ;;  %3629 = vst [vmem:[#allocation43_spill] sm:$0xff] %v3021_v1  ;;  %v3024_v23 = vadd.f32 %v408_v19, %v2883_v26  ;;  %v3027_v28 = vadd.f32 %v521_v22, %v2885_v27 }
 0x118   :  { %v410_v29 = vpop.f32.mrf.mxu0  ;;  %v523_v43 = vpop.f32.mrf.mxu1 }
 0x119   :  { %3630 = vst [vmem:[#allocation44_spill] sm:$0xff] %v3024_v23  ;;  %3631 = vst [vmem:[#allocation45_spill] sm:$0xff] %v3027_v28  ;;  %v3030_v52 = vadd.f32 %v410_v29, %v2887_v30  ;;  %v3033_v7 = vadd.f32 %v523_v43, %v2889_v31 }
 0x11a   :  { %v414_v8 = vpop.f32.mrf.mxu0  ;;  %v527_v11 = vpop.f32.mrf.mxu1 }
 0x11b   :  { %3632 = vst [vmem:[#allocation46_spill] sm:$0xff] %v3030_v52  ;;  %3633 = vst [vmem:[#allocation47_spill] sm:$0xff] %v3033_v7  ;;  %v3036_v12 = vadd.f32 %v414_v8, %v2883_v26  ;;  %v3039_v1 = vadd.f32 %v527_v11, %v2885_v27  ;;  %v345_v11 = vadd.f32 %v2864_v13, %v2883_v26 }
 0x11c   :  { %v416_v19 = vpop.f32.mrf.mxu0  ;;  %v529_v23 = vpop.f32.mrf.mxu1 }
 0x11d   :  { %3634 = vst [vmem:[#allocation48_spill] sm:$0xff] %v3036_v12  ;;  %3635 = vst [vmem:[#allocation49_spill] sm:$0xff] %v3039_v1  ;;  %v3042_v22 = vadd.f32 %v416_v19, %v2887_v30  ;;  %v3045_v28 = vadd.f32 %v529_v23, %v2889_v31 }
 0x11e   :  { %v418_v29 = vpop.f32.mrf.mxu0  ;;  %v531_v52 = vpop.f32.mrf.mxu1 }
 0x11f   :  { %3636 = vst [vmem:[#allocation50_spill] sm:$0xff] %v3042_v22  ;;  %3637 = vst [vmem:[#allocation51_spill] sm:$0xff] %v3045_v28  ;;  %v3048_v43 = vadd.f32 %v418_v29, %v2883_v26  ;;  %v3051_v7 = vadd.f32 %v531_v52, %v2885_v27  ;;  %v347_v29 = vadd.f32 %v2868_v15, %v2887_v30 }
 0x120   :  { %v420_v8 = vpop.f32.mrf.mxu0  ;;  %v533_v12 = vpop.f32.mrf.mxu1  ;;  %v458_v52 = vadd.f32 %v2866_v14, %v2885_v27  ;;  %v349_v22 = vadd.f32 %v2875_v20, %v2883_v26  ;;  %v462_v20 = vadd.f32 %v2877_v21, %v2885_v27 }
 0x121   :  { %3638 = vst [vmem:[#allocation52_spill] sm:$0xff] %v3048_v43  ;;  %3639 = vst [vmem:[#allocation53_spill] sm:$0xff] %v3051_v7  ;;  %v3056_v1 = vadd.f32 %v420_v8, %v2887_v30  ;;  %v3059_v19 = vadd.f32 %v533_v12, %v2889_v31  ;;  %v351_v12 = vadd.f32 %v2879_v24, %v2887_v30 }
 0x122   :  { %v839_v23 = vpop.f32.mrf.mxu0  ;;  %v882_v28 = vpop.f32.mrf.mxu1  ;;  %v464_v30 = vadd.f32 %v2881_v25, %v2889_v31 }
 0x123   :  { %3640 = vst [vmem:[#allocation54_spill] sm:$0xff] %v3056_v1  ;;  %3641 = vst [vmem:[#allocation55_spill] sm:$0xff] %v3059_v19  ;;  %v891_v43 = vadd.f32 %v839_v23, %v345_v11  ;;  %v893_v8 = vadd.f32 %v882_v28, %v458_v52 }
 0x124   :  { %v841_v7 = vpop.f32.mrf.mxu0  ;;  %v884_v1 = vpop.f32.mrf.mxu1 }
 0x125   :  { %v899_v13 = vmul.f32 0.5, %v891_v43  ;;  %v892_v18 = vadd.f32 %v841_v7, %v347_v29  ;;  %v460_v7 = vadd.f32 %v2870_v16, %v2889_v31 }
 0x126   :  { %v843_v6 = vpop.f32.mrf.mxu0  ;;  %v886_v14 = vpop.f32.mrf.mxu1 }
 0x127   :  { %2267 = vtanh.f32 %v899_v13  ;;  %v907_v19 = vmul.f32 0.5, %v892_v18  ;;  %v895_v10 = vadd.f32 %v843_v6, %v349_v22  ;;  %v897_v28 = vadd.f32 %v886_v14, %v462_v20 }
 0x128   :  { %v845_v15 = vpop.f32.mrf.mxu0  ;;  %v888_v24 = vpop.f32.mrf.mxu1  ;;  %v894_v6 = vadd.f32 %v884_v1, %v460_v7 }
 0x129   :  { %2269 = vtanh.f32 %v907_v19  ;;  %v900_v11 = vmul.f32 0.5, %v895_v10  ;;  %v896_v23 = vadd.f32 %v845_v15, %v351_v12  ;;  %v898_v10 = vadd.f32 %v888_v24, %v464_v30 }
 0x12a   :  { %2271 = vtanh.f32 %v893_v8  ;;  %v917_v19 = vmul.f32 0.5, %v894_v6 }
 0x12b   :  { %2273 = vtanh.f32 %v900_v11  ;;  %v908_v26 = vmul.f32 0.5, %v896_v23  ;;  %v918_v52 = vmul.f32 0.5, %v898_v10 }
 0x12d   :  { %2275 = vtanh.f32 %v908_v26 }
 0x12e   :  { %2277 = vtanh.f32 %v897_v28 }
 0x12f   :  { %2279 = vtanh.f32 %v917_v19 }
 0x130   :  { %2281 = vtanh.f32 %v918_v52 }
 0x134   :  { %v2268_v18 = vpop.eup %2267 }
 0x135   :  { %v903_v22 = vmul.f32 0.5, %v2268_v18 }
 0x136   :  { %v2270_v43 = vpop.eup %2269 }
 0x137   :  { %v2272_v29 = vpop.eup %2271  ;;  %v905_v21 = vadd.f32 0.5, %v903_v22  ;;  %v911_v27 = vmul.f32 0.5, %v2270_v43 }
 0x138   :  { %v2274_v13 = vpop.eup %2273 }
 0x139   :  { %v913_v8 = vadd.f32 0.5, %v911_v27  ;;  %v927_v12 = vmul.f32 %v2272_v29, %v905_v21  ;;  %v904_v15 = vmul.f32 0.5, %v2274_v13  ;;  %v3642_v27 = vmov 0  }
 0x13a   :  { %v2276_v16 = vpop.eup %2275 }
 0x13b   :  { %v925_v11 = vmul.f32 0.0, %v913_v8  ;;  %v906_v23 = vadd.f32 0.5, %v904_v15  ;;  %v912_v25 = vmul.f32 0.5, %v2276_v16  ;;  %v2278_v14 = vpop.eup %2277 }
 0x13c   :  { %v2280_v7 = vpop.eup %2279 }
 0x13d   :  { %v3075_v1 = vadd.f32 %v927_v12, %v925_v11  ;;  %v914_v31 = vadd.f32 0.5, %v912_v25  ;;  %v928_v26 = vmul.f32 %v2278_v14, %v906_v23  ;;  %v2282_v24 = vpop.eup %2281  ;;  %v921_v30 = vmul.f32 0.5, %v2280_v7 }
 0x13e   :  { %v922_v6 = vmul.f32 0.5, %v2282_v24 }
 0x13f   :  { %v926_v20 = vmul.f32 0.0, %v914_v31  ;;  %2283 = vtanh.f32 %v3075_v1  ;;  %v923_v18 = vadd.f32 0.5, %v921_v30 }
 0x140   :  { %v924_v22 = vadd.f32 0.5, %v922_v6  ;;  %v3645_v6 = vld [vmem:[#allocation7_spill] sm:$0xff] }
 0x141   :  { %v3078_v28 = vadd.f32 %v928_v26, %v926_v20 }
 0x143   :  { %2285 = vtanh.f32 %v3078_v28 }
 0x14c   :  { %v2284_v10 = vpop.eup %2283 }
 0x14d   :  { %v933_v19 = vmul.f32 %v2284_v10, %v923_v18 }
 0x150   :  { %v2286_v43 = vpop.eup %2285 }
 0x151   :  { %v934_v29 = vmul.f32 %v2286_v43, %v924_v22 }
 0x153   :  { %v944_v21 = vpack.c.bf16 %v934_v29, %v933_v19 }
 0x155   :  { %978 = vmatmul.mubr.bf16.vlgmr.msra.gmra.mxu0 %v944_v21  ;;  %1021 = vmatmul.mubr.bf16.vlgmr.msra.gmra.mxu1 %v944_v21 }
 0x156   :  { %1086 = vmatpush1.bf16.msra.mxu0 %v2612_v36  ;;  %1129 = vmatpush1.bf16.msra.mxu1 %v2624_v38 }
 0x157   :  { %1087 = vmatprep.subr.bf16.mxu0 %v2618_v37  ;;  %1130 = vmatprep.subr.bf16.mxu1 %v2629_v39 }
 0x158   :  { %1117 = vmatprep.mubr.bf16.mxu0 %v3642_v27  ;;  %1160 = vmatprep.mubr.bf16.mxu1 %v3642_v27 }
 0x15a   :  { %1088 = vmatpush1.bf16.msra.mxu0 %v2636_v40  ;;  %1131 = vmatpush1.bf16.msra.mxu1 %v2649_v42 }
 0x15b   :  { %1089 = vmatprep.subr.bf16.mxu0 %v2643_v41  ;;  %1132 = vmatprep.subr.bf16.mxu1 %v2670_v46 }
 0x15e   :  { %1090 = vmatpush1.bf16.msra.mxu0 %v2660_v44  ;;  %1133 = vmatpush1.bf16.msra.mxu1 %v2676_v47 }
 0x15f   :  { %1091 = vmatprep.subr.bf16.mxu0 %v2665_v45  ;;  %1134 = vmatprep.subr.bf16.mxu1 %v2681_v48 }
 0x162   :  { %1092 = vmatpush1.bf16.msra.mxu0 %v2690_v49  ;;  %1135 = vmatpush1.bf16.msra.mxu1 %v2702_v51 }
 0x163   :  { %1093 = vmatprep.subr.bf16.mxu0 %v2695_v50  ;;  %1136 = vmatprep.subr.bf16.mxu1 %v2717_v54 }
 0x166   :  { %1094 = vmatpush1.bf16.msra.mxu0 %v2711_v53  ;;  %1137 = vmatpush1.bf16.msra.mxu1 %v2729_v56 }
 0x167   :  { %1095 = vmatprep.subr.bf16.mxu0 %v2724_v55  ;;  %1138 = vmatprep.subr.bf16.mxu1 %v2734_v57 }
 0x16a   :  { %1096 = vmatpush1.bf16.msra.mxu0 %v2743_v58  ;;  %1139 = vmatpush1.bf16.msra.mxu1 %v2755_v60 }
 0x16b   :  { %1097 = vmatprep.subr.bf16.mxu0 %v2750_v59  ;;  %1140 = vmatprep.subr.bf16.mxu1 %v2770_v63 }
 0x16e   :  { %1098 = vmatpush1.bf16.msra.mxu0 %v2765_v62  ;;  %1141 = vmatpush1.bf16.msra.mxu1 %v2782_v2 }
 0x16f   :  { %1099 = vmatprep.subr.bf16.mxu0 %v2777_v0  ;;  %1142 = vmatprep.subr.bf16.mxu1 %v2787_v3 }
 0x172   :  { %1100 = vmatpush1.bf16.msra.mxu0 %v2796_v4  ;;  %1143 = vmatpush1.bf16.msra.mxu1 %v2803_v5 }
 0x173   :  { %1225 = vmatprep.subr.bf16.mxu0 %v2599_v33  ;;  %1268 = vmatprep.subr.bf16.mxu1 %v2604_v34 }
 0x215   :  { %v979_v52 = vpop.f32.mrf.mxu0  ;;  %v1022_v13 = vpop.f32.mrf.mxu1 }
 0x216   :  { %v1031_v8 = vadd.f32 %v979_v52, %v2892_v32  ;;  %v1033_v23 = vadd.f32 %v1022_v13, %v2895_v35  ;;  %v3643_v32 = vld [vmem:[#allocation6_spill] sm:$0xff]  ;;  %v3644_v35 = vld [vmem:[#allocation5_spill] sm:$0xff] }
 0x217   :  { %v981_v12 = vpop.f32.mrf.mxu0  ;;  %v1024_v15 = vpop.f32.mrf.mxu1 }
 0x218   :  { %v1039_v16 = vmul.f32 0.5, %v1031_v8  ;;  %v1032_v11 = vadd.f32 %v981_v12, %v2898_v61  ;;  %v1034_v30 = vadd.f32 %v1024_v15, %v3644_v35 }
 0x219   :  { %v983_v25 = vpop.f32.mrf.mxu0  ;;  %v1026_v20 = vpop.f32.mrf.mxu1 }
 0x21a   :  { %2287 = vtanh.f32 %v1039_v16  ;;  %v1047_v31 = vmul.f32 0.5, %v1032_v11  ;;  %v1035_v14 = vadd.f32 %v983_v25, %v2904_v9  ;;  %v1037_v7 = vadd.f32 %v1026_v20, %v3643_v32 }
 0x21b   :  { %v985_v33 = vpop.f32.mrf.mxu0  ;;  %v1028_v61 = vpop.f32.mrf.mxu1  ;;  %v1057_v43 = vmul.f32 0.5, %v1034_v30 }
 0x21c   :  { %2289 = vtanh.f32 %v1047_v31  ;;  %v1040_v34 = vmul.f32 0.5, %v1035_v14  ;;  %v1036_v26 = vadd.f32 %v985_v33, %v2910_v17  ;;  %v1038_v10 = vadd.f32 %v1028_v61, %v3645_v6 }
 0x21d   :  { %2291 = vtanh.f32 %v1033_v23 }
 0x21e   :  { %2293 = vtanh.f32 %v1040_v34  ;;  %v1048_v24 = vmul.f32 0.5, %v1036_v26  ;;  %v1058_v17 = vmul.f32 0.5, %v1038_v10 }
 0x220   :  { %2295 = vtanh.f32 %v1048_v24 }
 0x221   :  { %2297 = vtanh.f32 %v1037_v7 }
 0x222   :  { %2299 = vtanh.f32 %v1057_v43 }
 0x223   :  { %2301 = vtanh.f32 %v1058_v17  ;;  %v3653_v17 = vld [vmem:[#allocation15_spill] sm:$0xff] }
 0x227   :  { %v2288_v18 = vpop.eup %2287 }
 0x228   :  { %v1043_v9 = vmul.f32 0.5, %v2288_v18 }
 0x229   :  { %v2290_v22 = vpop.eup %2289 }
 0x22a   :  { %v2292_v19 = vpop.eup %2291  ;;  %v1045_v29 = vadd.f32 0.5, %v1043_v9  ;;  %v1051_v21 = vmul.f32 0.5, %v2290_v22  ;;  %v3651_v9 = vld [vmem:[#allocation13_spill] sm:$0xff] }
 0x22b   :  { %v2294_v52 = vpop.eup %2293 }
 0x22c   :  { %v1053_v13 = vadd.f32 0.5, %v1051_v21  ;;  %v1067_v8 = vmul.f32 %v2292_v19, %v1045_v29  ;;  %v1044_v12 = vmul.f32 0.5, %v2294_v52  ;;  %v3652_v29 = vld [vmem:[#allocation11_spill] sm:$0xff] }
 0x22d   :  { %v2296_v16 = vpop.eup %2295 }
 0x22e   :  { %v1065_v11 = vmul.f32 %v1053_v13, %v3075_v1  ;;  %v1046_v23 = vadd.f32 0.5, %v1044_v12  ;;  %v1052_v15 = vmul.f32 0.5, %v2296_v16  ;;  %v2298_v25 = vpop.eup %2297 }
 0x22f   :  { %v2300_v26 = vpop.eup %2299 }
 0x230   :  { %v3124_v31 = vadd.f32 %v1067_v8, %v1065_v11  ;;  %v1054_v14 = vadd.f32 0.5, %v1052_v15  ;;  %v1068_v20 = vmul.f32 %v2298_v25, %v1046_v23  ;;  %v2302_v32 = vpop.eup %2301  ;;  %v1061_v7 = vmul.f32 0.5, %v2300_v26 }
 0x231   :  { %v1062_v1 = vmul.f32 0.5, %v2302_v32 }
 0x232   :  { %v1066_v33 = vmul.f32 %v1054_v14, %v3078_v28  ;;  %2303 = vtanh.f32 %v3124_v31  ;;  %v1063_v61 = vadd.f32 0.5, %v1061_v7 }
 0x233   :  { %v1064_v35 = vadd.f32 0.5, %v1062_v1 }
 0x234   :  { %v3128_v34 = vadd.f32 %v1068_v20, %v1066_v33 }
 0x236   :  { %2305 = vtanh.f32 %v3128_v34 }
 0x23f   :  { %v2304_v24 = vpop.eup %2303 }
 0x240   :  { %v1073_v6 = vmul.f32 %v2304_v24, %v1063_v61 }
 0x243   :  { %v2306_v30 = vpop.eup %2305 }
 0x244   :  { %v1074_v10 = vmul.f32 %v2306_v30, %v1064_v35 }
 0x246   :  { %v1084_v18 = vpack.c.bf16 %v1074_v10, %v1073_v6 }
 0x248   :  { %1118 = vmatmul.mubr.bf16.vlgmr.msra.gmra.mxu0 %v1084_v18  ;;  %1161 = vmatmul.mubr.bf16.vlgmr.msra.gmra.mxu1 %v1084_v18 }
 0x249   :  { %1226 = vmatpush1.bf16.msra.mxu0 %v2612_v36  ;;  %1269 = vmatpush1.bf16.msra.mxu1 %v2624_v38  ;;  %v3166_v36 = vld [vmem:[%s3584_s3 + $0xe4] ss:$16 sps:$4 sm:$0xff]  }
 0x24a   :  { %1227 = vmatprep.subr.bf16.mxu0 %v2618_v37  ;;  %1270 = vmatprep.subr.bf16.mxu1 %v2629_v39  ;;  %v3172_v37 = vld [vmem:[%s3584_s3 + $0xec] ss:$16 sps:$4 sm:$0xff]  }
 0x24b   :  { %1257 = vmatprep.mubr.bf16.mxu0 %v3642_v27  ;;  %1300 = vmatprep.mubr.bf16.mxu1 %v3642_v27 }
 0x24d   :  { %1228 = vmatpush1.bf16.msra.mxu0 %v2636_v40  ;;  %1271 = vmatpush1.bf16.msra.mxu1 %v2649_v42  ;;  %v3646_v40 = vld [vmem:[#allocation8_spill] sm:$0xff] }
 0x24e   :  { %1229 = vmatprep.subr.bf16.mxu0 %v2643_v41  ;;  %1272 = vmatprep.subr.bf16.mxu1 %v2670_v46  ;;  %v3647_v46 = vld [vmem:[#allocation10_spill] sm:$0xff] }
 0x251   :  { %1230 = vmatpush1.bf16.msra.mxu0 %v2660_v44  ;;  %1273 = vmatpush1.bf16.msra.mxu1 %v2676_v47 }
 0x252   :  { %1231 = vmatprep.subr.bf16.mxu0 %v2665_v45  ;;  %1274 = vmatprep.subr.bf16.mxu1 %v2681_v48  ;;  %v3648_v48 = vld [vmem:[#allocation9_spill] sm:$0xff] }
 0x255   :  { %1232 = vmatpush1.bf16.msra.mxu0 %v2690_v49  ;;  %1275 = vmatpush1.bf16.msra.mxu1 %v2702_v51 }
 0x256   :  { %1233 = vmatprep.subr.bf16.mxu0 %v2695_v50  ;;  %1276 = vmatprep.subr.bf16.mxu1 %v2717_v54 }
 0x259   :  { %1234 = vmatpush1.bf16.msra.mxu0 %v2711_v53  ;;  %1277 = vmatpush1.bf16.msra.mxu1 %v2729_v56  ;;  %v3649_v53 = vld [vmem:[#allocation12_spill] sm:$0xff] }
 0x25a   :  { %1235 = vmatprep.subr.bf16.mxu0 %v2724_v55  ;;  %1278 = vmatprep.subr.bf16.mxu1 %v2734_v57 }
 0x25d   :  { %1236 = vmatpush1.bf16.msra.mxu0 %v2743_v58  ;;  %1279 = vmatpush1.bf16.msra.mxu1 %v2755_v60  ;;  %v3650_v58 = vld [vmem:[#allocation14_spill] sm:$0xff] }
 0x25e   :  { %1237 = vmatprep.subr.bf16.mxu0 %v2750_v59  ;;  %1280 = vmatprep.subr.bf16.mxu1 %v2770_v63 }
 0x261   :  { %1238 = vmatpush1.bf16.msra.mxu0 %v2765_v62  ;;  %1281 = vmatpush1.bf16.msra.mxu1 %v2782_v2 }
 0x262   :  { %1239 = vmatprep.subr.bf16.mxu0 %v2777_v0  ;;  %1282 = vmatprep.subr.bf16.mxu1 %v2787_v3 }
 0x265   :  { %1240 = vmatpush1.bf16.msra.mxu0 %v2796_v4  ;;  %1283 = vmatpush1.bf16.msra.mxu1 %v2803_v5 }
 0x266   :  { %1365 = vmatprep.subr.bf16.mxu0 %v3166_v36  ;;  %1408 = vmatprep.subr.bf16.mxu1 %v3172_v37 }
 0x308   :  { %v1119_v38 = vpop.f32.mrf.mxu0  ;;  %v1162_v39 = vpop.f32.mrf.mxu1 }
 0x309   :  { %v1171_v41 = vadd.f32 %v1119_v38, %v3646_v40  ;;  %v1173_v49 = vadd.f32 %v1162_v39, %v3648_v48 }
 0x30a   :  { %v1121_v42 = vpop.f32.mrf.mxu0  ;;  %v1164_v44 = vpop.f32.mrf.mxu1 }
 0x30b   :  { %v1179_v45 = vmul.f32 0.5, %v1171_v41  ;;  %v1172_v47 = vadd.f32 %v1121_v42, %v3647_v46  ;;  %v1174_v21 = vadd.f32 %v1164_v44, %v3652_v29  ;;  %v3286_v29 = vld [vmem:[%s3584_s3 + $0x6c] ss:$16 sps:$4 sm:$0xff]  }
 0x30c   :  { %v1123_v50 = vpop.f32.mrf.mxu0  ;;  %v1166_v55 = vpop.f32.mrf.mxu1 }
 0x30d   :  { %2307 = vtanh.f32 %v1179_v45  ;;  %v1187_v51 = vmul.f32 0.5, %v1172_v47  ;;  %v1175_v54 = vadd.f32 %v1123_v50, %v3649_v53  ;;  %v1177_v22 = vadd.f32 %v1166_v55, %v3651_v9  ;;  %v3206_v50 = vld [vmem:[%s3584_s3 + $0xc4] ss:$16 sps:$4 sm:$0xff]   ;;  %v3220_v53 = vld [vmem:[%s3584_s3 + $0xc0] ss:$16 sps:$4 sm:$0xff]  }
 0x30e   :  { %v1125_v56 = vpop.f32.mrf.mxu0  ;;  %v1168_v19 = vpop.f32.mrf.mxu1  ;;  %v1197_v16 = vmul.f32 0.5, %v1174_v21  ;;  %v3232_v55 = vld [vmem:[%s3584_s3 + $0xa4] ss:$16 sps:$4 sm:$0xff]   ;;  %v3262_v9 = vld [vmem:[%s3584_s3 + $0x8c] ss:$16 sps:$4 sm:$0xff]  }
 0x30f   :  { %2309 = vtanh.f32 %v1187_v51  ;;  %v1180_v57 = vmul.f32 0.5, %v1175_v54  ;;  %v1176_v28 = vadd.f32 %v1125_v56, %v3650_v58  ;;  %v1178_v52 = vadd.f32 %v1168_v19, %v3653_v17  ;;  %v3212_v51 = vld [vmem:[%s3584_s3 + $0xcc] ss:$16 sps:$4 sm:$0xff]   ;;  %v3226_v54 = vld [vmem:[%s3584_s3 + $0xc8] ss:$16 sps:$4 sm:$0xff]  }
 0x310   :  { %2311 = vtanh.f32 %v1173_v49  ;;  %v3200_v49 = vld [vmem:[%s3584_s3 + $0xe8] ss:$16 sps:$4 sm:$0xff]   ;;  %v3238_v56 = vld [vmem:[%s3584_s3 + $0xac] ss:$16 sps:$4 sm:$0xff]   ;;  %v3280_v19 = vld [vmem:[%s3584_s3 + $0x64] ss:$16 sps:$4 sm:$0xff]  }
 0x311   :  { %2313 = vtanh.f32 %v1180_v57  ;;  %v1188_v43 = vmul.f32 0.5, %v1176_v28  ;;  %v1198_v25 = vmul.f32 0.5, %v1178_v52  ;;  %v3244_v57 = vld [vmem:[%s3584_s3 + $0xa0] ss:$16 sps:$4 sm:$0xff]   ;;  %v3250_v58 = vld [vmem:[%s3584_s3 + $0xa8] ss:$16 sps:$4 sm:$0xff]  }
 0x312   :  { %v3256_v28 = vld [vmem:[%s3584_s3 + $0x84] ss:$16 sps:$4 sm:$0xff]   ;;  %v3292_v21 = vld [vmem:[%s3584_s3 + $0x60] ss:$16 sps:$4 sm:$0xff]   ;;  %v3298_v17 = vld [vmem:[%s3584_s3 + $0x68] ss:$16 sps:$4 sm:$0xff]  }
 0x313   :  { %2315 = vtanh.f32 %v1188_v43  ;;  %v3274_v43 = vld [vmem:[%s3584_s3 + $0x88] ss:$16 sps:$4 sm:$0xff]   ;;  %v3304_v52 = vld [vmem:[%s3584_s3 + $0x44] ss:$16 sps:$4 sm:$0xff]  }
 0x314   :  { %2317 = vtanh.f32 %v1177_v22  ;;  %v3268_v22 = vld [vmem:[%s3584_s3 + $0x80] ss:$16 sps:$4 sm:$0xff]  }
 0x315   :  { %2319 = vtanh.f32 %v1197_v16 }
 0x316   :  { %2321 = vtanh.f32 %v1198_v25  ;;  %v3657_v25 = vld [vmem:[#allocation20_spill] sm:$0xff] }
 0x31a   :  { %v2308_v13 = vpop.eup %2307 }
 0x31b   :  { %v1183_v8 = vmul.f32 0.5, %v2308_v13  ;;  %v3310_v13 = vld [vmem:[%s3584_s3 + $0x4c] ss:$16 sps:$4 sm:$0xff]  }
 0x31c   :  { %v2310_v12 = vpop.eup %2309 }
 0x31d   :  { %v2312_v11 = vpop.eup %2311  ;;  %v1185_v23 = vadd.f32 0.5, %v1183_v8  ;;  %v1191_v15 = vmul.f32 0.5, %v2310_v12  ;;  %v3316_v8 = vld [vmem:[%s3584_s3 + $0x40] ss:$16 sps:$4 sm:$0xff]   ;;  %v3654_v12 = vld [vmem:[#allocation16_spill] sm:$0xff] }
 0x31e   :  { %v2314_v14 = vpop.eup %2313 }
 0x31f   :  { %v1193_v20 = vadd.f32 0.5, %v1191_v15  ;;  %v1207_v33 = vmul.f32 %v2312_v11, %v1185_v23  ;;  %v1184_v26 = vmul.f32 0.5, %v2314_v14 }
 0x320   :  { %v2316_v32 = vpop.eup %2315 }
 0x321   :  { %v1205_v7 = vmul.f32 %v1193_v20, %v3124_v31  ;;  %v1186_v1 = vadd.f32 0.5, %v1184_v26  ;;  %v1192_v24 = vmul.f32 0.5, %v2316_v32  ;;  %v2318_v61 = vpop.eup %2317  ;;  %v3658_v26 = vld [vmem:[#allocation22_spill] sm:$0xff] }
 0x322   :  { %v2320_v38 = vpop.eup %2319 }
 0x323   :  { %v3184_v35 = vadd.f32 %v1207_v33, %v1205_v7  ;;  %v1194_v30 = vadd.f32 0.5, %v1192_v24  ;;  %v1208_v6 = vmul.f32 %v2318_v61, %v1186_v1  ;;  %v2322_v39 = vpop.eup %2321  ;;  %v1201_v40 = vmul.f32 0.5, %v2320_v38  ;;  %v3659_v7 = vld [vmem:[#allocation21_spill] sm:$0xff] }
 0x324   :  { %v1202_v31 = vmul.f32 0.5, %v2322_v39 }
 0x325   :  { %v1206_v10 = vmul.f32 %v1194_v30, %v3128_v34  ;;  %2323 = vtanh.f32 %v3184_v35  ;;  %v1203_v42 = vadd.f32 0.5, %v1201_v40  ;;  %v3194_v34 = vld [vmem:[%s3584_s3 + $0xe0] ss:$16 sps:$4 sm:$0xff]  }
 0x326   :  { %v1204_v44 = vadd.f32 0.5, %v1202_v31  ;;  %v3660_v30 = vld [vmem:[#allocation19_spill] sm:$0xff] }
 0x327   :  { %v3188_v18 = vadd.f32 %v1208_v6, %v1206_v10  ;;  %v3661_v10 = vld [vmem:[#allocation23_spill] sm:$0xff] }
 0x329   :  { %2325 = vtanh.f32 %v3188_v18 }
 0x332   :  { %v2324_v41 = vpop.eup %2323 }
 0x333   :  { %v1213_v46 = vmul.f32 %v2324_v41, %v1203_v42 }
 0x336   :  { %v2326_v45 = vpop.eup %2325 }
 0x337   :  { %v1214_v47 = vmul.f32 %v2326_v45, %v1204_v44 }
 0x339   :  { %v1224_v48 = vpack.c.bf16 %v1214_v47, %v1213_v46 }
 0x33b   :  { %1258 = vmatmul.mubr.bf16.vlgmr.msra.gmra.mxu0 %v1224_v48  ;;  %1301 = vmatmul.mubr.bf16.vlgmr.msra.gmra.mxu1 %v1224_v48 }
 0x33c   :  { %1366 = vmatpush1.bf16.msra.mxu0 %v3194_v34  ;;  %1409 = vmatpush1.bf16.msra.mxu1 %v3200_v49 }
 0x33d   :  { %1367 = vmatprep.subr.bf16.mxu0 %v3206_v50  ;;  %1410 = vmatprep.subr.bf16.mxu1 %v3212_v51 }
 0x33e   :  { %1397 = vmatprep.mubr.bf16.mxu0 %v3642_v27  ;;  %1440 = vmatprep.mubr.bf16.mxu1 %v3642_v27 }
 0x340   :  { %1368 = vmatpush1.bf16.msra.mxu0 %v3220_v53  ;;  %1411 = vmatpush1.bf16.msra.mxu1 %v3226_v54 }
 0x341   :  { %1369 = vmatprep.subr.bf16.mxu0 %v3232_v55  ;;  %1412 = vmatprep.subr.bf16.mxu1 %v3238_v56 }
 0x344   :  { %1370 = vmatpush1.bf16.msra.mxu0 %v3244_v57  ;;  %1413 = vmatpush1.bf16.msra.mxu1 %v3250_v58 }
 0x345   :  { %1371 = vmatprep.subr.bf16.mxu0 %v3256_v28  ;;  %1414 = vmatprep.subr.bf16.mxu1 %v3262_v9 }
 0x348   :  { %1372 = vmatpush1.bf16.msra.mxu0 %v3268_v22  ;;  %1415 = vmatpush1.bf16.msra.mxu1 %v3274_v43 }
 0x349   :  { %1373 = vmatprep.subr.bf16.mxu0 %v3280_v19  ;;  %1416 = vmatprep.subr.bf16.mxu1 %v3286_v29 }
 0x34c   :  { %1374 = vmatpush1.bf16.msra.mxu0 %v3292_v21  ;;  %1417 = vmatpush1.bf16.msra.mxu1 %v3298_v17 }
 0x34d   :  { %1375 = vmatprep.subr.bf16.mxu0 %v3304_v52  ;;  %1418 = vmatprep.subr.bf16.mxu1 %v3310_v13 }
 0x350   :  { %1376 = vmatpush1.bf16.msra.mxu0 %v3316_v8  ;;  %1419 = vmatpush1.bf16.msra.mxu1 %v2755_v60 }
 0x351   :  { %1377 = vmatprep.subr.bf16.mxu0 %v2750_v59  ;;  %1420 = vmatprep.subr.bf16.mxu1 %v2770_v63 }
 0x354   :  { %1378 = vmatpush1.bf16.msra.mxu0 %v2765_v62  ;;  %1421 = vmatpush1.bf16.msra.mxu1 %v2782_v2  ;;  %v3655_v2 = vld [vmem:[#allocation18_spill] sm:$0xff] }
 0x355   :  { %1379 = vmatprep.subr.bf16.mxu0 %v2777_v0  ;;  %1422 = vmatprep.subr.bf16.mxu1 %v2787_v3  ;;  %v3656_v0 = vld [vmem:[#allocation17_spill] sm:$0xff] }
 0x358   :  { %1380 = vmatpush1.bf16.msra.mxu0 %v2796_v4  ;;  %1423 = vmatpush1.bf16.msra.mxu1 %v2803_v5 }
 0x359   :  { %1505 = vmatprep.subr.bf16.mxu0 %v3166_v36  ;;  %1548 = vmatprep.subr.bf16.mxu1 %v3172_v37 }
 0x3fb   :  { %v1259_v60 = vpop.f32.mrf.mxu0  ;;  %v1302_v59 = vpop.f32.mrf.mxu1 }
 0x3fc   :  { %v1311_v63 = vadd.f32 %v1259_v60, %v3654_v12  ;;  %v1313_v15 = vadd.f32 %v1302_v59, %v3656_v0 }
 0x3fd   :  { %v1261_v16 = vpop.f32.mrf.mxu0  ;;  %v1304_v62 = vpop.f32.mrf.mxu1 }
 0x3fe   :  { %v1319_v11 = vmul.f32 0.5, %v1311_v63  ;;  %v1312_v23 = vadd.f32 %v1261_v16, %v3655_v2  ;;  %v1314_v6 = vadd.f32 %v1304_v62, %v3660_v30  ;;  %v3390_v30 = vld [vmem:[%s3584_s3 + $0x20] ss:$16 sps:$4 sm:$0xff]  }
 0x3ff   :  { %v1263_v3 = vpop.f32.mrf.mxu0  ;;  %v1306_v14 = vpop.f32.mrf.mxu1 }
 0x400   :  { %2327 = vtanh.f32 %v1319_v11  ;;  %v1327_v4 = vmul.f32 0.5, %v1312_v23  ;;  %v1315_v5 = vadd.f32 %v1263_v3, %v3657_v25  ;;  %v1317_v1 = vadd.f32 %v1306_v14, %v3659_v7 }
 0x401   :  { %v1265_v20 = vpop.f32.mrf.mxu0  ;;  %v1308_v61 = vpop.f32.mrf.mxu1  ;;  %v1337_v41 = vmul.f32 0.5, %v1314_v6  ;;  %v3396_v6 = vld [vmem:[%s3584_s3 + $0x28] ss:$16 sps:$4 sm:$0xff]  }
 0x402   :  { %2329 = vtanh.f32 %v1327_v4  ;;  %v1320_v33 = vmul.f32 0.5, %v1315_v5  ;;  %v1316_v32 = vadd.f32 %v1265_v20, %v3658_v26  ;;  %v1318_v38 = vadd.f32 %v1308_v61, %v3661_v10  ;;  %v3384_v61 = vld [vmem:[%s3584_s3 + $0x2c] ss:$16 sps:$4 sm:$0xff]   ;;  %v3402_v10 = vld [vmem:[%s3584_s3 + $0x4] ss:$16 sps:$4 sm:$0xff]  }
 0x403   :  { %2331 = vtanh.f32 %v1313_v15 }
 0x404   :  { %2333 = vtanh.f32 %v1320_v33  ;;  %v1328_v24 = vmul.f32 0.5, %v1316_v32  ;;  %v1338_v46 = vmul.f32 0.5, %v1318_v38  ;;  %v3408_v38 = vld [vmem:[%s3584_s3 + $0xc] ss:$16 sps:$4 sm:$0xff]  }
 0x406   :  { %2335 = vtanh.f32 %v1328_v24  ;;  %v3378_v24 = vld [vmem:[%s3584_s3 + $0x24] ss:$16 sps:$4 sm:$0xff]  }
 0x407   :  { %2337 = vtanh.f32 %v1317_v1 }
 0x408   :  { %2339 = vtanh.f32 %v1337_v41 }
 0x409   :  { %2341 = vtanh.f32 %v1338_v46 }
 0x40d   :  { %v2328_v39 = vpop.eup %2327 }
 0x40e   :  { %v1323_v40 = vmul.f32 0.5, %v2328_v39  ;;  %v3414_v39 = vld [vmem:[%s3584_s3] ss:$16 sps:$4 sm:$0xff]  }
 0x40f   :  { %v2330_v31 = vpop.eup %2329 }
 0x410   :  { %v2332_v42 = vpop.eup %2331  ;;  %v1325_v44 = vadd.f32 0.5, %v1323_v40  ;;  %v1331_v45 = vmul.f32 0.5, %v2330_v31  ;;  %v3420_v40 = vld [vmem:[%s3584_s3 + $0x8] ss:$16 sps:$4 sm:$0xff]  }
 0x411   :  { %v2334_v47 = vpop.eup %2333 }
 0x412   :  { %v1333_v48 = vadd.f32 0.5, %v1331_v45  ;;  %v1347_v60 = vmul.f32 %v2332_v42, %v1325_v44  ;;  %v1324_v59 = vmul.f32 0.5, %v2334_v47  ;;  %v3662_v42 = vld [vmem:[#allocation24_spill] sm:$0xff] }
 0x413   :  { %v2336_v12 = vpop.eup %2335 }
 0x414   :  { %v1345_v63 = vmul.f32 %v1333_v48, %v3184_v35  ;;  %v1326_v16 = vadd.f32 0.5, %v1324_v59  ;;  %v1332_v62 = vmul.f32 0.5, %v2336_v12  ;;  %v2338_v11 = vpop.eup %2337  ;;  %v3663_v48 = vld [vmem:[#allocation26_spill] sm:$0xff]  ;;  %v3664_v59 = vld [vmem:[#allocation25_spill] sm:$0xff] }
 0x415   :  { %v2340_v4 = vpop.eup %2339 }
 0x416   :  { %v3339_v2 = vadd.f32 %v1347_v60, %v1345_v63  ;;  %v1334_v23 = vadd.f32 0.5, %v1332_v62  ;;  %v1348_v0 = vmul.f32 %v2338_v11, %v1326_v16  ;;  %v2342_v25 = vpop.eup %2341  ;;  %v1341_v5 = vmul.f32 0.5, %v2340_v4  ;;  %v3665_v62 = vld [vmem:[#allocation28_spill] sm:$0xff]  ;;  %v3666_v4 = vld [vmem:[#allocation30_spill] sm:$0xff] }
 0x417   :  { %v1342_v35 = vmul.f32 0.5, %v2342_v25 }
 0x418   :  { %v1346_v15 = vmul.f32 %v1334_v23, %v3188_v18  ;;  %2343 = vtanh.f32 %v3339_v2  ;;  %v1343_v20 = vadd.f32 0.5, %v1341_v5  ;;  %v3372_v18 = vld [vmem:[%s3584_s3 + $0x48] ss:$16 sps:$4 sm:$0xff]   ;;  %v3667_v5 = vld [vmem:[#allocation29_spill] sm:$0xff] }
 0x419   :  { %v1344_v33 = vadd.f32 0.5, %v1342_v35 }
 0x41a   :  { %v3343_v3 = vadd.f32 %v1348_v0, %v1346_v15 }
 0x41c   :  { %2345 = vtanh.f32 %v3343_v3 }
 0x425   :  { %v2344_v14 = vpop.eup %2343 }
 0x426   :  { %v1353_v32 = vmul.f32 %v2344_v14, %v1343_v20 }
 0x429   :  { %v2346_v26 = vpop.eup %2345 }
 0x42a   :  { %v1354_v7 = vmul.f32 %v2346_v26, %v1344_v33  ;;  %v3668_v33 = vld [vmem:[#allocation27_spill] sm:$0xff] }
 0x42c   :  { %v1364_v1 = vpack.c.bf16 %v1354_v7, %v1353_v32  ;;  %v3669_v32 = vld [vmem:[#allocation31_spill] sm:$0xff] }
 0x42e   :  { %1398 = vmatmul.mubr.bf16.vlgmr.msra.gmra.mxu0 %v1364_v1  ;;  %1441 = vmatmul.mubr.bf16.vlgmr.msra.gmra.mxu1 %v1364_v1 }
 0x42f   :  { %1506 = vmatpush1.bf16.msra.mxu0 %v3194_v34  ;;  %1549 = vmatpush1.bf16.msra.mxu1 %v3200_v49 }
 0x430   :  { %1507 = vmatprep.subr.bf16.mxu0 %v3206_v50  ;;  %1550 = vmatprep.subr.bf16.mxu1 %v3212_v51 }
 0x431   :  { %1537 = vmatprep.mubr.bf16.mxu0 %v3642_v27  ;;  %1580 = vmatprep.mubr.bf16.mxu1 %v3642_v27 }
 0x433   :  { %1508 = vmatpush1.bf16.msra.mxu0 %v3220_v53  ;;  %1551 = vmatpush1.bf16.msra.mxu1 %v3226_v54 }
 0x434   :  { %1509 = vmatprep.subr.bf16.mxu0 %v3232_v55  ;;  %1552 = vmatprep.subr.bf16.mxu1 %v3238_v56 }
 0x437   :  { %1510 = vmatpush1.bf16.msra.mxu0 %v3244_v57  ;;  %1553 = vmatpush1.bf16.msra.mxu1 %v3250_v58 }
 0x438   :  { %1511 = vmatprep.subr.bf16.mxu0 %v3256_v28  ;;  %1554 = vmatprep.subr.bf16.mxu1 %v3262_v9 }
 0x43b   :  { %1512 = vmatpush1.bf16.msra.mxu0 %v3268_v22  ;;  %1555 = vmatpush1.bf16.msra.mxu1 %v3274_v43 }
 0x43c   :  { %1513 = vmatprep.subr.bf16.mxu0 %v3280_v19  ;;  %1556 = vmatprep.subr.bf16.mxu1 %v3286_v29 }
 0x43f   :  { %1514 = vmatpush1.bf16.msra.mxu0 %v3292_v21  ;;  %1557 = vmatpush1.bf16.msra.mxu1 %v3298_v17 }
 0x440   :  { %1515 = vmatprep.subr.bf16.mxu0 %v3304_v52  ;;  %1558 = vmatprep.subr.bf16.mxu1 %v3310_v13 }
 0x443   :  { %1516 = vmatpush1.bf16.msra.mxu0 %v3316_v8  ;;  %1559 = vmatpush1.bf16.msra.mxu1 %v3372_v18 }
 0x444   :  { %1517 = vmatprep.subr.bf16.mxu0 %v3378_v24  ;;  %1560 = vmatprep.subr.bf16.mxu1 %v3384_v61 }
 0x447   :  { %1518 = vmatpush1.bf16.msra.mxu0 %v3390_v30  ;;  %1561 = vmatpush1.bf16.msra.mxu1 %v3396_v6 }
 0x448   :  { %1519 = vmatprep.subr.bf16.mxu0 %v3402_v10  ;;  %1562 = vmatprep.subr.bf16.mxu1 %v3408_v38 }
 0x44b   :  { %1520 = vmatpush1.bf16.msra.mxu0 %v3414_v39  ;;  %1563 = vmatpush1.bf16.msra.mxu1 %v3420_v40 }
 0x44c   :  { %1645 = vmatprep.subr.bf16.mxu0 %v3166_v36  ;;  %1688 = vmatprep.subr.bf16.mxu1 %v3172_v37 }
 0x4ee   :  { %v1399_v31 = vpop.f32.mrf.mxu0  ;;  %v1442_v41 = vpop.f32.mrf.mxu1 }
 0x4ef   :  { %v1451_v44 = vadd.f32 %v1399_v31, %v3662_v42  ;;  %v1453_v12 = vadd.f32 %v1442_v41, %v3664_v59 }
 0x4f0   :  { %v1401_v45 = vpop.f32.mrf.mxu0  ;;  %v1444_v46 = vpop.f32.mrf.mxu1 }
 0x4f1   :  { %v1459_v47 = vmul.f32 0.5, %v1451_v44  ;;  %v1452_v60 = vadd.f32 %v1401_v45, %v3663_v48  ;;  %v1454_v26 = vadd.f32 %v1444_v46, %v3668_v33 }
 0x4f2   :  { %v1403_v63 = vpop.f32.mrf.mxu0  ;;  %v1446_v23 = vpop.f32.mrf.mxu1 }
 0x4f3   :  { %2347 = vtanh.f32 %v1459_v47  ;;  %v1467_v16 = vmul.f32 0.5, %v1452_v60  ;;  %v1455_v11 = vadd.f32 %v1403_v63, %v3665_v62  ;;  %v1457_v35 = vadd.f32 %v1446_v23, %v3667_v5 }
 0x4f4   :  { %v1405_v0 = vpop.f32.mrf.mxu0  ;;  %v1448_v20 = vpop.f32.mrf.mxu1  ;;  %v1477_v42 = vmul.f32 0.5, %v1454_v26 }
 0x4f5   :  { %2349 = vtanh.f32 %v1467_v16  ;;  %v1460_v15 = vmul.f32 0.5, %v1455_v11  ;;  %v1456_v25 = vadd.f32 %v1405_v0, %v3666_v4  ;;  %v1458_v7 = vadd.f32 %v1448_v20, %v3669_v32 }
 0x4f6   :  { %2351 = vtanh.f32 %v1453_v12 }
 0x4f7   :  { %2353 = vtanh.f32 %v1460_v15  ;;  %v1468_v14 = vmul.f32 0.5, %v1456_v25  ;;  %v1478_v48 = vmul.f32 0.5, %v1458_v7 }
 0x4f9   :  { %2355 = vtanh.f32 %v1468_v14 }
 0x4fa   :  { %2357 = vtanh.f32 %v1457_v35 }
 0x4fb   :  { %2359 = vtanh.f32 %v1477_v42 }
 0x4fc   :  { %2361 = vtanh.f32 %v1478_v48 }
 0x500   :  { %v2348_v1 = vpop.eup %2347 }
 0x501   :  { %v1463_v31 = vmul.f32 0.5, %v2348_v1 }
 0x502   :  { %v2350_v41 = vpop.eup %2349 }
 0x503   :  { %v2352_v44 = vpop.eup %2351  ;;  %v1465_v45 = vadd.f32 0.5, %v1463_v31  ;;  %v1471_v47 = vmul.f32 0.5, %v2350_v41 }
 0x504   :  { %v2354_v60 = vpop.eup %2353 }
 0x505   :  { %v1473_v59 = vadd.f32 0.5, %v1471_v47  ;;  %v1487_v12 = vmul.f32 %v2352_v44, %v1465_v45  ;;  %v1464_v63 = vmul.f32 0.5, %v2354_v60  ;;  %v3670_v44 = vld [vmem:[#allocation32_spill] sm:$0xff] }
 0x506   :  { %v2356_v16 = vpop.eup %2355 }
 0x507   :  { %v1485_v62 = vmul.f32 %v1473_v59, %v3339_v2  ;;  %v1466_v11 = vadd.f32 0.5, %v1464_v63  ;;  %v1472_v46 = vmul.f32 0.5, %v2356_v16  ;;  %v2358_v23 = vpop.eup %2357  ;;  %v3671_v59 = vld [vmem:[#allocation34_spill] sm:$0xff]  ;;  %v3672_v63 = vld [vmem:[#allocation33_spill] sm:$0xff] }
 0x508   :  { %v2360_v35 = vpop.eup %2359 }
 0x509   :  { %v3434_v0 = vadd.f32 %v1487_v12, %v1485_v62  ;;  %v1474_v15 = vadd.f32 0.5, %v1472_v46  ;;  %v1488_v4 = vmul.f32 %v2358_v23, %v1466_v11  ;;  %v2362_v14 = vpop.eup %2361  ;;  %v1481_v20 = vmul.f32 0.5, %v2360_v35  ;;  %v3673_v46 = vld [vmem:[#allocation36_spill] sm:$0xff]  ;;  %v3675_v35 = vld [vmem:[#allocation37_spill] sm:$0xff] }
 0x50a   :  { %v1482_v2 = vmul.f32 0.5, %v2362_v14 }
 0x50b   :  { %v1486_v25 = vmul.f32 %v1474_v15, %v3343_v3  ;;  %2363 = vtanh.f32 %v3434_v0  ;;  %v1483_v26 = vadd.f32 0.5, %v1481_v20 }
 0x50c   :  { %v1484_v32 = vadd.f32 0.5, %v1482_v2 }
 0x50d   :  { %v3438_v5 = vadd.f32 %v1488_v4, %v1486_v25  ;;  %v3674_v4 = vld [vmem:[#allocation38_spill] sm:$0xff] }
 0x50f   :  { %2365 = vtanh.f32 %v3438_v5 }
 0x518   :  { %v2364_v33 = vpop.eup %2363 }
 0x519   :  { %v1493_v1 = vmul.f32 %v2364_v33, %v1483_v26  ;;  %v3676_v33 = vld [vmem:[#allocation35_spill] sm:$0xff] }
 0x51c   :  { %v2366_v7 = vpop.eup %2365 }
 0x51d   :  { %v1494_v31 = vmul.f32 %v2366_v7, %v1484_v32  ;;  %v3677_v32 = vld [vmem:[#allocation39_spill] sm:$0xff] }
 0x51f   :  { %v1504_v41 = vpack.c.bf16 %v1494_v31, %v1493_v1 }
 0x521   :  { %1538 = vmatmul.mubr.bf16.vlgmr.msra.gmra.mxu0 %v1504_v41  ;;  %1581 = vmatmul.mubr.bf16.vlgmr.msra.gmra.mxu1 %v1504_v41 }
 0x522   :  { %1646 = vmatpush1.bf16.msra.mxu0 %v3194_v34  ;;  %1689 = vmatpush1.bf16.msra.mxu1 %v3200_v49 }
 0x523   :  { %1647 = vmatprep.subr.bf16.mxu0 %v3206_v50  ;;  %1690 = vmatprep.subr.bf16.mxu1 %v3212_v51 }
 0x524   :  { %1677 = vmatprep.mubr.bf16.mxu0 %v3642_v27  ;;  %1720 = vmatprep.mubr.bf16.mxu1 %v3642_v27 }
 0x526   :  { %1648 = vmatpush1.bf16.msra.mxu0 %v3220_v53  ;;  %1691 = vmatpush1.bf16.msra.mxu1 %v3226_v54 }
 0x527   :  { %1649 = vmatprep.subr.bf16.mxu0 %v3232_v55  ;;  %1692 = vmatprep.subr.bf16.mxu1 %v3238_v56 }
 0x52a   :  { %1650 = vmatpush1.bf16.msra.mxu0 %v3244_v57  ;;  %1693 = vmatpush1.bf16.msra.mxu1 %v3250_v58 }
 0x52b   :  { %1651 = vmatprep.subr.bf16.mxu0 %v3256_v28  ;;  %1694 = vmatprep.subr.bf16.mxu1 %v3262_v9 }
 0x52e   :  { %1652 = vmatpush1.bf16.msra.mxu0 %v3268_v22  ;;  %1695 = vmatpush1.bf16.msra.mxu1 %v3274_v43 }
 0x52f   :  { %1653 = vmatprep.subr.bf16.mxu0 %v3280_v19  ;;  %1696 = vmatprep.subr.bf16.mxu1 %v3286_v29 }
 0x532   :  { %1654 = vmatpush1.bf16.msra.mxu0 %v3292_v21  ;;  %1697 = vmatpush1.bf16.msra.mxu1 %v3298_v17 }
 0x533   :  { %1655 = vmatprep.subr.bf16.mxu0 %v3304_v52  ;;  %1698 = vmatprep.subr.bf16.mxu1 %v3310_v13 }
 0x536   :  { %1656 = vmatpush1.bf16.msra.mxu0 %v3316_v8  ;;  %1699 = vmatpush1.bf16.msra.mxu1 %v3372_v18 }
 0x537   :  { %1657 = vmatprep.subr.bf16.mxu0 %v3378_v24  ;;  %1700 = vmatprep.subr.bf16.mxu1 %v3384_v61 }
 0x53a   :  { %1658 = vmatpush1.bf16.msra.mxu0 %v3390_v30  ;;  %1701 = vmatpush1.bf16.msra.mxu1 %v3396_v6 }
 0x53b   :  { %1659 = vmatprep.subr.bf16.mxu0 %v3402_v10  ;;  %1702 = vmatprep.subr.bf16.mxu1 %v3408_v38 }
 0x53e   :  { %1660 = vmatpush1.bf16.msra.mxu0 %v3414_v39  ;;  %1703 = vmatpush1.bf16.msra.mxu1 %v3420_v40 }
 0x53f   :  { %1785 = vmatprep.subr.bf16.mxu0 %v3166_v36  ;;  %1828 = vmatprep.subr.bf16.mxu1 %v3172_v37 }
 0x5e1   :  { %v1539_v3 = vpop.f32.mrf.mxu0  ;;  %v1582_v42 = vpop.f32.mrf.mxu1 }
 0x5e2   :  { %v1591_v45 = vadd.f32 %v1539_v3, %v3670_v44  ;;  %v1593_v16 = vadd.f32 %v1582_v42, %v3672_v63 }
 0x5e3   :  { %v1541_v47 = vpop.f32.mrf.mxu0  ;;  %v1584_v48 = vpop.f32.mrf.mxu1 }
 0x5e4   :  { %v1599_v60 = vmul.f32 0.5, %v1591_v45  ;;  %v1592_v12 = vadd.f32 %v1541_v47, %v3671_v59  ;;  %v1594_v26 = vadd.f32 %v1584_v48, %v3676_v33 }
 0x5e5   :  { %v1543_v62 = vpop.f32.mrf.mxu0  ;;  %v1586_v15 = vpop.f32.mrf.mxu1 }
 0x5e6   :  { %2367 = vtanh.f32 %v1599_v60  ;;  %v1607_v11 = vmul.f32 0.5, %v1592_v12  ;;  %v1595_v23 = vadd.f32 %v1543_v62, %v3673_v46  ;;  %v1597_v14 = vadd.f32 %v1586_v15, %v3675_v35 }
 0x5e7   :  { %v1545_v36 = vpop.f32.mrf.mxu0  ;;  %v1588_v2 = vpop.f32.mrf.mxu1  ;;  %v1617_v3 = vmul.f32 0.5, %v1594_v26 }
 0x5e8   :  { %2369 = vtanh.f32 %v1607_v11  ;;  %v1600_v37 = vmul.f32 0.5, %v1595_v23  ;;  %v1596_v25 = vadd.f32 %v1545_v36, %v3674_v4  ;;  %v1598_v7 = vadd.f32 %v1588_v2, %v3677_v32 }
 0x5e9   :  { %2371 = vtanh.f32 %v1593_v16 }
 0x5ea   :  { %2373 = vtanh.f32 %v1600_v37  ;;  %v1608_v20 = vmul.f32 0.5, %v1596_v25  ;;  %v1618_v47 = vmul.f32 0.5, %v1598_v7 }
 0x5ec   :  { %2375 = vtanh.f32 %v1608_v20 }
 0x5ed   :  { %2377 = vtanh.f32 %v1597_v14 }
 0x5ee   :  { %2379 = vtanh.f32 %v1617_v3 }
 0x5ef   :  { %2381 = vtanh.f32 %v1618_v47 }
 0x5f3   :  { %v2368_v1 = vpop.eup %2367 }
 0x5f4   :  { %v1603_v31 = vmul.f32 0.5, %v2368_v1 }
 0x5f5   :  { %v2370_v41 = vpop.eup %2369 }
 0x5f6   :  { %v2372_v42 = vpop.eup %2371  ;;  %v1605_v44 = vadd.f32 0.5, %v1603_v31  ;;  %v1611_v45 = vmul.f32 0.5, %v2370_v41 }
 0x5f7   :  { %v2374_v60 = vpop.eup %2373 }
 0x5f8   :  { %v1613_v59 = vadd.f32 0.5, %v1611_v45  ;;  %v1627_v12 = vmul.f32 %v2372_v42, %v1605_v44  ;;  %v1604_v63 = vmul.f32 0.5, %v2374_v60 }
 0x5f9   :  { %v2376_v16 = vpop.eup %2375 }
 0x5fa   :  { %v1625_v62 = vmul.f32 %v1613_v59, %v3434_v0  ;;  %v1606_v11 = vadd.f32 0.5, %v1604_v63  ;;  %v1612_v48 = vmul.f32 0.5, %v2376_v16  ;;  %v2378_v46 = vpop.eup %2377 }
 0x5fb   :  { %v2380_v25 = vpop.eup %2379 }
 0x5fc   :  { %v3484_v23 = vadd.f32 %v1627_v12, %v1625_v62  ;;  %v1614_v15 = vadd.f32 0.5, %v1612_v48  ;;  %v1628_v36 = vmul.f32 %v2378_v46, %v1606_v11  ;;  %v2382_v35 = vpop.eup %2381  ;;  %v1621_v14 = vmul.f32 0.5, %v2380_v25 }
 0x5fd   :  { %v1622_v0 = vmul.f32 0.5, %v2382_v35 }
 0x5fe   :  { %v1626_v37 = vmul.f32 %v1614_v15, %v3438_v5  ;;  %2383 = vtanh.f32 %v3484_v23  ;;  %v1623_v2 = vadd.f32 0.5, %v1621_v14 }
 0x5ff   :  { %v1624_v33 = vadd.f32 0.5, %v1622_v0 }
 0x600   :  { %v3488_v4 = vadd.f32 %v1628_v36, %v1626_v37 }
 0x602   :  { %2385 = vtanh.f32 %v3488_v4 }
 0x60b   :  { %v2384_v20 = vpop.eup %2383 }
 0x60c   :  { %v1633_v32 = vmul.f32 %v2384_v20, %v1623_v2 }
 0x60f   :  { %v2386_v26 = vpop.eup %2385 }
 0x610   :  { %v1634_v7 = vmul.f32 %v2386_v26, %v1624_v33 }
 0x612   :  { %v1644_v1 = vpack.c.bf16 %v1634_v7, %v1633_v32  ;;  %v2461_v7 = vmov 0.0  }
 0x614   :  { %1678 = vmatmul.mubr.bf16.vlgmr.msra.gmra.mxu0 %v1644_v1  ;;  %1721 = vmatmul.mubr.bf16.vlgmr.msra.gmra.mxu1 %v1644_v1  ;;  %v2260_v1 = vld [vmem:[%s3586_s4 + $0x30] sm:$0xff]  }
 0x615   :  { %1786 = vmatpush1.bf16.msra.mxu0 %v3194_v34  ;;  %1829 = vmatpush1.bf16.msra.mxu1 %v3200_v49  ;;  %v3678_v49 = vld [vmem:[#allocation40_spill] sm:$0xff] }
 0x616   :  { %1787 = vmatprep.subr.bf16.mxu0 %v3206_v50  ;;  %1830 = vmatprep.subr.bf16.mxu1 %v3212_v51 }
 0x617   :  { %1817 = vmatprep.mubr.bf16.mxu0 %v3642_v27  ;;  %1860 = vmatprep.mubr.bf16.mxu1 %v3642_v27 }
 0x619   :  { %1788 = vmatpush1.bf16.msra.mxu0 %v3220_v53  ;;  %1831 = vmatpush1.bf16.msra.mxu1 %v3226_v54 }
 0x61a   :  { %1789 = vmatprep.subr.bf16.mxu0 %v3232_v55  ;;  %1832 = vmatprep.subr.bf16.mxu1 %v3238_v56  ;;  %v3679_v55 = vld [vmem:[#allocation42_spill] sm:$0xff] }
 0x61d   :  { %1790 = vmatpush1.bf16.msra.mxu0 %v3244_v57  ;;  %1833 = vmatpush1.bf16.msra.mxu1 %v3250_v58  ;;  %v3680_v57 = vld [vmem:[#allocation41_spill] sm:$0xff] }
 0x61e   :  { %1791 = vmatprep.subr.bf16.mxu0 %v3256_v28  ;;  %1834 = vmatprep.subr.bf16.mxu1 %v3262_v9 }
 0x621   :  { %1792 = vmatpush1.bf16.msra.mxu0 %v3268_v22  ;;  %1835 = vmatpush1.bf16.msra.mxu1 %v3274_v43  ;;  %v3681_v22 = vld [vmem:[#allocation44_spill] sm:$0xff] }
 0x622   :  { %1793 = vmatprep.subr.bf16.mxu0 %v3280_v19  ;;  %1836 = vmatprep.subr.bf16.mxu1 %v3286_v29 }
 0x625   :  { %1794 = vmatpush1.bf16.msra.mxu0 %v3292_v21  ;;  %1837 = vmatpush1.bf16.msra.mxu1 %v3298_v17  ;;  %v3682_v17 = vld [vmem:[#allocation46_spill] sm:$0xff] }
 0x626   :  { %1795 = vmatprep.subr.bf16.mxu0 %v3304_v52  ;;  %1838 = vmatprep.subr.bf16.mxu1 %v3310_v13  ;;  %v3683_v13 = vld [vmem:[#allocation45_spill] sm:$0xff] }
 0x629   :  { %1796 = vmatpush1.bf16.msra.mxu0 %v3316_v8  ;;  %1839 = vmatpush1.bf16.msra.mxu1 %v3372_v18 }
 0x62a   :  { %1797 = vmatprep.subr.bf16.mxu0 %v3378_v24  ;;  %1840 = vmatprep.subr.bf16.mxu1 %v3384_v61  ;;  %v3684_v61 = vld [vmem:[#allocation43_spill] sm:$0xff] }
 0x62d   :  { %1798 = vmatpush1.bf16.msra.mxu0 %v3390_v30  ;;  %1841 = vmatpush1.bf16.msra.mxu1 %v3396_v6  ;;  %v3685_v6 = vld [vmem:[#allocation47_spill] sm:$0xff] }
 0x62e   :  { %1799 = vmatprep.subr.bf16.mxu0 %v3402_v10  ;;  %1842 = vmatprep.subr.bf16.mxu1 %v3408_v38 }
 0x631   :  { %1800 = vmatpush1.bf16.msra.mxu0 %v3414_v39  ;;  %1843 = vmatpush1.bf16.msra.mxu1 %v3420_v40 }
 0x632   :  { %2131 = vmatprep.subr.bf16.mxu0 %v2461_v7 }
 0x6d4   :  { %v1679_v27 = vpop.f32.mrf.mxu0  ;;  %v1722_v34 = vpop.f32.mrf.mxu1 }
 0x6d5   :  { %v1731_v50 = vadd.f32 %v1679_v27, %v3678_v49  ;;  %v1733_v58 = vadd.f32 %v1722_v34, %v3680_v57  ;;  %v2261_v27 = vld [vmem:[%s3586_s4 + $0x28] sm:$0xff]   ;;  %v2262_v34 = vld [vmem:[%s3586_s4 + $0x20] sm:$0xff]   ;;  %v2263_v49 = vld [vmem:[%s3586_s4 + $0x18] sm:$0xff]  }
 0x6d6   :  { %v1681_v51 = vpop.f32.mrf.mxu0  ;;  %v1724_v53 = vpop.f32.mrf.mxu1 }
 0x6d7   :  { %v1739_v54 = vmul.f32 0.5, %v1731_v50  ;;  %v1732_v56 = vadd.f32 %v1681_v51, %v3679_v55  ;;  %v1734_v30 = vadd.f32 %v1724_v53, %v3684_v61  ;;  %v2264_v50 = vld [vmem:[%s3586_s4 + $0x10] sm:$0xff]   ;;  %v2265_v51 = vld [vmem:[%s3586_s4 + $0x8] sm:$0xff]   ;;  %v2266_v53 = vld [vmem:[%s3586_s4] sm:$0xff]  }
 0x6d8   :  { %v1683_v28 = vpop.f32.mrf.mxu0  ;;  %v1726_v19 = vpop.f32.mrf.mxu1  ;;  %v3690_v61 = vld [vmem:[#allocation54_spill] sm:$0xff] }
 0x6d9   :  { %2387 = vtanh.f32 %v1739_v54  ;;  %v1747_v9 = vmul.f32 0.5, %v1732_v56  ;;  %v1735_v43 = vadd.f32 %v1683_v28, %v3681_v22  ;;  %v1737_v8 = vadd.f32 %v1726_v19, %v3683_v13  ;;  %v3686_v56 = vld [vmem:[#allocation48_spill] sm:$0xff]  ;;  %v3687_v22 = vld [vmem:[#allocation50_spill] sm:$0xff]  ;;  %v3688_v19 = vld [vmem:[#allocation49_spill] sm:$0xff] }
 0x6da   :  { %v1685_v29 = vpop.f32.mrf.mxu0  ;;  %v1728_v24 = vpop.f32.mrf.mxu1  ;;  %v1757_v5 = vmul.f32 0.5, %v1734_v30 }
 0x6db   :  { %2389 = vtanh.f32 %v1747_v9  ;;  %v1740_v21 = vmul.f32 0.5, %v1735_v43  ;;  %v1736_v52 = vadd.f32 %v1685_v29, %v3682_v17  ;;  %v1738_v10 = vadd.f32 %v1728_v24, %v3685_v6  ;;  %v3691_v6 = vld [vmem:[#allocation53_spill] sm:$0xff] }
 0x6dc   :  { %2391 = vtanh.f32 %v1733_v58 }
 0x6dd   :  { %2393 = vtanh.f32 %v1740_v21  ;;  %v1748_v18 = vmul.f32 0.5, %v1736_v52  ;;  %v1758_v42 = vmul.f32 0.5, %v1738_v10  ;;  %v3689_v52 = vld [vmem:[#allocation52_spill] sm:$0xff] }
 0x6df   :  { %2395 = vtanh.f32 %v1748_v18 }
 0x6e0   :  { %2397 = vtanh.f32 %v1737_v8 }
 0x6e1   :  { %2399 = vtanh.f32 %v1757_v5 }
 0x6e2   :  { %2401 = vtanh.f32 %v1758_v42 }
 0x6e6   :  { %v2388_v38 = vpop.eup %2387 }
 0x6e7   :  { %v1743_v39 = vmul.f32 0.5, %v2388_v38 }
 0x6e8   :  { %v2390_v40 = vpop.eup %2389 }
 0x6e9   :  { %v2392_v31 = vpop.eup %2391  ;;  %v1745_v41 = vadd.f32 0.5, %v1743_v39  ;;  %v1751_v3 = vmul.f32 0.5, %v2390_v40  ;;  %v3692_v39 = vld [vmem:[#allocation51_spill] sm:$0xff] }
 0x6ea   :  { %v2394_v44 = vpop.eup %2393 }
 0x6eb   :  { %v1753_v45 = vadd.f32 0.5, %v1751_v3  ;;  %v1767_v47 = vmul.f32 %v2392_v31, %v1745_v41  ;;  %v1744_v60 = vmul.f32 0.5, %v2394_v44  ;;  %v3693_v41 = vld [vmem:[#allocation55_spill] sm:$0xff] }
 0x6ec   :  { %v2396_v59 = vpop.eup %2395 }
 0x6ed   :  { %v1765_v12 = vmul.f32 %v1753_v45, %v3484_v23  ;;  %v1746_v63 = vadd.f32 0.5, %v1744_v60  ;;  %v1752_v16 = vmul.f32 0.5, %v2396_v59  ;;  %v2398_v62 = vpop.eup %2397 }
 0x6ee   :  { %v2400_v37 = vpop.eup %2399 }
 0x6ef   :  { %v3532_v11 = vadd.f32 %v1767_v47, %v1765_v12  ;;  %v1754_v48 = vadd.f32 0.5, %v1752_v16  ;;  %v1768_v46 = vmul.f32 %v2398_v62, %v1746_v63  ;;  %v2402_v25 = vpop.eup %2401  ;;  %v1761_v35 = vmul.f32 0.5, %v2400_v37 }
 0x6f0   :  { %v1762_v23 = vmul.f32 0.5, %v2402_v25 }
 0x6f1   :  { %v1766_v15 = vmul.f32 %v1754_v48, %v3488_v4  ;;  %2403 = vtanh.f32 %v3532_v11  ;;  %v1763_v0 = vadd.f32 0.5, %v1761_v35  ;;  %v2259_v4 = vld [vmem:[%s3586_s4 + $0x38] sm:$0xff]  }
 0x6f2   :  { %v1764_v20 = vadd.f32 0.5, %v1762_v23 }
 0x6f3   :  { %v3536_v36 = vadd.f32 %v1768_v46, %v1766_v15 }
 0x6f5   :  { %2405 = vtanh.f32 %v3536_v36 }
 0x6fe   :  { %v2404_v14 = vpop.eup %2403 }
 0x6ff   :  { %v1773_v33 = vmul.f32 %v2404_v14, %v1763_v0 }
 0x702   :  { %v2406_v2 = vpop.eup %2405 }
 0x703   :  { %v1774_v26 = vmul.f32 %v2406_v2, %v1764_v20 }
 0x705   :  { %v1784_v32 = vpack.c.bf16 %v1774_v26, %v1773_v33 }
 0x707   :  { %1818 = vmatmul.mubr.bf16.vlgmr.msra.gmra.mxu0 %v1784_v32  ;;  %1861 = vmatmul.mubr.bf16.vlgmr.msra.gmra.mxu1 %v1784_v32 }
 0x708   :  { %2132 = vmatpush3.bf16.msra.mxu0 %v2259_v4  ;;  %2147 = vmatprep.mubr.msk.bf16.mxu0 %vm2462_vm0, %v2461_v7 }
 0x709   :  { %2133 = vmatprep.subr.bf16.mxu0 %v2461_v7 }
 0x70c   :  { %2134 = vmatpush3.bf16.msra.mxu0 %v2260_v1 }
 0x70d   :  { %2135 = vmatprep.subr.bf16.mxu0 %v2461_v7 }
 0x710   :  { %2136 = vmatpush3.bf16.msra.mxu0 %v2261_v27 }
 0x711   :  { %2137 = vmatprep.subr.bf16.mxu0 %v2461_v7 }
 0x714   :  { %2138 = vmatpush3.bf16.msra.mxu0 %v2262_v34 }
 0x715   :  { %2139 = vmatprep.subr.bf16.mxu0 %v2461_v7 }
 0x718   :  { %2140 = vmatpush3.bf16.msra.mxu0 %v2263_v49 }
 0x719   :  { %2141 = vmatprep.subr.bf16.mxu0 %v2461_v7 }
 0x71c   :  { %2142 = vmatpush3.bf16.msra.mxu0 %v2264_v50 }
 0x71d   :  { %2143 = vmatprep.subr.bf16.mxu0 %v2461_v7 }
 0x720   :  { %2144 = vmatpush3.bf16.msra.mxu0 %v2265_v51  ;;  %v2113_v51 = vld [vmem:[%s3587_s5] ss:$0 sm:$0xff] }
 0x721   :  { %2145 = vmatprep.subr.bf16.mxu0 %v2461_v7 }
 0x724   :  { %2146 = vmatpush3.bf16.msra.mxu0 %v2266_v53 }
 0x7c7   :  { %v1819_v54 = vpop.f32.mrf.mxu0  ;;  %v1862_v55 = vpop.f32.mrf.mxu1 }
 0x7c8   :  { %v1871_v57 = vadd.f32 %v1819_v54, %v3686_v56  ;;  %v1873_v29 = vadd.f32 %v1862_v55, %v3688_v19 }
 0x7c9   :  { %v1821_v58 = vpop.f32.mrf.mxu0  ;;  %v1864_v28 = vpop.f32.mrf.mxu1 }
 0x7ca   :  { %v1879_v9 = vmul.f32 0.5, %v1871_v57  ;;  %v1872_v43 = vadd.f32 %v1821_v58, %v3687_v22  ;;  %v1874_v40 = vadd.f32 %v1864_v28, %v3692_v39 }
 0x7cb   :  { %v1823_v21 = vpop.f32.mrf.mxu0  ;;  %v1866_v8 = vpop.f32.mrf.mxu1 }
 0x7cc   :  { %2407 = vtanh.f32 %v1879_v9  ;;  %v1887_v17 = vmul.f32 0.5, %v1872_v43  ;;  %v1875_v13 = vadd.f32 %v1823_v21, %v3689_v52  ;;  %v1877_v10 = vadd.f32 %v1866_v8, %v3691_v6 }
 0x7cd   :  { %v1825_v18 = vpop.f32.mrf.mxu0  ;;  %v1868_v5 = vpop.f32.mrf.mxu1  ;;  %v1897_v31 = vmul.f32 0.5, %v1874_v40 }
 0x7ce   :  { %2409 = vtanh.f32 %v1887_v17  ;;  %v1880_v24 = vmul.f32 0.5, %v1875_v13  ;;  %v1876_v30 = vadd.f32 %v1825_v18, %v3690_v61  ;;  %v1878_v3 = vadd.f32 %v1868_v5, %v3693_v41 }
 0x7cf   :  { %2411 = vtanh.f32 %v1873_v29 }
 0x7d0   :  { %2413 = vtanh.f32 %v1880_v24  ;;  %v1888_v38 = vmul.f32 0.5, %v1876_v30  ;;  %v1898_v12 = vmul.f32 0.5, %v1878_v3 }
 0x7d2   :  { %2415 = vtanh.f32 %v1888_v38 }
 0x7d3   :  { %2417 = vtanh.f32 %v1877_v10 }
 0x7d4   :  { %2419 = vtanh.f32 %v1897_v31 }
 0x7d5   :  { %2421 = vtanh.f32 %v1898_v12 }
 0x7d9   :  { %v2408_v42 = vpop.eup %2407 }
 0x7da   :  { %v1883_v44 = vmul.f32 0.5, %v2408_v42 }
 0x7db   :  { %v2410_v45 = vpop.eup %2409 }
 0x7dc   :  { %v2412_v47 = vpop.eup %2411  ;;  %v1885_v60 = vadd.f32 0.5, %v1883_v44  ;;  %v1891_v59 = vmul.f32 0.5, %v2410_v45 }
 0x7dd   :  { %v2414_v63 = vpop.eup %2413 }
 0x7de   :  { %v1893_v16 = vadd.f32 0.5, %v1891_v59  ;;  %v1907_v62 = vmul.f32 %v2412_v47, %v1885_v60  ;;  %v1884_v48 = vmul.f32 0.5, %v2414_v63 }
 0x7df   :  { %v2416_v46 = vpop.eup %2415 }
 0x7e0   :  { %v1905_v15 = vmul.f32 %v1893_v16, %v3532_v11  ;;  %v1886_v37 = vadd.f32 0.5, %v1884_v48  ;;  %v1892_v25 = vmul.f32 0.5, %v2416_v46  ;;  %v2418_v35 = vpop.eup %2417 }
 0x7e1   :  { %v2420_v33 = vpop.eup %2419 }
 0x7e2   :  { %v1909_v23 = vadd.f32 %v1907_v62, %v1905_v15  ;;  %v1894_v14 = vadd.f32 0.5, %v1892_v25  ;;  %v1908_v0 = vmul.f32 %v2418_v35, %v1886_v37  ;;  %v1901_v26 = vmul.f32 0.5, %v2420_v33  ;;  %v2422_v32 = vpop.eup %2421 }
 0x7e3   :  { %v1902_v7 = vmul.f32 0.5, %v2422_v32 }
 0x7e4   :  { %2423 = vtanh.f32 %v1909_v23  ;;  %v1906_v20 = vmul.f32 %v1894_v14, %v3536_v36  ;;  %v1903_v4 = vadd.f32 0.5, %v1901_v26 }
 0x7e5   :  { %v1904_v11 = vadd.f32 0.5, %v1902_v7 }
 0x7e6   :  { %v1910_v2 = vadd.f32 %v1908_v0, %v1906_v20 }
 0x7e8   :  { %2425 = vtanh.f32 %v1910_v2 }
 0x7f1   :  { %v2424_v1 = vpop.eup %2423 }
 0x7f2   :  { %v1913_v27 = vmul.f32 %v2424_v1, %v1903_v4 }
 0x7f5   :  { %v2426_v34 = vpop.eup %2425 }
 0x7f6   :  { %v1914_v49 = vmul.f32 %v2426_v34, %v1904_v11 }
 0x7f8   :  { %v1922_v50 = vpack.c.bf16 %v1914_v49, %v1913_v27 }
 0x7fa   :  { %2148 = vmatmul.mubr.bf16.vlgmr.msra.gmra.mxu0 %v1922_v50 }
 0x8ba   :  { %v2028_v53 = vpop.f32.mrf.mxu0 }
 0x8bb   :  { %v2029_v36 = vadd.f32 %v2113_v51, %v2028_v53 }
 0x8bc   :  { %v2149_v54 = vpop.f32.mrf.mxu0 }
 0x8bd   :  { %2035 = vst [vmem:[%s3588_s6] sm:$0xff] %v2029_v36 }
 0x8be   :  { %v2031_v55 = vpop.f32.mrf.mxu0 }
 0x8bf   :  { %v2032_v56 = vadd.f32 %v2113_v51, %v2031_v55 }
 0x8c0   :  { %v2150_v57 = vpop.f32.mrf.mxu0 }
 0x8c1   :  { %2036 = vst [vmem:[%s3588_s6 + $0x8] sm:$0xff] %v2032_v56 }

</bundles_post_ra>
